<compile_context>
chip_gen: v5e
topology: v5e:2x2
jax: 0.10.0
libtpu: 0.0.40
codegen_flags: <defaults>
</compile_context>

<pallas_src>
import functools

import jax
import jax.numpy as jnp
from jax.experimental import pallas as pl
from jax.experimental.pallas import tpu as pltpu


def _round_up(x, m):
    return ((x + m - 1) // m) * m


def _convlstm_kernel(p_ref, c0_ref, w_ref, b_ref, h1_ref, c1_ref, *, Cout):
    """One TM-row block of the fused ConvLSTM cell.

    p_ref  : (Kd_pad, TM)   bf16  im2col'ed [x|h|c] patches, transposed
    c0_ref : (Cout, TM)     f32   previous cell state (for the cell update)
    w_ref  : (4*Cout, Kd_pad) bf16 fused conv weight
    b_ref  : (4*Cout, 1)    f32   fused bias
    h1_ref : (Cout, TM)     f32
    c1_ref : (Cout, TM)     f32
    """
    # Single big MXU matmul: (4C, Kd) x (Kd, TM) -> (4C, TM), f32 accumulate.
    acc = jnp.dot(w_ref[...], p_ref[...], preferred_element_type=jnp.float32)
    acc = acc + b_ref[...]  # lane-broadcast of (4C, 1)

    # Gate slices are sublane slices -> every elementwise/EUP op below is
    # TM(>=128)-lane dense.  Gate order matches PyTorch: i, f, g, o.
    i = jax.nn.sigmoid(acc[0 * Cout:1 * Cout, :])
    f = jax.nn.sigmoid(acc[1 * Cout:2 * Cout, :])
    g = jnp.tanh(acc[2 * Cout:3 * Cout, :])
    o = jax.nn.sigmoid(acc[3 * Cout:4 * Cout, :])

    c0 = c0_ref[...]
    c1 = f * c0 + i * g
    h1 = o * jnp.tanh(c1)

    c1_ref[...] = c1
    h1_ref[...] = h1


def conv2d_lstm_cell_pallas(x_nchw, h0_nchw, c0_nchw,
                            weight_ih, weight_hh, weight_ch,
                            bias_ih, bias_hh, bias_ch):
    """Forward pass of Conv2dLSTMCell. Returns (h_1, (h_1, c_1)) in NCHW."""
    B, Cin, H, W = x_nchw.shape
    four_cout, _, KH, KW = weight_ih.shape
    Cout = four_cout // 4
    C4 = 4 * Cout
    ph, pw = KH // 2, KW // 2
    Ctot = Cin + 2 * Cout
    Kd = KH * KW * Ctot

    f32 = jnp.float32
    bf16 = jnp.bfloat16

    M = B * H * W
    TM = min(512, _round_up(M, 128))     # rows per grid step (multiple of 128)
    Mpad = _round_up(M, TM)
    Kd_pad = _round_up(Kd, 128)          # aligned contraction depth

    # ---- activations: NCHW -> channel-major (C, B, H, W), fuse x/h/c, pad ---
    # Transposing the *un-replicated* fused activation once is 9x cheaper than
    # transposing the im2col slab afterwards.
    x_cm = jnp.transpose(x_nchw, (1, 0, 2, 3)).astype(f32)      # (Cin,B,H,W)
    h_cm = jnp.transpose(h0_nchw, (1, 0, 2, 3)).astype(f32)     # (Cout,B,H,W)
    c_cm = jnp.transpose(c0_nchw, (1, 0, 2, 3)).astype(f32)     # (Cout,B,H,W)
    z_cm = jnp.concatenate([x_cm, h_cm, c_cm], axis=0)          # (Ctot,B,H,W)
    z_p = jnp.pad(z_cm, ((0, 0), (0, 0), (ph, ph), (pw, pw)))   # (Ctot,B,Hp,Wp)

    # im2col directly in (Kd, M) layout: one shifted channel-major view per
    # tap, stacked along axis 0 in (kh, kw, c) order to match the weight.
    taps = [z_p[:, :, kh:kh + H, kw:kw + W].reshape(Ctot, M)
            for kh in range(KH) for kw in range(KW)]
    pat_t = jnp.concatenate(taps, axis=0).astype(bf16)          # (Kd, M)
    pat_t = jnp.pad(pat_t, ((0, Kd_pad - Kd), (0, Mpad - M)))   # (Kd_pad, Mpad)

    # ---- fused weight: OIHW -> (KH,KW,I,4C), concat [ih|hh|ch] over I ------
    w_ih = jnp.transpose(weight_ih, (2, 3, 1, 0)).astype(f32)   # (KH,KW,Cin,4C)
    w_hh = jnp.transpose(weight_hh, (2, 3, 1, 0)).astype(f32)   # (KH,KW,Cout,4C)
    w_ch3 = jnp.transpose(weight_ch, (2, 3, 1, 0)).astype(f32)  # (KH,KW,Cout,3C)
    # Expand the c-path to 4C outputs with a zero g-gate slot (matches the
    # torch.cat((wc[:, :2C], blank, wc[:, 2C:]), 1) in the reference module).
    zeros_w = jnp.zeros((KH, KW, Cout, Cout), f32)
    w_ch = jnp.concatenate(
        [w_ch3[..., :2 * Cout], zeros_w, w_ch3[..., 2 * Cout:]], axis=-1)
    w_cat = jnp.concatenate([w_ih, w_hh, w_ch], axis=2)         # (KH,KW,Ctot,4C)
    w_t = w_cat.reshape(Kd, C4).T.astype(bf16)                  # (4C, Kd)
    w_t = jnp.pad(w_t, ((0, 0), (0, Kd_pad - Kd)))              # (4C, Kd_pad)

    bias_ch4 = jnp.concatenate(
        [bias_ch[:2 * Cout], jnp.zeros((Cout,), f32), bias_ch[2 * Cout:]])
    bias_total = (bias_ih.astype(f32) + bias_hh.astype(f32)
                  + bias_ch4).reshape(C4, 1)

    # c0 in (Cout, Mpad) channel-major f32 layout for the cell update.
    c0_t = jnp.pad(c_cm.reshape(Cout, M), ((0, 0), (0, Mpad - M)))

    kernel = functools.partial(_convlstm_kernel, Cout=Cout)

    cost = pl.CostEstimate(
        flops=2 * C4 * Kd_pad * Mpad + 10 * Cout * Mpad,
        transcendentals=5 * Cout * Mpad,
        bytes_accessed=(pat_t.size * 2 + w_t.size * 2 + bias_total.size * 4
                        + c0_t.size * 4 + 2 * Cout * Mpad * 4))

    h1_t, c1_t = pl.pallas_call(
        kernel,
        out_shape=(jax.ShapeDtypeStruct((Cout, Mpad), f32),
                   jax.ShapeDtypeStruct((Cout, Mpad), f32)),
        grid_spec=pltpu.PrefetchScalarGridSpec(
            num_scalar_prefetch=0,
            grid=(Mpad // TM,),
            in_specs=[
                pl.BlockSpec((Kd_pad, TM), lambda m: (0, m)),    # patches^T
                pl.BlockSpec((Cout, TM), lambda m: (0, m)),      # c0^T
                pl.BlockSpec((C4, Kd_pad), lambda m: (0, 0)),    # fused weight
                pl.BlockSpec((C4, 1), lambda m: (0, 0)),         # fused bias
            ],
            out_specs=[
                pl.BlockSpec((Cout, TM), lambda m: (0, m)),
                pl.BlockSpec((Cout, TM), lambda m: (0, m)),
            ],
        ),
        compiler_params=pltpu.CompilerParams(
            dimension_semantics=("parallel",)),
        cost_estimate=cost,
    )(pat_t, c0_t, w_t, bias_total)

    # (Cout, M) -> (B, Cout, H, W); column ordering is (b, h, w) row-major.
    h1 = h1_t[:, :M].reshape(Cout, B, H, W).transpose(1, 0, 2, 3)
    c1 = c1_t[:, :M].reshape(Cout, B, H, W).transpose(1, 0, 2, 3)
    return h1, (h1, c1)


def _reference_forward(x, h0, c0, weight_ih, weight_hh, weight_ch,
                       bias_ih, bias_hh, bias_ch, *, quantize_inputs=False):
    """Pure-JAX (XLA conv) reference replicating the PyTorch forward.

    With quantize_inputs=True the conv inputs/weights are rounded through bf16
    (matching the kernel's MXU operands) while accumulation and the cell update
    stay in f32 — an apples-to-apples check of the kernel's logic.
    """
    Cout = weight_ih.shape[0] // 4
    dn = ("NCHW", "OIHW", "NCHW")
    prec = jax.lax.Precision.HIGHEST

    if quantize_inputs:
        q = lambda a: a.astype(jnp.bfloat16).astype(jnp.float32)
    else:
        q = lambda a: a
    xq, hq, cq = q(x), q(h0), q(c0)
    w_ih, w_hh, w_ch = q(weight_ih), q(weight_hh), q(weight_ch)

    def conv(inp, w, b, pad):
        out = jax.lax.conv_general_dilated(
            inp, w, window_strides=(1, 1), padding=[(pad, pad), (pad, pad)],
            dimension_numbers=dn, precision=prec)
        return out + b[None, :, None, None]

    k = weight_ih.shape[2]
    wx = conv(xq, w_ih, bias_ih, k // 2)
    wh = conv(hq, w_hh, bias_hh, k // 2)
    wc = conv(cq, w_ch, bias_ch, k // 2)
    blank = jnp.zeros((x.shape[0], Cout, x.shape[2], x.shape[3]), x.dtype)
    wxhc = wx + wh + jnp.concatenate(
        [wc[:, :2 * Cout], blank, wc[:, 2 * Cout:]], axis=1)
    i = jax.nn.sigmoid(wxhc[:, :Cout])
    f = jax.nn.sigmoid(wxhc[:, Cout:2 * Cout])
    g = jnp.tanh(wxhc[:, 2 * Cout:3 * Cout])
    o = jax.nn.sigmoid(wxhc[:, 3 * Cout:])
    c1 = f * c0 + i * g          # original f32 cell state for the update
    h1 = o * jnp.tanh(c1)
    return h1, c1


if __name__ == "__main__":
    B, Cin, Cout, H, W, K = 2, 4, 32, 16, 16, 3

    key = jax.random.PRNGKey(0)
    kx, kh, kc, k1, k2, k3, k4, k5, k6 = jax.random.split(key, 9)

    # Deterministic parameter init, mirroring reset_parameters():
    # stdv = 1 / sqrt(4 * in_channels * prod(kernel_size)).
    n = 4 * Cin * K * K
    stdv = 1.0 / (n ** 0.5)
    uni = lambda k_, shape: jax.random.uniform(k_, shape, jnp.float32, -stdv, stdv)

    weight_ih = uni(k1, (4 * Cout, Cin, K, K))
    weight_hh = uni(k2, (4 * Cout, Cout, K, K))
    weight_ch = uni(k3, (3 * Cout, Cout, K, K))
    bias_ih = uni(k4, (4 * Cout,))
    bias_hh = uni(k5, (4 * Cout,))
    bias_ch = uni(k6, (3 * Cout,))

    x = jax.random.normal(kx, (B, Cin, H, W), jnp.float32)
    h0 = jax.random.normal(kh, (B, Cout, H, W), jnp.float32)
    c0 = jax.random.normal(kc, (B, Cout, H, W), jnp.float32)

    h1, (h1_again, c1) = conv2d_lstm_cell_pallas(
        x, h0, c0, weight_ih, weight_hh, weight_ch, bias_ih, bias_hh, bias_ch)
    jax.block_until_ready((h1, c1))

    # Tight check vs a bf16-operand-consistent reference (kernel-logic check).
    h1_q, c1_q = _reference_forward(
        x, h0, c0, weight_ih, weight_hh, weight_ch,
        bias_ih, bias_hh, bias_ch, quantize_inputs=True)
    # Loose sanity check vs the full-f32 PyTorch-equivalent reference.
    h1_f, c1_f = _reference_forward(
        x, h0, c0, weight_ih, weight_hh, weight_ch,
        bias_ih, bias_hh, bias_ch, quantize_inputs=False)

    assert h1.shape == (B, Cout, H, W) and c1.shape == (B, Cout, H, W)
    assert jnp.allclose(h1, h1_q, rtol=2e-3, atol=2e-3)
    assert jnp.allclose(c1, c1_q, rtol=2e-3, atol=2e-3)
    assert jnp.allclose(h1, h1_f, rtol=7.5e-2, atol=7.5e-2)
    assert jnp.allclose(c1, c1_f, rtol=7.5e-2, atol=7.5e-2)

    print("KERNEL_OK")
</pallas_src>

<mosaic_0001>
module attributes {stable_mosaic.version = 11 : i64} {
  func.func @_convlstm_kernel(%arg0: i32, %arg1: memref<640x512xbf16, #tpu.memory_space<vmem>>, %arg2: memref<32x512xf32, #tpu.memory_space<vmem>>, %arg3: memref<128x640xbf16, #tpu.memory_space<vmem>>, %arg4: memref<128x1xf32, #tpu.memory_space<vmem>>, %arg5: memref<32x512xf32, #tpu.memory_space<vmem>>, %arg6: memref<32x512xf32, #tpu.memory_space<vmem>>) attributes {dimension_semantics = [#tpu.dimension_semantics<parallel>], iteration_bounds = array<i64: 1>, scalar_prefetch = 0 : i64, scratch_operands = 0 : i64, tpu.core_type = #tpu.core_type<tc>, window_params = [{transform_indices = @transform_0, window_bounds = array<i64: 640, 512>}, {transform_indices = @transform_1, window_bounds = array<i64: 32, 512>}, {pipeline_mode = #tpu.pipeline_mode<synchronous>, transform_indices = @transform_2, window_bounds = array<i64: 128, 640>}, {pipeline_mode = #tpu.pipeline_mode<synchronous>, transform_indices = @transform_3, window_bounds = array<i64: 128, 1>}, {transform_indices = @transform_4, window_bounds = array<i64: 32, 512>}, {transform_indices = @transform_5, window_bounds = array<i64: 32, 512>}]} {
    %c0 = arith.constant 0 : index
    %c0_0 = arith.constant 0 : index
    %0 = vector.load %arg3[%c0, %c0_0] : memref<128x640xbf16, #tpu.memory_space<vmem>>, vector<128x640xbf16>
    %c0_1 = arith.constant 0 : index
    %c0_2 = arith.constant 0 : index
    %1 = vector.load %arg1[%c0_1, %c0_2] : memref<640x512xbf16, #tpu.memory_space<vmem>>, vector<640x512xbf16>
    %cst = arith.constant dense<0.000000e+00> : vector<128x512xf32>
    %2 = tpu.matmul %0, %1, %cst {dimension_numbers = #tpu.dot_dimension_numbers<[1], [0], [0], [1], [0, 0, 1, 1], [], []>} : vector<128x640xbf16>, vector<640x512xbf16>, vector<128x512xf32> -> vector<128x512xf32>
    %c0_3 = arith.constant 0 : index
    %c0_4 = arith.constant 0 : index
    %3 = vector.load %arg4[%c0_3, %c0_4] : memref<128x1xf32, #tpu.memory_space<vmem>>, vector<128x1xf32>
    %4 = vector.broadcast %3 : vector<128x1xf32> to vector<128x512xf32>
    %5 = arith.addf %2, %4 : vector<128x512xf32>
    %6 = vector.extract_strided_slice %5 {offsets = [0, 0], sizes = [32, 512], strides = [1, 1]} : vector<128x512xf32> to vector<32x512xf32>
    %7 = arith.negf %6 : vector<32x512xf32>
    %8 = math.exp %7 : vector<32x512xf32>
    %cst_5 = arith.constant 1.000000e+00 : f32
    %9 = vector.broadcast %cst_5 : f32 to vector<32x512xf32>
    %10 = arith.addf %9, %8 : vector<32x512xf32>
    %11 = arith.divf %9, %10 : vector<32x512xf32>
    %12 = vector.extract_strided_slice %5 {offsets = [32, 0], sizes = [32, 512], strides = [1, 1]} : vector<128x512xf32> to vector<32x512xf32>
    %13 = arith.negf %12 : vector<32x512xf32>
    %14 = math.exp %13 : vector<32x512xf32>
    %cst_6 = arith.constant 1.000000e+00 : f32
    %15 = vector.broadcast %cst_6 : f32 to vector<32x512xf32>
    %16 = arith.addf %15, %14 : vector<32x512xf32>
    %17 = arith.divf %15, %16 : vector<32x512xf32>
    %18 = vector.extract_strided_slice %5 {offsets = [64, 0], sizes = [32, 512], strides = [1, 1]} : vector<128x512xf32> to vector<32x512xf32>
    %19 = math.tanh %18 : vector<32x512xf32>
    %20 = vector.extract_strided_slice %5 {offsets = [96, 0], sizes = [32, 512], strides = [1, 1]} : vector<128x512xf32> to vector<32x512xf32>
    %21 = arith.negf %20 : vector<32x512xf32>
    %22 = math.exp %21 : vector<32x512xf32>
    %cst_7 = arith.constant 1.000000e+00 : f32
    %23 = vector.broadcast %cst_7 : f32 to vector<32x512xf32>
    %24 = arith.addf %23, %22 : vector<32x512xf32>
    %25 = arith.divf %23, %24 : vector<32x512xf32>
    %c0_8 = arith.constant 0 : index
    %c0_9 = arith.constant 0 : index
    %26 = vector.load %arg2[%c0_8, %c0_9] : memref<32x512xf32, #tpu.memory_space<vmem>>, vector<32x512xf32>
    %27 = arith.mulf %17, %26 : vector<32x512xf32>
    %28 = arith.mulf %11, %19 : vector<32x512xf32>
    %29 = arith.addf %27, %28 : vector<32x512xf32>
    %30 = math.tanh %29 : vector<32x512xf32>
    %31 = arith.mulf %25, %30 : vector<32x512xf32>
    %c0_10 = arith.constant 0 : index
    %c0_11 = arith.constant 0 : index
    %32 = vector.load %arg6[%c0_10, %c0_11] : memref<32x512xf32, #tpu.memory_space<vmem>>, vector<32x512xf32>
    tpu.vector_store %arg6[%c0_10, %c0_11], %29 {strides = array<i32>} : memref<32x512xf32, #tpu.memory_space<vmem>>, vector<32x512xf32>,
    %c0_12 = arith.constant 0 : index
    %c0_13 = arith.constant 0 : index
    %33 = vector.load %arg5[%c0_12, %c0_13] : memref<32x512xf32, #tpu.memory_space<vmem>>, vector<32x512xf32>
    tpu.vector_store %arg5[%c0_12, %c0_13], %31 {strides = array<i32>} : memref<32x512xf32, #tpu.memory_space<vmem>>, vector<32x512xf32>,
    return
  }
  func.func @transform_0(%arg0: i32) -> (i32, i32) {
    %c0_i32 = arith.constant 0 : i32
    %c0_i32_0 = arith.constant 0 : i32
    return %c0_i32, %arg0 : i32, i32
  }
  func.func @transform_1(%arg0: i32) -> (i32, i32) {
    %c0_i32 = arith.constant 0 : i32
    %c0_i32_0 = arith.constant 0 : i32
    return %c0_i32, %arg0 : i32, i32
  }
  func.func @transform_2(%arg0: i32) -> (i32, i32) {
    %c0_i32 = arith.constant 0 : i32
    %c0_i32_0 = arith.constant 0 : i32
    %c0_i32_1 = arith.constant 0 : i32
    return %c0_i32, %c0_i32_0 : i32, i32
  }
  func.func @transform_3(%arg0: i32) -> (i32, i32) {
    %c0_i32 = arith.constant 0 : i32
    %c0_i32_0 = arith.constant 0 : i32
    %c0_i32_1 = arith.constant 0 : i32
    return %c0_i32, %c0_i32_0 : i32, i32
  }
  func.func @transform_4(%arg0: i32) -> (i32, i32) {
    %c0_i32 = arith.constant 0 : i32
    %c0_i32_0 = arith.constant 0 : i32
    return %c0_i32, %arg0 : i32, i32
  }
  func.func @transform_5(%arg0: i32) -> (i32, i32) {
    %c0_i32 = arith.constant 0 : i32
    %c0_i32_0 = arith.constant 0 : i32
    return %c0_i32, %arg0 : i32, i32
  }
}

</mosaic_0001>

<bundles_post_ra>
// kernel: tpu_custom_call.1
= control target key start
LH: loop header
LB: loop body
LE: loop exit
PB: predicated region body
PF: predicated region fallthrough
CT: control target
= control target key end

     0   :  { %11 = vsyncpa [#allocation3], 0  ;;  %s6440_s0 = inlined_call_operand.hbm [shape: bf16[640,512], index: 0, kind: input, shape index: {}]   ;;  %s6441_s1 = inlined_call_operand.vmem [shape: f32[32,512], index: 1, kind: input, shape index: {}]   ;;  %s6442_s2 = inlined_call_operand.hbm [shape: bf16[128,640], index: 2, kind: input, shape index: {}]   ;;  %s6443_s3 = inlined_call_operand.vmem [shape: f32[128,1], index: 3, kind: input, shape index: {}]   ;;  %s6444_s4 = inlined_call_operand.hbm [shape: f32[32,512], index: 4, kind: output, shape index: {0}]   ;;  %s6445_s5 = inlined_call_operand.hbm [shape: f32[32,512], index: 5, kind: output, shape index: {1}]  }
   0x1   :  { %12 = vsyncpa [#allocation6], 0 }
   0x2   :  { %13 = vsyncpa [#allocation4], 0 }
   0x3   :  { %14 = vsyncpa [#allocation9], 0  ;;  %s19_s20 = sshll.u32 %s6440_s0, 4  ;;  %s4861_s21 = smov [#allocation2]   ;;  %s20_s20 = int_to_ptr.hbm [resolvable:$true] %s19_s20 }
   0x4   :  { %s21_s22 = sshll.u32 %s4861_s21, 4  ;;  %s34_s25 = sshll.u32 %s6442_s2, 4  ;;  %s22_s22 = int_to_ptr.vmem [resolvable:$true] %s21_s22  ;;  %s35_s25 = int_to_ptr.hbm [resolvable:$true] %s34_s25 }
   0x5   :  { %s4862_s26 = smov 256   ;;  %s4863_s27 = smov 16  }
   0x6   :  { %27 = dma.hbm_to_vmem [thread:$0]  %s20_s20, 20480, %s22_s22, [#allocation3], %s4862_s26, %s4862_s26, %s4863_s27  }
   0x7   :  { %s4864_s28 = smov [#allocation5]   ;;  %s4865_s30 = smov 320  }
   0x8   :  { %s36_s29 = sshll.u32 %s4864_s28, 4  ;;  %s4866_s6 = smov 20   ;;  %s37_s29 = int_to_ptr.vmem [resolvable:$true] %s36_s29 }
   0x9   :  { %42 = dma.hbm_to_vmem [thread:$0]  %s35_s25, 5120, %s37_s29, [#allocation6], %s4865_s30, %s4865_s30, %s4866_s6  }
   0xa   :  { %4853 = dma.done.wait [#allocation3], 20480  }
   0xb   :  { %4854 = vsyncadd [#allocation3], 4294946816 }
   0xc   :  { %4855 = dma.done.wait [#allocation6], 5120  }
   0xd   :  { %4856 = vsyncadd [#allocation6], 4294962176  ;;  %v3713_v0 = vld [vmem:[#allocation2 + $0xe0] sm:$0xf]  ;;  %v4357_v1 = vld [vmem:[#allocation2 + $0xec] sm:$0xf0] }
   0xe   :  { %v3841_v2 = vld [vmem:[#allocation2 + $0x1e0] sm:$0xf]  ;;  %v3714_v3 = vor.u32 %v4357_v1, %v3713_v0  ;;  %v4389_v4 = vld [vmem:[#allocation2 + $0x1ec] sm:$0xf0]  ;;  %s4868_s13 = smov [#allocation8]   ;;  %s3420_s17 = sshll.u32 %s6445_s5, 4  ;;  %s3421_s17 = int_to_ptr.hbm [resolvable:$true] %s3420_s17 }
   0xf   :  { %v3969_v5 = vld [vmem:[#allocation2 + $0x2e0] sm:$0xf]  ;;  %v4421_v6 = vld [vmem:[#allocation2 + $0x2ec] sm:$0xf0]  ;;  %v3842_v7 = vor.u32 %v4389_v4, %v3841_v2  ;;  %s3418_s14 = sshll.u32 %s4868_s13, 4  ;;  %s4870_s5 = smov 32   ;;  %s3419_s14 = int_to_ptr.vmem [resolvable:$true] %s3418_s14 }
  0x10   :  { %v3970_v8 = vor.u32 %v4421_v6, %v3969_v5  ;;  %v4097_v9 = vld [vmem:[#allocation2 + $0x3e0] sm:$0xf]  ;;  %v4453_v10 = vld [vmem:[#allocation2 + $0x3ec] sm:$0xf0]  ;;  %1365 = vmatpush.bf16.msra.mxu0 %v3714_v3  ;;  %s4871_s18 = smov [#allocation7]   ;;  %s3407_s22 = sshll.u32 %s6444_s4, 4  ;;  %s3408_s22 = int_to_ptr.hbm [resolvable:$true] %s3407_s22 }
  0x11   :  { %v3697_v11 = vld [vmem:[#allocation2 + $0xc0] sm:$0xf]  ;;  %v4098_v12 = vor.u32 %v4453_v10, %v4097_v9  ;;  %v4353_v13 = vld [vmem:[#allocation2 + $0xcc] sm:$0xf0]  ;;  %1414 = vmatpush.bf16.msra.mxu1 %v3842_v7  ;;  %s3405_s19 = sshll.u32 %s4871_s18, 4  ;;  %s3406_s19 = int_to_ptr.vmem [resolvable:$true] %s3405_s19 }
  0x12   :  { %v3825_v14 = vld [vmem:[#allocation2 + $0x1c0] sm:$0xf]  ;;  %v4385_v15 = vld [vmem:[#allocation2 + $0x1cc] sm:$0xf0]  ;;  %1463 = vmatpush.bf16.msra.mxu2 %v3970_v8  ;;  %v3698_v16 = vor.u32 %v4353_v13, %v3697_v11 }
  0x13   :  { %v3826_v17 = vor.u32 %v4385_v15, %v3825_v14  ;;  %v3953_v18 = vld [vmem:[#allocation2 + $0x2c0] sm:$0xf]  ;;  %v4417_v19 = vld [vmem:[#allocation2 + $0x2cc] sm:$0xf0]  ;;  %1512 = vmatpush.bf16.msra.mxu3 %v4098_v12 }
  0x14   :  { %v4081_v20 = vld [vmem:[#allocation2 + $0x3c0] sm:$0xf]  ;;  %v3954_v21 = vor.u32 %v4417_v19, %v3953_v18  ;;  %v4449_v22 = vld [vmem:[#allocation2 + $0x3cc] sm:$0xf0]  ;;  %1366 = vmatpush.bf16.msra.mxu0 %v3698_v16 }
  0x15   :  { %v3681_v23 = vld [vmem:[#allocation2 + $0xa0] sm:$0xf]  ;;  %v4349_v24 = vld [vmem:[#allocation2 + $0xac] sm:$0xf0]  ;;  %v4082_v25 = vor.u32 %v4449_v22, %v4081_v20  ;;  %1415 = vmatpush.bf16.msra.mxu1 %v3826_v17 }
  0x16   :  { %v3809_v26 = vld [vmem:[#allocation2 + $0x1a0] sm:$0xf]  ;;  %v4381_v27 = vld [vmem:[#allocation2 + $0x1ac] sm:$0xf0]  ;;  %v3682_v29 = vor.u32 %v4349_v24, %v3681_v23  ;;  %1464 = vmatpush.bf16.msra.mxu2 %v3954_v21 }
  0x17   :  { %v3937_v28 = vld [vmem:[#allocation2 + $0x2a0] sm:$0xf]  ;;  %v4413_v30 = vld [vmem:[#allocation2 + $0x2ac] sm:$0xf0]  ;;  %v3810_v33 = vor.u32 %v4381_v27, %v3809_v26  ;;  %1513 = vmatpush.bf16.msra.mxu3 %v4082_v25 }
  0x18   :  { %v4065_v31 = vld [vmem:[#allocation2 + $0x3a0] sm:$0xf]  ;;  %v4445_v32 = vld [vmem:[#allocation2 + $0x3ac] sm:$0xf0]  ;;  %v3938_v34 = vor.u32 %v4413_v30, %v3937_v28  ;;  %1367 = vmatpush.bf16.msra.mxu0 %v3682_v29  ;;  %v4289_v29 = vld [vmem:[#allocation5 + $0x10] sm:$0xf0] }
  0x19   :  { %v3665_v35 = vld [vmem:[#allocation2 + $0x80] sm:$0xf]  ;;  %v4345_v36 = vld [vmem:[#allocation2 + $0x8c] sm:$0xf0]  ;;  %v4066_v38 = vor.u32 %v4445_v32, %v4065_v31  ;;  %1416 = vmatpush.bf16.msra.mxu1 %v3810_v33  ;;  %v4287_v30 = vld [vmem:[#allocation5 + $0x4] sm:$0xf] }
  0x1a   :  { %v3793_v37 = vld [vmem:[#allocation2 + $0x180] sm:$0xf]  ;;  %v4377_v39 = vld [vmem:[#allocation2 + $0x18c] sm:$0xf0]  ;;  %v3666_v44 = vor.u32 %v4345_v36, %v3665_v35  ;;  %1465 = vmatpush.bf16.msra.mxu2 %v3938_v34  ;;  %v3443_v31 = vld [vmem:[#allocation5 + $0x14] sm:$0xf0] }
  0x1b   :  { %v3921_v40 = vld [vmem:[#allocation2 + $0x280] sm:$0xf]  ;;  %v4409_v41 = vld [vmem:[#allocation2 + $0x28c] sm:$0xf0]  ;;  %v3794_v45 = vor.u32 %v4377_v39, %v3793_v37  ;;  %1514 = vmatpush.bf16.msra.mxu3 %v4066_v38  ;;  %v4387_v32 = vld [vmem:[#allocation2 + $0x1e4] sm:$0xf] }
  0x1c   :  { %v4049_v42 = vld [vmem:[#allocation2 + $0x380] sm:$0xf]  ;;  %v4441_v43 = vld [vmem:[#allocation2 + $0x38c] sm:$0xf0]  ;;  %v3922_v46 = vor.u32 %v4409_v41, %v3921_v40  ;;  %1368 = vmatpush.bf16.msra.mxu0 %v3666_v44  ;;  %v3843_v33 = vld [vmem:[#allocation2 + $0x1f0] sm:$0xf0] }
  0x1d   :  { %v3649_v47 = vld [vmem:[#allocation2 + $0x60] sm:$0xf]  ;;  %v4341_v48 = vld [vmem:[#allocation2 + $0x6c] sm:$0xf0]  ;;  %v4050_v50 = vor.u32 %v4441_v43, %v4049_v42  ;;  %1417 = vmatpush.bf16.msra.mxu1 %v3794_v45  ;;  %v3449_v36 = vld [vmem:[#allocation5 + $0x8] sm:$0xf] }
  0x1e   :  { %v3777_v49 = vld [vmem:[#allocation2 + $0x160] sm:$0xf]  ;;  %v4373_v51 = vld [vmem:[#allocation2 + $0x16c] sm:$0xf0]  ;;  %v3650_v56 = vor.u32 %v4341_v48, %v3649_v47  ;;  %1466 = vmatpush.bf16.msra.mxu2 %v3922_v46  ;;  %v4419_v37 = vld [vmem:[#allocation2 + $0x2e4] sm:$0xf]  ;;  %v3846_v46 = vor.u32 %v4387_v32, %v3843_v33 }
  0x1f   :  { %v3905_v52 = vld [vmem:[#allocation2 + $0x260] sm:$0xf]  ;;  %v4405_v53 = vld [vmem:[#allocation2 + $0x26c] sm:$0xf0]  ;;  %v3778_v57 = vor.u32 %v4373_v51, %v3777_v49  ;;  %1515 = vmatpush.bf16.msra.mxu3 %v4050_v50  ;;  %v3971_v38 = vld [vmem:[#allocation2 + $0x2f0] sm:$0xf0] }
  0x20   :  { %v4033_v54 = vld [vmem:[#allocation2 + $0x360] sm:$0xf]  ;;  %v4437_v55 = vld [vmem:[#allocation2 + $0x36c] sm:$0xf0]  ;;  %v3906_v58 = vor.u32 %v4405_v53, %v3905_v52  ;;  %1369 = vmatpush.bf16.msra.mxu0 %v3650_v56  ;;  %v4867_v39 = vmov 0   ;;  %v3974_v51 = vor.u32 %v4419_v37, %v3971_v38 }
  0x21   :  { %v3633_v59 = vld [vmem:[#allocation2 + $0x40] sm:$0xf]  ;;  %v4337_v60 = vld [vmem:[#allocation2 + $0x4c] sm:$0xf0]  ;;  %v4034_v62 = vor.u32 %v4437_v55, %v4033_v54  ;;  %1418 = vmatpush.bf16.msra.mxu1 %v3778_v57  ;;  %4498 = vset.pattern.permute.xlu0 %v4867_v39  ;;  %v4290_v42 = vld [vmem:[#allocation5 + $0x18] sm:$0xf0]  ;;  %v4913_v55 = vor.u32 %v4287_v30, %v3443_v31 }
  0x22   :  { %v3761_v61 = vld [vmem:[#allocation2 + $0x140] sm:$0xf]  ;;  %v4369_v63 = vld [vmem:[#allocation2 + $0x14c] sm:$0xf0]  ;;  %v3634_v4 = vor.u32 %v4337_v60, %v3633_v59  ;;  %1467 = vmatpush.bf16.msra.mxu2 %v3906_v58  ;;  %v4288_v43 = vld [vmem:[#allocation5 + $0xc] sm:$0xf]  ;;  %4499 = vset.pattern.permute.xlu1 %v4867_v39  ;;  %v4915_v56 = vor.u32 %v4290_v42, %v3449_v36 }
  0x23   :  { %v3889_v0 = vld [vmem:[#allocation2 + $0x240] sm:$0xf]  ;;  %v4401_v1 = vld [vmem:[#allocation2 + $0x24c] sm:$0xf0]  ;;  %v3762_v5 = vor.u32 %v4369_v63, %v3761_v61  ;;  %1516 = vmatpush.bf16.msra.mxu3 %v4034_v62  ;;  %v4355_v49 = vld [vmem:[#allocation2 + $0xe4] sm:$0xf]  ;;  %4500 = vset.pattern.permute.xlu2 %v4867_v39 }
  0x24   :  { %v4017_v2 = vld [vmem:[#allocation2 + $0x340] sm:$0xf]  ;;  %v4433_v3 = vld [vmem:[#allocation2 + $0x34c] sm:$0xf0]  ;;  %v3890_v6 = vor.u32 %v4401_v1, %v3889_v0  ;;  %1370 = vmatpush.bf16.msra.mxu0 %v3634_v4  ;;  %v3715_v52 = vld [vmem:[#allocation2 + $0xf0] sm:$0xf0] }
  0x25   :  { %v3617_v7 = vld [vmem:[#allocation2 + $0x20] sm:$0xf]  ;;  %v4333_v8 = vld [vmem:[#allocation2 + $0x2c] sm:$0xf0]  ;;  %v4018_v10 = vor.u32 %v4433_v3, %v4017_v2  ;;  %1419 = vmatpush.bf16.msra.mxu1 %v3762_v5  ;;  %v4383_v53 = vld [vmem:[#allocation2 + $0x1c4] sm:$0xf]  ;;  %v3718_v61 = vor.u32 %v4355_v49, %v3715_v52 }
  0x26   :  { %v3745_v9 = vld [vmem:[#allocation2 + $0x120] sm:$0xf]  ;;  %v4365_v11 = vld [vmem:[#allocation2 + $0x12c] sm:$0xf0]  ;;  %v3618_v17 = vor.u32 %v4333_v8, %v3617_v7  ;;  %1468 = vmatpush.bf16.msra.mxu2 %v3890_v6  ;;  %v3827_v54 = vld [vmem:[#allocation2 + $0x1d0] sm:$0xf0] }
  0x27   :  { %v3873_v12 = vld [vmem:[#allocation2 + $0x220] sm:$0xf]  ;;  %v4397_v13 = vld [vmem:[#allocation2 + $0x22c] sm:$0xf0]  ;;  %v3746_v21 = vor.u32 %v4365_v11, %v3745_v9  ;;  %1517 = vmatpush.bf16.msra.mxu3 %v4018_v10  ;;  %6526 = vst [vmem:[#allocation14_spill] sm:$0xff] %v4913_v55  ;;  %v3830_v62 = vor.u32 %v4383_v53, %v3827_v54  ;;  %v262_v4 = vld [vmem:[%s6443_s3 + $0x8] sm:$0xff] }
  0x28   :  { %v4001_v14 = vld [vmem:[#allocation2 + $0x320] sm:$0xf]  ;;  %v4429_v15 = vld [vmem:[#allocation2 + $0x32c] sm:$0xf0]  ;;  %v3874_v22 = vor.u32 %v4397_v13, %v3873_v12  ;;  %1371 = vmatpush.bf16.msra.mxu0 %v3618_v17  ;;  %6527 = vst [vmem:[#allocation15_spill] sm:$0xff] %v4915_v56 }
  0x29   :  { %v3601_v16 = vld [vmem:[#allocation2] sm:$0xf]  ;;  %v4329_v18 = vld [vmem:[#allocation2 + $0xc] sm:$0xf0]  ;;  %v4002_v26 = vor.u32 %v4429_v15, %v4001_v14  ;;  %1420 = vmatpush.bf16.msra.mxu1 %v3746_v21  ;;  %v4415_v57 = vld [vmem:[#allocation2 + $0x2c4] sm:$0xf] }
  0x2a   :  { %v3729_v19 = vld [vmem:[#allocation2 + $0x100] sm:$0xf]  ;;  %v4361_v20 = vld [vmem:[#allocation2 + $0x10c] sm:$0xf0]  ;;  %v3602_v35 = vor.u32 %v4329_v18, %v3601_v16  ;;  %1469 = vmatpush.bf16.msra.mxu2 %v3874_v22  ;;  %v3955_v58 = vld [vmem:[#allocation2 + $0x2d0] sm:$0xf0] }
  0x2b   :  { %v3857_v23 = vld [vmem:[#allocation2 + $0x200] sm:$0xf]  ;;  %v4393_v24 = vld [vmem:[#allocation2 + $0x20c] sm:$0xf0]  ;;  %v3730_v40 = vor.u32 %v4361_v20, %v3729_v19  ;;  %1518 = vmatpush.bf16.msra.mxu3 %v4002_v26  ;;  %v3958_v1 = vor.u32 %v4415_v57, %v3955_v58  ;;  %v4351_v2 = vld [vmem:[#allocation2 + $0xc4] sm:$0xf] }
  0x2c   :  { %v3985_v25 = vld [vmem:[#allocation2 + $0x300] sm:$0xf]  ;;  %v4425_v27 = vld [vmem:[#allocation2 + $0x30c] sm:$0xf0]  ;;  %v3858_v41 = vor.u32 %v4393_v24, %v3857_v23  ;;  %1372 = vmatpush.bf16.msra.mxu0 %v3602_v35  ;;  %v3699_v3 = vld [vmem:[#allocation2 + $0xd0] sm:$0xf0] }
  0x2d   :  { %v3441_v28 = vld [vmem:[#allocation5] sm:$0xf]  ;;  %v3986_v45 = vor.u32 %v4425_v27, %v3985_v25  ;;  %v4485_v48 = vld [vmem:[#allocation2 + $0x4ec] sm:$0xf0]  ;;  %1421 = vmatpush.bf16.msra.mxu1 %v3730_v40  ;;  %v4379_v7 = vld [vmem:[#allocation2 + $0x1a4] sm:$0xf]  ;;  %v3702_v10 = vor.u32 %v4351_v2, %v3699_v3 }
  0x2e   :  { %v261_v34 = vld [vmem:[%s6443_s3] sm:$0xff]  ;;  %v4911_v50 = vor.u32 %v4289_v29, %v3441_v28  ;;  %1470 = vmatpush.bf16.msra.mxu2 %v3858_v41  ;;  %v4481_v0 = vld [vmem:[#allocation2 + $0x4cc] sm:$0xf0]  ;;  %v3811_v8 = vld [vmem:[#allocation2 + $0x1b0] sm:$0xf0] }
  0x2f   :  { %v3451_v44 = vld [vmem:[#allocation5 + $0x1c] sm:$0xf0]  ;;  %279 = vperm.xlu0 %4498, %v261_v34   ;;  %1519 = vmatpush.bf16.msra.mxu3 %v3986_v45  ;;  %v263_v5 = vld [vmem:[%s6443_s3 + $0x10] sm:$0xff]  ;;  %v3814_v11 = vor.u32 %v4379_v7, %v3811_v8  ;;  %v4411_v13 = vld [vmem:[#allocation2 + $0x2a4] sm:$0xf] }
  0x30   :  { %v4225_v47 = vld [vmem:[#allocation2 + $0x4e0] sm:$0xf]  ;;  %v4917_v59 = vor.u32 %v4288_v43, %v3451_v44  ;;  %1373 = vmatmul.bf16.vlgmr.msra.gmra.mxu0 %v4911_v50  ;;  %1422 = vmatmul.bf16.vlgmr.msra.gmra.mxu1 %v4913_v55  ;;  %v4477_v12 = vld [vmem:[#allocation2 + $0x4ac] sm:$0xf0]  ;;  %v3939_v14 = vld [vmem:[#allocation2 + $0x2b0] sm:$0xf0] }
  0x31   :  { %v4226_v60 = vor.u32 %v4485_v48, %v4225_v47  ;;  %v4209_v63 = vld [vmem:[#allocation2 + $0x4c0] sm:$0xf]  ;;  %1471 = vmatmul.bf16.vlgmr.msra.gmra.mxu2 %v4915_v56  ;;  %1610 = vmatpush.bf16.msrb.mxu1 %v3718_v61  ;;  %v3942_v15 = vor.u32 %v4411_v13, %v3939_v14  ;;  %v4347_v16 = vld [vmem:[#allocation2 + $0xa4] sm:$0xf]  ;;  %v3683_v17 = vld [vmem:[#allocation2 + $0xb0] sm:$0xf0] }
  0x32   :  { %1659 = vmatpush.bf16.msrb.mxu2 %v3846_v46  ;;  %1520 = vmatmul.bf16.vlgmr.msra.gmra.mxu3 %v4917_v59  ;;  %v4210_v6 = vor.u32 %v4481_v0, %v4209_v63  ;;  %v4193_v9 = vld [vmem:[#allocation2 + $0x4a0] sm:$0xf]  ;;  %v3686_v19 = vor.u32 %v4347_v16, %v3683_v17  ;;  %v3461_v20 = vld [vmem:[#allocation5 + $0x28] sm:$0xf]  ;;  %v4294_v21 = vld [vmem:[#allocation5 + $0x38] sm:$0xf0] }
  0x33   :  { %1708 = vmatpush.bf16.msrb.mxu3 %v3974_v51  ;;  %1561 = vmatpush.bf16.msrb.mxu0 %v4226_v60  ;;  %v4194_v18 = vor.u32 %v4477_v12, %v4193_v9  ;;  %v4292_v22 = vld [vmem:[#allocation5 + $0x2c] sm:$0xf]  ;;  %v3463_v23 = vld [vmem:[#allocation5 + $0x3c] sm:$0xf0]  ;;  %v3469_v24 = vld [vmem:[#allocation5 + $0x30] sm:$0xf]  ;;  %v4932_v29 = vor.u32 %v4294_v21, %v3461_v20 }
  0x34   :  { %289 = vperm.xlu1 %4499, %v263_v5   ;;  %v4295_v25 = vld [vmem:[#allocation5 + $0x40] sm:$0xf0]  ;;  %v264_v26 = vld [vmem:[%s6443_s3 + $0x18] sm:$0xff]  ;;  %v4293_v27 = vld [vmem:[#allocation5 + $0x34] sm:$0xf]  ;;  %v4934_v30 = vor.u32 %v4292_v22, %v3463_v23 }
  0x35   :  { %1611 = vmatpush.bf16.msrb.mxu1 %v3702_v10  ;;  %v3471_v28 = vld [vmem:[#allocation5 + $0x44] sm:$0xf0]  ;;  %v4936_v31 = vor.u32 %v4295_v25, %v3469_v24  ;;  %v4375_v33 = vld [vmem:[#allocation2 + $0x184] sm:$0xf]  ;;  %v3795_v34 = vld [vmem:[#allocation2 + $0x190] sm:$0xf0] }
  0x36   :  { %1660 = vmatpush.bf16.msrb.mxu2 %v3830_v62  ;;  %6528 = vst [vmem:[#allocation16_spill] sm:$0xff] %v4934_v30  ;;  %v4938_v32 = vor.u32 %v4293_v27, %v3471_v28  ;;  %v4177_v35 = vld [vmem:[#allocation2 + $0x480] sm:$0xf]  ;;  %v3798_v36 = vor.u32 %v4375_v33, %v3795_v34  ;;  %v4473_v37 = vld [vmem:[#allocation2 + $0x48c] sm:$0xf0]  ;;  %v268_v8 = vld [vmem:[%s6443_s3 + $0x38] sm:$0xff] }
  0x37   :  { %1709 = vmatpush.bf16.msrb.mxu3 %v3958_v1  ;;  %284 = vperm.xlu0 %4498, %v262_v4   ;;  %6529 = vst [vmem:[#allocation17_spill] sm:$0xff] %v4936_v31  ;;  %v4407_v38 = vld [vmem:[#allocation2 + $0x284] sm:$0xf]  ;;  %v3923_v39 = vld [vmem:[#allocation2 + $0x290] sm:$0xf0]  ;;  %v4178_v40 = vor.u32 %v4473_v37, %v4177_v35 }
  0x38   :  { %1562 = vmatpush.bf16.msrb.mxu0 %v4210_v6  ;;  %v3926_v41 = vor.u32 %v4407_v38, %v3923_v39  ;;  %v4343_v42 = vld [vmem:[#allocation2 + $0x84] sm:$0xf]  ;;  %v3667_v43 = vld [vmem:[#allocation2 + $0x90] sm:$0xf0]  ;;  %v3481_v46 = vld [vmem:[#allocation5 + $0x50] sm:$0xf] }
  0x39   :  { %1612 = vmatpush.bf16.msrb.mxu1 %v3686_v19  ;;  %v267_v44 = vld [vmem:[%s6443_s3 + $0x30] sm:$0xff]  ;;  %v3670_v45 = vor.u32 %v4343_v42, %v3667_v43  ;;  %v4299_v47 = vld [vmem:[#allocation5 + $0x60] sm:$0xf0]  ;;  %v3483_v49 = vld [vmem:[#allocation5 + $0x64] sm:$0xf0] }
  0x3a   :  { %1661 = vmatpush.bf16.msrb.mxu2 %v3814_v11  ;;  %v4297_v48 = vld [vmem:[#allocation5 + $0x54] sm:$0xf]  ;;  %v3489_v51 = vld [vmem:[#allocation5 + $0x58] sm:$0xf]  ;;  %v4300_v52 = vld [vmem:[#allocation5 + $0x68] sm:$0xf0]  ;;  %v4947_v57 = vor.u32 %v4299_v47, %v3481_v46 }
  0x3b   :  { %1710 = vmatpush.bf16.msrb.mxu3 %v3942_v15  ;;  %v4298_v53 = vld [vmem:[#allocation5 + $0x5c] sm:$0xf]  ;;  %v3491_v54 = vld [vmem:[#allocation5 + $0x6c] sm:$0xf0]  ;;  %v4949_v58 = vor.u32 %v4297_v48, %v3483_v49  ;;  %v4951_v60 = vor.u32 %v4300_v52, %v3489_v51  ;;  %v4371_v62 = vld [vmem:[#allocation2 + $0x164] sm:$0xf] }
  0x3c   :  { %1563 = vmatpush.bf16.msrb.mxu0 %v4194_v18  ;;  %294 = vperm.xlu1 %4499, %v264_v26   ;;  %6530 = vst [vmem:[#allocation18_spill] sm:$0xff] %v4947_v57  ;;  %v4953_v61 = vor.u32 %v4298_v53, %v3491_v54  ;;  %v3779_v63 = vld [vmem:[#allocation2 + $0x170] sm:$0xf0]  ;;  %v4161_v0 = vld [vmem:[#allocation2 + $0x460] sm:$0xf]  ;;  %v274_v11 = vld [vmem:[%s6443_s3 + $0x68] sm:$0xff] }
  0x3d   :  { %1613 = vmatpush.bf16.msrb.mxu1 %v3670_v45  ;;  %6531 = vst [vmem:[#allocation19_spill] sm:$0xff] %v4949_v58  ;;  %v3782_v1 = vor.u32 %v4371_v62, %v3779_v63  ;;  %v4469_v2 = vld [vmem:[#allocation2 + $0x46c] sm:$0xf0]  ;;  %v4403_v3 = vld [vmem:[#allocation2 + $0x264] sm:$0xf]  ;;  %v266_v19 = vld [vmem:[%s6443_s3 + $0x28] sm:$0xff] }
  0x3e   :  { %1662 = vmatpush.bf16.msrb.mxu2 %v3798_v36  ;;  %6532 = vst [vmem:[#allocation20_spill] sm:$0xff] %v4951_v60  ;;  %v3907_v4 = vld [vmem:[#allocation2 + $0x270] sm:$0xf0]  ;;  %v4162_v5 = vor.u32 %v4469_v2, %v4161_v0  ;;  %v265_v7 = vld [vmem:[%s6443_s3 + $0x20] sm:$0xff]  ;;  %v3501_v13 = vld [vmem:[#allocation5 + $0x78] sm:$0xf] }
  0x3f   :  { %309 = vperm.xlu0 %4498, %v267_v44   ;;  %1711 = vmatpush.bf16.msrb.mxu3 %v3926_v41  ;;  %6533 = vst [vmem:[#allocation21_spill] sm:$0xff] %v4953_v61  ;;  %v3910_v6 = vor.u32 %v4403_v3, %v3907_v4  ;;  %v4339_v9 = vld [vmem:[#allocation2 + $0x64] sm:$0xf]  ;;  %v3651_v10 = vld [vmem:[#allocation2 + $0x70] sm:$0xf0]  ;;  %v270_v41 = vld [vmem:[%s6443_s3 + $0x48] sm:$0xff] }
  0x40   :  { %1378 = vmatmul.bf16.gmra.mxu0 %v4932_v29  ;;  %1427 = vmatmul.bf16.gmra.mxu1 %v4934_v30  ;;  %v3654_v12 = vor.u32 %v4339_v9, %v3651_v10  ;;  %v4304_v14 = vld [vmem:[#allocation5 + $0x88] sm:$0xf0]  ;;  %v4302_v15 = vld [vmem:[#allocation5 + $0x7c] sm:$0xf]  ;;  %v3503_v16 = vld [vmem:[#allocation5 + $0x8c] sm:$0xf0] }
  0x41   :  { %1476 = vmatmul.bf16.gmra.mxu2 %v4936_v31  ;;  %1564 = vmatpush.bf16.msrb.mxu0 %v4178_v40  ;;  %v3509_v17 = vld [vmem:[#allocation5 + $0x80] sm:$0xf]  ;;  %v4305_v18 = vld [vmem:[#allocation5 + $0x90] sm:$0xf0]  ;;  %v4303_v20 = vld [vmem:[#allocation5 + $0x84] sm:$0xf]  ;;  %v4971_v22 = vor.u32 %v4304_v14, %v3501_v13  ;;  %v4979_v25 = vor.u32 %v4302_v15, %v3503_v16 }
  0x42   :  { %1525 = vmatmul.bf16.gmra.mxu3 %v4938_v32  ;;  %1663 = vmatpush.bf16.msrb.mxu2 %v3782_v1  ;;  %v3511_v21 = vld [vmem:[#allocation5 + $0x94] sm:$0xf0]  ;;  %v275_v23 = vld [vmem:[%s6443_s3 + $0x70] sm:$0xff]  ;;  %v269_v24 = vld [vmem:[%s6443_s3 + $0x40] sm:$0xff]  ;;  %v4981_v26 = vor.u32 %v4305_v18, %v3509_v17 }
  0x43   :  { %299 = vperm.xlu2 %4500, %v265_v7   ;;  %1712 = vmatpush.bf16.msrb.mxu3 %v3910_v6  ;;  %6534 = vst [vmem:[#allocation22_spill] sm:$0xff] %v4971_v22  ;;  %v4983_v27 = vor.u32 %v4303_v20, %v3511_v21  ;;  %v4367_v28 = vld [vmem:[#allocation2 + $0x144] sm:$0xf]  ;;  %v3763_v33 = vld [vmem:[#allocation2 + $0x150] sm:$0xf0]  ;;  %v272_v10 = vld [vmem:[%s6443_s3 + $0x58] sm:$0xff] }
  0x44   :  { %314 = vperm.xlu1 %4499, %v268_v8   ;;  %1614 = vmatpush.bf16.msrb.mxu1 %v3654_v12  ;;  %6535 = vst [vmem:[#allocation23_spill] sm:$0xff] %v4979_v25  ;;  %v4145_v34 = vld [vmem:[#allocation2 + $0x440] sm:$0xf]  ;;  %v3766_v35 = vor.u32 %v4367_v28, %v3763_v33  ;;  %v4465_v36 = vld [vmem:[#allocation2 + $0x44c] sm:$0xf0]  ;;  %v276_v28 = vld [vmem:[%s6443_s3 + $0x78] sm:$0xff] }
  0x45   :  { %1565 = vmatpush.bf16.msrb.mxu0 %v4162_v5  ;;  %6536 = vst [vmem:[#allocation24_spill] sm:$0xff] %v4981_v26  ;;  %v4399_v37 = vld [vmem:[#allocation2 + $0x244] sm:$0xf]  ;;  %v3891_v38 = vld [vmem:[#allocation2 + $0x250] sm:$0xf0]  ;;  %v4146_v39 = vor.u32 %v4465_v36, %v4145_v34 }
  0x46   :  { %6537 = vst [vmem:[#allocation25_spill] sm:$0xff] %v4983_v27  ;;  %v3894_v40 = vor.u32 %v4399_v37, %v3891_v38  ;;  %v4335_v42 = vld [vmem:[#allocation2 + $0x44] sm:$0xf]  ;;  %v3635_v43 = vld [vmem:[#allocation2 + $0x50] sm:$0xf0]  ;;  %1664 = vmatpush.bf16.msrb.mxu2 %v3766_v35 }
  0x47   :  { %344 = vperm.xlu0 %4498, %v274_v11   ;;  %v3638_v44 = vor.u32 %v4335_v42, %v3635_v43  ;;  %v3521_v45 = vld [vmem:[#allocation5 + $0xa0] sm:$0xf]  ;;  %v4309_v46 = vld [vmem:[#allocation5 + $0xb0] sm:$0xf0]  ;;  %v4307_v47 = vld [vmem:[#allocation5 + $0xa4] sm:$0xf] }
  0x48   :  { %1713 = vmatpush.bf16.msrb.mxu3 %v3894_v40  ;;  %v3523_v48 = vld [vmem:[#allocation5 + $0xb4] sm:$0xf0]  ;;  %v3529_v49 = vld [vmem:[#allocation5 + $0xa8] sm:$0xf]  ;;  %v4310_v51 = vld [vmem:[#allocation5 + $0xb8] sm:$0xf0]  ;;  %v4992_v54 = vor.u32 %v4309_v46, %v3521_v45 }
  0x49   :  { %1566 = vmatpush.bf16.msrb.mxu0 %v4146_v39  ;;  %1615 = vmatpush.bf16.msrb.mxu1 %v3638_v44  ;;  %v4308_v52 = vld [vmem:[#allocation5 + $0xac] sm:$0xf]  ;;  %v3531_v53 = vld [vmem:[#allocation5 + $0xbc] sm:$0xf0]  ;;  %v4994_v62 = vor.u32 %v4307_v47, %v3523_v48  ;;  %v4996_v63 = vor.u32 %v4310_v51, %v3529_v49  ;;  %v4363_v1 = vld [vmem:[#allocation2 + $0x124] sm:$0xf] }
  0x4a   :  { %6538 = vst [vmem:[#allocation26_spill] sm:$0xff] %v4992_v54  ;;  %v4998_v0 = vor.u32 %v4308_v52, %v3531_v53  ;;  %v3747_v2 = vld [vmem:[#allocation2 + $0x130] sm:$0xf0]  ;;  %v4129_v3 = vld [vmem:[#allocation2 + $0x420] sm:$0xf] }
  0x4b   :  { %304 = vperm.xlu2 %4500, %v266_v19   ;;  %6539 = vst [vmem:[#allocation27_spill] sm:$0xff] %v4994_v62  ;;  %v3750_v4 = vor.u32 %v4363_v1, %v3747_v2  ;;  %v4461_v5 = vld [vmem:[#allocation2 + $0x42c] sm:$0xf0]  ;;  %v4395_v6 = vld [vmem:[#allocation2 + $0x224] sm:$0xf] }
  0x4c   :  { %349 = vperm.xlu1 %4499, %v275_v23   ;;  %6540 = vst [vmem:[#allocation28_spill] sm:$0xff] %v4996_v63  ;;  %v3875_v7 = vld [vmem:[#allocation2 + $0x230] sm:$0xf0]  ;;  %v4130_v8 = vor.u32 %v4461_v5, %v4129_v3  ;;  %v4331_v11 = vld [vmem:[#allocation2 + $0x24] sm:$0xf] }
  0x4d   :  { %6541 = vst [vmem:[#allocation29_spill] sm:$0xff] %v4998_v0  ;;  %v3878_v9 = vor.u32 %v4395_v6, %v3875_v7  ;;  %v3619_v12 = vld [vmem:[#allocation2 + $0x30] sm:$0xf0]  ;;  %1665 = vmatpush.bf16.msrb.mxu2 %v3750_v4  ;;  %v273_v14 = vld [vmem:[%s6443_s3 + $0x60] sm:$0xff]  ;;  %v3541_v15 = vld [vmem:[#allocation5 + $0xc8] sm:$0xf] }
  0x4e   :  { %v3622_v13 = vor.u32 %v4331_v11, %v3619_v12  ;;  %1567 = vmatpush.bf16.msrb.mxu0 %v4130_v8  ;;  %v4314_v16 = vld [vmem:[#allocation5 + $0xd8] sm:$0xf0]  ;;  %v4312_v17 = vld [vmem:[#allocation5 + $0xcc] sm:$0xf]  ;;  %v3543_v18 = vld [vmem:[#allocation5 + $0xdc] sm:$0xf0] }
  0x4f   :  { %319 = vperm.xlu0 %4498, %v269_v24   ;;  %1714 = vmatpush.bf16.msrb.mxu3 %v3878_v9  ;;  %v3549_v19 = vld [vmem:[#allocation5 + $0xd0] sm:$0xf]  ;;  %v4315_v20 = vld [vmem:[#allocation5 + $0xe0] sm:$0xf0]  ;;  %v4313_v21 = vld [vmem:[#allocation5 + $0xd4] sm:$0xf]  ;;  %v5010_v24 = vor.u32 %v4314_v16, %v3541_v15  ;;  %v5015_v33 = vor.u32 %v4312_v17, %v3543_v18 }
  0x50   :  { %1383 = vmatmul.bf16.gmra.mxu0 %v4947_v57  ;;  %1432 = vmatmul.bf16.gmra.mxu1 %v4949_v58  ;;  %v3551_v23 = vld [vmem:[#allocation5 + $0xe4] sm:$0xf0]  ;;  %v5017_v34 = vor.u32 %v4315_v20, %v3549_v19  ;;  %v4359_v36 = vld [vmem:[#allocation2 + $0x104] sm:$0xf]  ;;  %v3731_v37 = vld [vmem:[#allocation2 + $0x110] sm:$0xf0] }
  0x51   :  { %1481 = vmatmul.bf16.gmra.mxu2 %v4951_v60  ;;  %1616 = vmatpush.bf16.msrb.mxu1 %v3622_v13  ;;  %6542 = vst [vmem:[#allocation30_spill] sm:$0xff] %v5010_v24  ;;  %v5019_v35 = vor.u32 %v4313_v21, %v3551_v23  ;;  %v4113_v38 = vld [vmem:[#allocation2 + $0x400] sm:$0xf]  ;;  %v3734_v39 = vor.u32 %v4359_v36, %v3731_v37  ;;  %v4457_v40 = vld [vmem:[#allocation2 + $0x40c] sm:$0xf0] }
  0x52   :  { %1530 = vmatmul.bf16.gmra.mxu3 %v4953_v61  ;;  %6543 = vst [vmem:[#allocation31_spill] sm:$0xff] %v5015_v33  ;;  %v3859_v42 = vld [vmem:[#allocation2 + $0x210] sm:$0xf0]  ;;  %v4114_v43 = vor.u32 %v4457_v40, %v4113_v38  ;;  %v4327_v45 = vld [vmem:[#allocation2 + $0x4] sm:$0xf] }
  0x53   :  { %339 = vperm.xlu2 %4500, %v273_v14   ;;  %6544 = vst [vmem:[#allocation32_spill] sm:$0xff] %v5017_v34  ;;  %v3603_v46 = vld [vmem:[#allocation2 + $0x10] sm:$0xf0]  ;;  %1666 = vmatpush.bf16.msrb.mxu2 %v3734_v39  ;;  %v3561_v49 = vld [vmem:[#allocation5 + $0xf0] sm:$0xf] }
  0x54   :  { %324 = vperm.xlu1 %4499, %v270_v41   ;;  %6545 = vst [vmem:[#allocation33_spill] sm:$0xff] %v5019_v35  ;;  %v4391_v41 = vld [vmem:[#allocation2 + $0x204] sm:$0xf]  ;;  %v271_v47 = vld [vmem:[%s6443_s3 + $0x50] sm:$0xff]  ;;  %v3606_v48 = vor.u32 %v4327_v45, %v3603_v46  ;;  %1568 = vmatpush.bf16.msrb.mxu0 %v4114_v43  ;;  %v3563_v53 = vld [vmem:[#allocation5 + $0x104] sm:$0xf0] }
  0x55   :  { %v3862_v44 = vor.u32 %v4391_v41, %v3859_v42  ;;  %v4319_v51 = vld [vmem:[#allocation5 + $0x100] sm:$0xf0]  ;;  %v4317_v52 = vld [vmem:[#allocation5 + $0xf4] sm:$0xf]  ;;  %v3569_v1 = vld [vmem:[#allocation5 + $0xf8] sm:$0xf] }
  0x56   :  { %1617 = vmatpush.bf16.msrb.mxu1 %v3606_v48  ;;  %v4320_v2 = vld [vmem:[#allocation5 + $0x108] sm:$0xf0]  ;;  %v4318_v3 = vld [vmem:[#allocation5 + $0xfc] sm:$0xf]  ;;  %v3571_v4 = vld [vmem:[#allocation5 + $0x10c] sm:$0xf0]  ;;  %v5028_v5 = vor.u32 %v4319_v51, %v3561_v49  ;;  %v5030_v6 = vor.u32 %v4317_v52, %v3563_v53 }
  0x57   :  { %334 = vperm.xlu0 %4498, %v272_v10   ;;  %1715 = vmatpush.bf16.msrb.mxu3 %v3862_v44  ;;  %v5032_v7 = vor.u32 %v4320_v2, %v3569_v1  ;;  %v5034_v8 = vor.u32 %v4318_v3, %v3571_v4  ;;  %v3721_v9 = vld [vmem:[#allocation2 + $0xe8] sm:$0xf]  ;;  %v4358_v10 = vld [vmem:[#allocation2 + $0xf4] sm:$0xf0]  ;;  %v4451_v11 = vld [vmem:[#allocation2 + $0x3e4] sm:$0xf] }
  0x58   :  { %6546 = vst [vmem:[#allocation34_spill] sm:$0xff] %v5030_v6  ;;  %v3722_v12 = vor.u32 %v4358_v10, %v3721_v9  ;;  %v4099_v13 = vld [vmem:[#allocation2 + $0x3f0] sm:$0xf0]  ;;  %v3849_v14 = vld [vmem:[#allocation2 + $0x1e8] sm:$0xf] }
  0x59   :  { %6547 = vst [vmem:[#allocation35_spill] sm:$0xff] %v5032_v7  ;;  %v4390_v15 = vld [vmem:[#allocation2 + $0x1f4] sm:$0xf0]  ;;  %v4102_v16 = vor.u32 %v4451_v11, %v4099_v13  ;;  %v4483_v18 = vld [vmem:[#allocation2 + $0x4e4] sm:$0xf] }
  0x5a   :  { %6548 = vst [vmem:[#allocation36_spill] sm:$0xff] %v5034_v8  ;;  %v3850_v17 = vor.u32 %v4390_v15, %v3849_v14  ;;  %1855 = vmatpush.bf16.msra.mxu2 %v3722_v12  ;;  %v4227_v19 = vld [vmem:[#allocation2 + $0x4f0] sm:$0xf0]  ;;  %v3581_v21 = vld [vmem:[#allocation5 + $0x118] sm:$0xf] }
  0x5b   :  { %354 = vperm.xlu2 %4500, %v276_v28   ;;  %1757 = vmatpush.bf16.msra.mxu0 %v4102_v16  ;;  %v4230_v20 = vor.u32 %v4483_v18, %v4227_v19  ;;  %v4324_v23 = vld [vmem:[#allocation5 + $0x128] sm:$0xf0]  ;;  %v4322_v28 = vld [vmem:[#allocation5 + $0x11c] sm:$0xf]  ;;  %v3583_v36 = vld [vmem:[#allocation5 + $0x12c] sm:$0xf0] }
  0x5c   :  { %1904 = vmatpush.bf16.msra.mxu3 %v3850_v17  ;;  %v3589_v37 = vld [vmem:[#allocation5 + $0x120] sm:$0xf]  ;;  %v4325_v38 = vld [vmem:[#allocation5 + $0x130] sm:$0xf0]  ;;  %v4323_v39 = vld [vmem:[#allocation5 + $0x124] sm:$0xf]  ;;  %v5040_v41 = vor.u32 %v4324_v23, %v3581_v21  ;;  %v5042_v42 = vor.u32 %v4322_v28, %v3583_v36 }
  0x5d   :  { %1806 = vmatpush.bf16.msra.mxu1 %v4230_v20  ;;  %v3591_v40 = vld [vmem:[#allocation5 + $0x134] sm:$0xf0]  ;;  %v5044_v43 = vor.u32 %v4325_v38, %v3589_v37  ;;  %v3705_v45 = vld [vmem:[#allocation2 + $0xc8] sm:$0xf]  ;;  %v4083_v49 = vld [vmem:[#allocation2 + $0x3d0] sm:$0xf0] }
  0x5e   :  { %6549 = vst [vmem:[#allocation37_spill] sm:$0xff] %v5040_v41  ;;  %v5046_v44 = vor.u32 %v4323_v39, %v3591_v40  ;;  %v4354_v46 = vld [vmem:[#allocation2 + $0xd4] sm:$0xf0]  ;;  %v3833_v51 = vld [vmem:[#allocation2 + $0x1c8] sm:$0xf] }
  0x5f   :  { %6550 = vst [vmem:[#allocation38_spill] sm:$0xff] %v5042_v42  ;;  %v3706_v48 = vor.u32 %v4354_v46, %v3705_v45  ;;  %v4386_v52 = vld [vmem:[#allocation2 + $0x1d4] sm:$0xf0]  ;;  %v4479_v2 = vld [vmem:[#allocation2 + $0x4c4] sm:$0xf] }
  0x60   :  { %1388 = vmatmul.bf16.gmra.mxu0 %v4971_v22  ;;  %1437 = vmatmul.bf16.gmra.mxu1 %v4979_v25  ;;  %6551 = vst [vmem:[#allocation39_spill] sm:$0xff] %v5044_v43  ;;  %v3834_v1 = vor.u32 %v4386_v52, %v3833_v51  ;;  %v4211_v3 = vld [vmem:[#allocation2 + $0x4d0] sm:$0xf0]  ;;  %v3457_v10 = vld [vmem:[#allocation5 + $0x10] sm:$0xf] }
  0x61   :  { %1486 = vmatmul.bf16.gmra.mxu2 %v4981_v26  ;;  %6552 = vst [vmem:[#allocation40_spill] sm:$0xff] %v5046_v44  ;;  %v4214_v4 = vor.u32 %v4479_v2, %v4211_v3  ;;  %v4291_v11 = vld [vmem:[#allocation5 + $0x20] sm:$0xf0]  ;;  %v3689_v17 = vld [vmem:[#allocation2 + $0xa8] sm:$0xf] }
  0x62   :  { %1535 = vmatmul.bf16.gmra.mxu3 %v4983_v27  ;;  %1856 = vmatpush.bf16.msra.mxu2 %v3706_v48  ;;  %v5054_v12 = vor.u32 %v4291_v11, %v3457_v10  ;;  %v4350_v18 = vld [vmem:[#allocation2 + $0xb4] sm:$0xf0]  ;;  %v4443_v19 = vld [vmem:[#allocation2 + $0x3a4] sm:$0xf]  ;;  %v4067_v23 = vld [vmem:[#allocation2 + $0x3b0] sm:$0xf0] }
  0x63   :  { %329 = vperm.xlu2 %4500, %v271_v47   ;;  %v4447_v47 = vld [vmem:[#allocation2 + $0x3c4] sm:$0xf]  ;;  %1905 = vmatpush.bf16.msra.mxu3 %v3834_v1  ;;  %v3690_v21 = vor.u32 %v4350_v18, %v3689_v17  ;;  %v3817_v28 = vld [vmem:[#allocation2 + $0x1a8] sm:$0xf]  ;;  %v4382_v36 = vld [vmem:[#allocation2 + $0x1b4] sm:$0xf0]  ;;  %v4070_v38 = vor.u32 %v4443_v19, %v4067_v23 }
  0x64   :  { %v4086_v53 = vor.u32 %v4447_v47, %v4083_v49  ;;  %1807 = vmatpush.bf16.msra.mxu1 %v4214_v4  ;;  %v3818_v39 = vor.u32 %v4382_v36, %v3817_v28  ;;  %v4475_v51 = vld [vmem:[#allocation2 + $0x4a4] sm:$0xf]  ;;  %v4195_v52 = vld [vmem:[#allocation2 + $0x4b0] sm:$0xf0]  ;;  %v3477_v3 = vld [vmem:[#allocation5 + $0x38] sm:$0xf] }
  0x65   :  { %v4198_v1 = vor.u32 %v4475_v51, %v4195_v52  ;;  %v4296_v4 = vld [vmem:[#allocation5 + $0x48] sm:$0xf0]  ;;  %v4346_v23 = vld [vmem:[#allocation2 + $0x94] sm:$0xf0]  ;;  %v4439_v28 = vld [vmem:[#allocation2 + $0x384] sm:$0xf] }
  0x66   :  { %1758 = vmatpush.bf16.msra.mxu0 %v4086_v53  ;;  %1857 = vmatpush.bf16.msra.mxu2 %v3690_v21  ;;  %v5068_v11 = vor.u32 %v4296_v4, %v3477_v3  ;;  %v3673_v21 = vld [vmem:[#allocation2 + $0x88] sm:$0xf]  ;;  %v4471_v4 = vld [vmem:[#allocation2 + $0x484] sm:$0xf] }
  0x67   :  { %1906 = vmatpush.bf16.msra.mxu3 %v3818_v39  ;;  %v3801_v39 = vld [vmem:[#allocation2 + $0x188] sm:$0xf] }
  0x68   :  { %1808 = vmatpush.bf16.msra.mxu1 %v4198_v1 }
  0x6a   :  { %1759 = vmatpush.bf16.msra.mxu0 %v4070_v38  ;;  %v4051_v38 = vld [vmem:[#allocation2 + $0x390] sm:$0xf0] }
  0x70   :  { %1393 = vmatmul.bf16.gmra.mxu0 %v4992_v54  ;;  %1442 = vmatmul.bf16.gmra.mxu1 %v4994_v62 }
  0x71   :  { %1491 = vmatmul.bf16.gmra.mxu2 %v4996_v63 }
  0x72   :  { %1540 = vmatmul.bf16.gmra.mxu3 %v4998_v0 }
  0x80   :  { %1398 = vmatmul.bf16.gmra.mxu0 %v5010_v24  ;;  %1447 = vmatmul.bf16.gmra.mxu1 %v5015_v33 }
  0x81   :  { %1496 = vmatmul.bf16.gmra.mxu2 %v5017_v34 }
  0x82   :  { %1545 = vmatmul.bf16.gmra.mxu3 %v5019_v35 }
  0x90   :  { %1403 = vmatmul.bf16.gmra.mxu0 %v5028_v5  ;;  %1452 = vmatmul.bf16.gmra.mxu1 %v5030_v6 }
  0x91   :  { %1501 = vmatmul.bf16.gmra.mxu2 %v5032_v7 }
  0x92   :  { %1550 = vmatmul.bf16.gmra.mxu3 %v5034_v8 }
  0xa0   :  { %1408 = vmatmul.bf16.gmra.mxu0 %v5040_v41  ;;  %1457 = vmatmul.bf16.gmra.mxu1 %v5042_v42 }
  0xa1   :  { %1506 = vmatmul.bf16.gmra.mxu2 %v5044_v43  ;;  %v5052_v9 = vpop.permute.xlu0 %279 }
  0xa2   :  { %1555 = vmatmul.bf16.gmra.mxu3 %v5046_v44  ;;  %6553 = vst [vmem:[#allocation41_spill] sm:$0xff] %v5052_v9 }
  0xa6   :  { %v5066_v2 = vpop.permute.xlu1 %289 }
  0xa7   :  { %6555 = vst [vmem:[#allocation43_spill] sm:$0xff] %v5066_v2 }
  0xa9   :  { %v5061_v20 = vpop.permute.xlu0 %284 }
  0xaa   :  { %6554 = vst [vmem:[#allocation42_spill] sm:$0xff] %v5061_v20 }
  0xad   :  { %v1374_v13 = vpop.f32.mrf.mxu0  ;;  %v1423_v15 = vpop.f32.mrf.mxu1 }
  0xae   :  { %v1375_v14 = vadd.f32 %v1374_v13, %v5052_v9  ;;  %v5077_v36 = vpop.permute.xlu1 %294 }
  0xaf   :  { %6556 = vst [vmem:[#allocation44_spill] sm:$0xff] %v5077_v36 }
  0xb0   :  { %v1424_v16 = vadd.f32 %v1423_v15, %v1375_v14  ;;  %1569 = vmatmul.bf16.vlgmr.msrb.gmra.mxu0 %v5054_v12  ;;  %1618 = vmatmul.bf16.vlgmr.msrb.gmra.mxu1 %v4911_v50 }
  0xb1   :  { %1667 = vmatmul.bf16.vlgmr.msrb.gmra.mxu2 %v4913_v55 }
  0xb2   :  { %1716 = vmatmul.bf16.vlgmr.msrb.gmra.mxu3 %v4915_v56 }
  0xb4   :  { %v1472_v37 = vpop.f32.mrf.mxu2 }
  0xb5   :  { %v1473_v40 = vadd.f32 %v1472_v37, %v1424_v16  ;;  %v1521_v45 = vpop.f32.mrf.mxu3  ;;  %v1376_v46 = vpop.f32.mrf.mxu0  ;;  %v3674_v37 = vor.u32 %v4346_v23, %v3673_v21 }
  0xb6   :  { %v1377_v47 = vadd.f32 %v1376_v46, %v5061_v20  ;;  %v1425_v48 = vpop.f32.mrf.mxu1  ;;  %v4054_v46 = vor.u32 %v4439_v28, %v4051_v38 }
  0xb7   :  { %v5064_v49 = vadd.f32 %v1521_v45, %v1473_v40  ;;  %v4378_v40 = vld [vmem:[#allocation2 + $0x194] sm:$0xf0]  ;;  %1858 = vmatpush.bf16.msra.mxu2 %v3674_v37 }
  0xb8   :  { %v1426_v53 = vadd.f32 %v1425_v48, %v1377_v47  ;;  %v3802_v47 = vor.u32 %v4378_v40, %v3801_v39  ;;  %1760 = vmatpush.bf16.msra.mxu0 %v4054_v46  ;;  %v3657_v46 = vld [vmem:[#allocation2 + $0x68] sm:$0xf] }
  0xba   :  { %1907 = vmatpush.bf16.msra.mxu3 %v3802_v47  ;;  %v4342_v47 = vld [vmem:[#allocation2 + $0x74] sm:$0xf0] }
  0xbc   :  { %v1474_v10 = vpop.f32.mrf.mxu2 }
  0xbd   :  { %v1475_v13 = vadd.f32 %v1474_v10, %v1426_v53  ;;  %v1523_v14 = vpop.f32.mrf.mxu3  ;;  %v1379_v15 = vpop.f32.mrf.mxu0  ;;  %v4179_v10 = vld [vmem:[#allocation2 + $0x490] sm:$0xf0] }
  0xbe   :  { %v1380_v16 = vadd.f32 %v1379_v15, %v5066_v2  ;;  %v1428_v17 = vpop.f32.mrf.mxu1  ;;  %v5082_v15 = vpop.permute.xlu2 %299 }
  0xbf   :  { %v5071_v18 = vadd.f32 %v1523_v14, %v1475_v13  ;;  %v4182_v14 = vor.u32 %v4471_v4, %v4179_v10  ;;  %6557 = vst [vmem:[#allocation45_spill] sm:$0xff] %v5082_v15  ;;  %v4374_v4 = vld [vmem:[#allocation2 + $0x174] sm:$0xf0] }
  0xc0   :  { %v1429_v19 = vadd.f32 %v1428_v17, %v1380_v16  ;;  %1574 = vmatmul.bf16.gmra.mxu0 %v5068_v11  ;;  %1623 = vmatmul.bf16.gmra.mxu1 %v4932_v29  ;;  %v3497_v16 = vld [vmem:[#allocation5 + $0x60] sm:$0xf]  ;;  %v4301_v17 = vld [vmem:[#allocation5 + $0x70] sm:$0xf0] }
  0xc1   :  { %1672 = vmatmul.bf16.gmra.mxu2 %v4934_v30  ;;  %1809 = vmatpush.bf16.msra.mxu1 %v4182_v14  ;;  %v5084_v21 = vor.u32 %v4301_v17, %v3497_v16 }
  0xc2   :  { %1721 = vmatmul.bf16.gmra.mxu3 %v4936_v31  ;;  %v3517_v31 = vld [vmem:[#allocation5 + $0x88] sm:$0xf] }
  0xc3   :  { %6558 = vst [vmem:[#allocation46_spill] sm:$0xff] %v5084_v21 }
  0xc4   :  { %v1477_v45 = vpop.f32.mrf.mxu2 }
  0xc5   :  { %v1478_v48 = vadd.f32 %v1477_v45, %v1429_v19  ;;  %v1526_v51 = vpop.f32.mrf.mxu3  ;;  %v1381_v52 = vpop.f32.mrf.mxu0 }
  0xc6   :  { %v1382_v53 = vadd.f32 %v1381_v52, %v5077_v36  ;;  %v1430_v1 = vpop.f32.mrf.mxu1  ;;  %v3658_v52 = vor.u32 %v4342_v47, %v3657_v46  ;;  %v4163_v46 = vld [vmem:[#allocation2 + $0x470] sm:$0xf0] }
  0xc7   :  { %v5080_v3 = vadd.f32 %v1526_v51, %v1478_v48  ;;  %v4435_v48 = vld [vmem:[#allocation2 + $0x364] sm:$0xf]  ;;  %v5093_v51 = vpop.permute.xlu2 %304 }
  0xc8   :  { %v1431_v13 = vadd.f32 %v1430_v1, %v1382_v53  ;;  %6559 = vst [vmem:[#allocation47_spill] sm:$0xff] %v5093_v51  ;;  %v4035_v53 = vld [vmem:[#allocation2 + $0x370] sm:$0xf0]  ;;  %v3785_v1 = vld [vmem:[#allocation2 + $0x168] sm:$0xf]  ;;  %1859 = vmatpush.bf16.msra.mxu2 %v3658_v52 }
  0xc9   :  { %v3786_v14 = vor.u32 %v4374_v4, %v3785_v1 }
  0xcb   :  { %1908 = vmatpush.bf16.msra.mxu3 %v3786_v14 }
  0xcc   :  { %v1479_v19 = vpop.f32.mrf.mxu2 }
  0xcd   :  { %v1480_v23 = vadd.f32 %v1479_v19, %v1431_v13  ;;  %v1528_v28 = vpop.f32.mrf.mxu3  ;;  %v1384_v37 = vpop.f32.mrf.mxu0  ;;  %v4038_v13 = vor.u32 %v4435_v48, %v4035_v53  ;;  %v4306_v48 = vld [vmem:[#allocation5 + $0x98] sm:$0xf0] }
  0xce   :  { %v1385_v38 = vadd.f32 %v1384_v37, %v5082_v15  ;;  %v1433_v39 = vpop.f32.mrf.mxu1  ;;  %v5100_v53 = vor.u32 %v4306_v48, %v3517_v31  ;;  %v3641_v31 = vld [vmem:[#allocation2 + $0x48] sm:$0xf] }
  0xcf   :  { %v5087_v40 = vadd.f32 %v1528_v28, %v1480_v23  ;;  %1761 = vmatpush.bf16.msra.mxu0 %v4038_v13  ;;  %v5116_v44 = vpop.permute.xlu2 %339 }
  0xd0   :  { %v1434_v45 = vadd.f32 %v1433_v39, %v1385_v38  ;;  %1579 = vmatmul.bf16.gmra.mxu0 %v5084_v21  ;;  %1628 = vmatmul.bf16.gmra.mxu1 %v4947_v57  ;;  %v5098_v38 = vpop.permute.xlu0 %309  ;;  %v4467_v39 = vld [vmem:[#allocation2 + $0x464] sm:$0xf]  ;;  %6561 = vst [vmem:[#allocation49_spill] sm:$0xff] %v5100_v53 }
  0xd1   :  { %1677 = vmatmul.bf16.gmra.mxu2 %v4949_v58  ;;  %6560 = vst [vmem:[#allocation48_spill] sm:$0xff] %v5098_v38 }
  0xd2   :  { %1726 = vmatmul.bf16.gmra.mxu3 %v4951_v60  ;;  %v4166_v60 = vor.u32 %v4467_v39, %v4163_v46  ;;  %v4019_v39 = vld [vmem:[#allocation2 + $0x350] sm:$0xf0]  ;;  %v3769_v46 = vld [vmem:[#allocation2 + $0x148] sm:$0xf] }
  0xd4   :  { %v1482_v10 = vpop.f32.mrf.mxu2  ;;  %1810 = vmatpush.bf16.msra.mxu1 %v4166_v60 }
  0xd5   :  { %v1483_v16 = vadd.f32 %v1482_v10, %v1434_v45  ;;  %v1531_v17 = vpop.f32.mrf.mxu3  ;;  %v1386_v19 = vpop.f32.mrf.mxu0 }
  0xd6   :  { %v1387_v23 = vadd.f32 %v1386_v19, %v5093_v51  ;;  %v1435_v28 = vpop.f32.mrf.mxu1  ;;  %v4338_v19 = vld [vmem:[#allocation2 + $0x54] sm:$0xf0] }
  0xd7   :  { %v5096_v37 = vadd.f32 %v1531_v17, %v1483_v16  ;;  %v5105_v16 = vpop.permute.xlu1 %314 }
  0xd8   :  { %v1436_v47 = vadd.f32 %v1435_v28, %v1387_v23  ;;  %6562 = vst [vmem:[#allocation50_spill] sm:$0xff] %v5105_v16  ;;  %v5110_v60 = vpop.permute.xlu0 %344  ;;  %v4431_v23 = vld [vmem:[#allocation2 + $0x344] sm:$0xf]  ;;  %v3642_v28 = vor.u32 %v4338_v19, %v3641_v31  ;;  %v4147_v19 = vld [vmem:[#allocation2 + $0x450] sm:$0xf0] }
  0xd9   :  { %6563 = vst [vmem:[#allocation51_spill] sm:$0xff] %v5110_v60  ;;  %v4463_v31 = vld [vmem:[#allocation2 + $0x444] sm:$0xf] }
  0xda   :  { %1860 = vmatpush.bf16.msra.mxu2 %v3642_v28  ;;  %v4150_v35 = vor.u32 %v4463_v31, %v4147_v19 }
  0xdc   :  { %v1484_v45 = vpop.f32.mrf.mxu2  ;;  %1811 = vmatpush.bf16.msra.mxu1 %v4150_v35  ;;  %v5130_v35 = vpop.permute.xlu2 %354 }
  0xdd   :  { %v1485_v52 = vadd.f32 %v1484_v45, %v1436_v47  ;;  %v1533_v1 = vpop.f32.mrf.mxu3  ;;  %v1389_v4 = vpop.f32.mrf.mxu0  ;;  %v4370_v47 = vld [vmem:[#allocation2 + $0x154] sm:$0xf0]  ;;  %v4022_v45 = vor.u32 %v4431_v23, %v4019_v39  ;;  %v3537_v23 = vld [vmem:[#allocation5 + $0xb0] sm:$0xf]  ;;  %6568 = vst [vmem:[#allocation56_spill] sm:$0xff] %v5130_v35 }
  0xde   :  { %v1438_v10 = vpop.f32.mrf.mxu1  ;;  %v1390_v13 = vadd.f32 %v1389_v4, %v5098_v38 }
  0xdf   :  { %v5103_v14 = vadd.f32 %v1533_v1, %v1485_v52  ;;  %v3770_v52 = vor.u32 %v4370_v47, %v3769_v46  ;;  %1762 = vmatpush.bf16.msra.mxu0 %v4022_v45  ;;  %v5118_v0 = vpop.permute.xlu1 %349 }
  0xe0   :  { %1584 = vmatmul.bf16.gmra.mxu0 %v5100_v53  ;;  %v1439_v17 = vadd.f32 %v1438_v10, %v1390_v13  ;;  %1633 = vmatmul.bf16.gmra.mxu1 %v4971_v22  ;;  %6564 = vst [vmem:[#allocation52_spill] sm:$0xff] %v5118_v0  ;;  %v5120_v39 = vpop.permute.xlu0 %319 }
  0xe1   :  { %1682 = vmatmul.bf16.gmra.mxu2 %v4979_v25  ;;  %1909 = vmatpush.bf16.msra.mxu3 %v3770_v52  ;;  %6565 = vst [vmem:[#allocation53_spill] sm:$0xff] %v5120_v39  ;;  %v4316_v25 = vld [vmem:[#allocation5 + $0xe8] sm:$0xf0] }
  0xe2   :  { %1731 = vmatmul.bf16.gmra.mxu3 %v4981_v26 }
  0xe4   :  { %v1487_v48 = vpop.f32.mrf.mxu2 }
  0xe5   :  { %v1488_v1 = vadd.f32 %v1487_v48, %v1439_v17  ;;  %v1536_v4 = vpop.f32.mrf.mxu3  ;;  %v1391_v10 = vpop.f32.mrf.mxu0  ;;  %v4311_v17 = vld [vmem:[#allocation5 + $0xc0] sm:$0xf0] }
  0xe6   :  { %v1392_v13 = vadd.f32 %v1391_v10, %v5105_v16  ;;  %v1440_v56 = vpop.f32.mrf.mxu1  ;;  %v5122_v46 = vor.u32 %v4311_v17, %v3537_v23  ;;  %v3625_v10 = vld [vmem:[#allocation2 + $0x28] sm:$0xf]  ;;  %v4003_v23 = vld [vmem:[#allocation2 + $0x330] sm:$0xf0] }
  0xe7   :  { %v5114_v26 = vadd.f32 %v1536_v4, %v1488_v1  ;;  %v5133_v31 = vpop.permute.xlu1 %324  ;;  %v3753_v17 = vld [vmem:[#allocation2 + $0x128] sm:$0xf]  ;;  %v4131_v16 = vld [vmem:[#allocation2 + $0x430] sm:$0xf0] }
  0xe8   :  { %v1441_v8 = vadd.f32 %v1440_v56, %v1392_v13  ;;  %6566 = vst [vmem:[#allocation54_spill] sm:$0xff] %v5122_v46  ;;  %v4427_v13 = vld [vmem:[#allocation2 + $0x324] sm:$0xf] }
  0xec   :  { %v1489_v28 = vpop.f32.mrf.mxu2 }
  0xed   :  { %v1490_v47 = vadd.f32 %v1489_v28, %v1441_v8  ;;  %v1538_v48 = vpop.f32.mrf.mxu3  ;;  %v1394_v45 = vpop.f32.mrf.mxu0  ;;  %v4334_v8 = vld [vmem:[#allocation2 + $0x34] sm:$0xf0] }
  0xee   :  { %v1443_v52 = vpop.f32.mrf.mxu1  ;;  %v1395_v1 = vadd.f32 %v1394_v45, %v5120_v39  ;;  %v3626_v19 = vor.u32 %v4334_v8, %v3625_v10  ;;  %v4366_v28 = vld [vmem:[#allocation2 + $0x134] sm:$0xf0]  ;;  %v4459_v39 = vld [vmem:[#allocation2 + $0x424] sm:$0xf] }
  0xef   :  { %v5125_v4 = vadd.f32 %v1538_v48, %v1490_v47  ;;  %v4006_v48 = vor.u32 %v4427_v13, %v4003_v23  ;;  %v3754_v45 = vor.u32 %v4366_v28, %v3753_v17  ;;  %v4134_v8 = vor.u32 %v4459_v39, %v4131_v16  ;;  %v5138_v13 = vpop.permute.xlu2 %329  ;;  %v3609_v16 = vld [vmem:[#allocation2 + $0x8] sm:$0xf]  ;;  %v4423_v39 = vld [vmem:[#allocation2 + $0x304] sm:$0xf] }
  0xf0   :  { %1589 = vmatmul.bf16.gmra.mxu0 %v5122_v46  ;;  %v1444_v56 = vadd.f32 %v1443_v52, %v1395_v1  ;;  %1638 = vmatmul.bf16.gmra.mxu1 %v4992_v54  ;;  %6569 = vst [vmem:[#allocation57_spill] sm:$0xff] %v5138_v13 }
  0xf1   :  { %6567 = vst [vmem:[#allocation55_spill] sm:$0xff] %v5125_v4  ;;  %1687 = vmatmul.bf16.gmra.mxu2 %v4994_v62  ;;  %1763 = vmatpush.bf16.msra.mxu0 %v4006_v48  ;;  %v3557_v4 = vld [vmem:[#allocation5 + $0xd8] sm:$0xf] }
  0xf2   :  { %1736 = vmatmul.bf16.gmra.mxu3 %v4996_v63  ;;  %1861 = vmatpush.bf16.msra.mxu2 %v3626_v19  ;;  %v5140_v23 = vor.u32 %v4316_v25, %v3557_v4  ;;  %v4330_v25 = vld [vmem:[#allocation2 + $0x14] sm:$0xf0] }
  0xf3   :  { %1910 = vmatpush.bf16.msra.mxu3 %v3754_v45  ;;  %1812 = vmatpush.bf16.msra.mxu1 %v4134_v8  ;;  %v3610_v4 = vor.u32 %v4330_v25, %v3609_v16  ;;  %v3987_v45 = vld [vmem:[#allocation2 + $0x310] sm:$0xf0] }
  0xf4   :  { %v1492_v47 = vpop.f32.mrf.mxu2  ;;  %6570 = vst [vmem:[#allocation58_spill] sm:$0xff] %v5140_v23  ;;  %v3990_v8 = vor.u32 %v4423_v39, %v3987_v45 }
  0xf5   :  { %v1493_v52 = vadd.f32 %v1492_v47, %v1444_v56  ;;  %v1541_v1 = vpop.f32.mrf.mxu3  ;;  %v1396_v54 = vpop.f32.mrf.mxu0 }
  0xf6   :  { %v1397_v62 = vadd.f32 %v1396_v54, %v5133_v31  ;;  %v1445_v46 = vpop.f32.mrf.mxu1  ;;  %1862 = vmatpush.bf16.msra.mxu2 %v3610_v4  ;;  %1764 = vmatpush.bf16.msra.mxu0 %v3990_v8 }
  0xf7   :  { %v5136_v63 = vadd.f32 %v1541_v1, %v1493_v52  ;;  %v3737_v52 = vld [vmem:[#allocation2 + $0x108] sm:$0xf]  ;;  %v4362_v1 = vld [vmem:[#allocation2 + $0x114] sm:$0xf0] }
  0xf8   :  { %v1446_v10 = vadd.f32 %v1445_v46, %v1397_v62  ;;  %v5149_v46 = vpop.permute.xlu0 %334 }
  0xfc   :  { %v1494_v56 = vpop.f32.mrf.mxu2 }
  0xfd   :  { %v1495_v19 = vadd.f32 %v1494_v56, %v1446_v10  ;;  %v1543_v17 = vpop.f32.mrf.mxu3  ;;  %v1399_v54 = vpop.f32.mrf.mxu0  ;;  %v3738_v56 = vor.u32 %v4362_v1, %v3737_v52 }
  0xfe   :  { %v1448_v28 = vpop.f32.mrf.mxu1  ;;  %v1400_v47 = vadd.f32 %v1399_v54, %v5138_v13  ;;  %v4321_v13 = vld [vmem:[#allocation5 + $0x110] sm:$0xf0] }
  0xff   :  { %v5143_v48 = vadd.f32 %v1543_v17, %v1495_v19  ;;  %1911 = vmatpush.bf16.msra.mxu3 %v3738_v56 }
 0x100   :  { %1594 = vmatmul.bf16.gmra.mxu0 %v5140_v23  ;;  %v1449_v62 = vadd.f32 %v1448_v28, %v1400_v47  ;;  %1643 = vmatmul.bf16.gmra.mxu1 %v5010_v24  ;;  %v4115_v24 = vld [vmem:[#allocation2 + $0x410] sm:$0xf0]  ;;  %v3577_v23 = vld [vmem:[#allocation5 + $0x100] sm:$0xf] }
 0x101   :  { %1692 = vmatmul.bf16.gmra.mxu2 %v5015_v33  ;;  %v4455_v33 = vld [vmem:[#allocation2 + $0x404] sm:$0xf]  ;;  %v5154_v45 = vor.u32 %v4321_v13, %v3577_v23 }
 0x102   :  { %1741 = vmatmul.bf16.gmra.mxu3 %v5017_v34  ;;  %v4118_v25 = vor.u32 %v4455_v33, %v4115_v24 }
 0x104   :  { %v1497_v10 = vpop.f32.mrf.mxu2  ;;  %1813 = vmatpush.bf16.msra.mxu1 %v4118_v25 }
 0x105   :  { %v1498_v19 = vadd.f32 %v1497_v10, %v1449_v62  ;;  %v1546_v17 = vpop.f32.mrf.mxu3  ;;  %v1401_v54 = vpop.f32.mrf.mxu0 }
 0x106   :  { %v1402_v28 = vadd.f32 %v1401_v54, %v5149_v46  ;;  %v1450_v47 = vpop.f32.mrf.mxu1 }
 0x107   :  { %v5152_v34 = vadd.f32 %v1546_v17, %v1498_v19 }
 0x108   :  { %v1451_v16 = vadd.f32 %v1450_v47, %v1402_v28  ;;  %v3597_v47 = vld [vmem:[#allocation5 + $0x128] sm:$0xf] }
 0x10c   :  { %v1499_v39 = vpop.f32.mrf.mxu2 }
 0x10d   :  { %v1500_v62 = vadd.f32 %v1499_v39, %v1451_v16  ;;  %v1548_v52 = vpop.f32.mrf.mxu3  ;;  %v1404_v4 = vpop.f32.mrf.mxu0  ;;  %v4326_v16 = vld [vmem:[#allocation5 + $0x138] sm:$0xf0] }
 0x10e   :  { %v1405_v1 = vadd.f32 %v1404_v4, %v5116_v44  ;;  %v1453_v10 = vpop.f32.mrf.mxu1  ;;  %v5166_v39 = vor.u32 %v4326_v16, %v3597_v47 }
 0x10f   :  { %v5157_v8 = vadd.f32 %v1548_v52, %v1500_v62 }
 0x110   :  { %v1454_v56 = vadd.f32 %v1453_v10, %v1405_v1  ;;  %1599 = vmatmul.bf16.gmra.mxu0 %v5154_v45  ;;  %1648 = vmatmul.bf16.gmra.mxu1 %v5028_v5  ;;  %6571 = vst [vmem:[#allocation59_spill] sm:$0xff] %v5166_v39 }
 0x111   :  { %1697 = vmatmul.bf16.gmra.mxu2 %v5030_v6 }
 0x112   :  { %1746 = vmatmul.bf16.gmra.mxu3 %v5032_v7 }
 0x114   :  { %v1502_v24 = vpop.f32.mrf.mxu2 }
 0x115   :  { %v1503_v33 = vadd.f32 %v1502_v24, %v1454_v56  ;;  %v1551_v13 = vpop.f32.mrf.mxu3  ;;  %v1406_v23 = vpop.f32.mrf.mxu0 }
 0x116   :  { %v1407_v19 = vadd.f32 %v1406_v23, %v5110_v60  ;;  %v1455_v17 = vpop.f32.mrf.mxu1  ;;  %v4486_v23 = vld [vmem:[#allocation2 + $0x4f4] sm:$0xf0] }
 0x117   :  { %v5164_v54 = vadd.f32 %v1551_v13, %v1503_v33  ;;  %v4233_v13 = vld [vmem:[#allocation2 + $0x4e8] sm:$0xf] }
 0x118   :  { %v1456_v28 = vadd.f32 %v1455_v17, %v1407_v19  ;;  %v3977_v19 = vld [vmem:[#allocation2 + $0x2e8] sm:$0xf]  ;;  %v4234_v16 = vor.u32 %v4486_v23, %v4233_v13 }
 0x11a   :  { %2051 = vmatpush.bf16.msrb.mxu2 %v4234_v16  ;;  %v4418_v16 = vld [vmem:[#allocation2 + $0x2d4] sm:$0xf0] }
 0x11c   :  { %v1504_v25 = vpop.f32.mrf.mxu2 }
 0x11d   :  { %v1505_v62 = vadd.f32 %v1504_v25, %v1456_v28  ;;  %v1553_v52 = vpop.f32.mrf.mxu3  ;;  %v1409_v4 = vpop.f32.mrf.mxu0  ;;  %v4422_v25 = vld [vmem:[#allocation2 + $0x2f4] sm:$0xf0] }
 0x11e   :  { %v1410_v1 = vadd.f32 %v1409_v4, %v5118_v0  ;;  %v1458_v10 = vpop.f32.mrf.mxu1 }
 0x11f   :  { %v5169_v56 = vadd.f32 %v1553_v52, %v1505_v62  ;;  %v4356_v62 = vld [vmem:[#allocation2 + $0xec] sm:$0xf]  ;;  %v3723_v52 = vld [vmem:[#allocation2 + $0xf8] sm:$0xf0] }
 0x120   :  { %v1459_v24 = vadd.f32 %v1458_v10, %v1410_v1  ;;  %1604 = vmatmul.bf16.gmra.mxu0 %v5166_v39  ;;  %1653 = vmatmul.bf16.gmra.mxu1 %v5040_v41  ;;  %v3978_v10 = vor.u32 %v4422_v25, %v3977_v19  ;;  %v3726_v7 = vor.u32 %v4356_v62, %v3723_v52  ;;  %v4105_v41 = vld [vmem:[#allocation2 + $0x3e8] sm:$0xf]  ;;  %v4352_v25 = vld [vmem:[#allocation2 + $0xcc] sm:$0xf]  ;;  %v3707_v62 = vld [vmem:[#allocation2 + $0xd8] sm:$0xf0] }
 0x121   :  { %6572 = vst [vmem:[#allocation60_spill] sm:$0xff] %v5169_v56  ;;  %1702 = vmatmul.bf16.gmra.mxu2 %v5042_v42  ;;  %v4454_v42 = vld [vmem:[#allocation2 + $0x3f4] sm:$0xf0] }
 0x122   :  { %1751 = vmatmul.bf16.gmra.mxu3 %v5044_v43  ;;  %v4106_v43 = vor.u32 %v4454_v42, %v4105_v41  ;;  %1953 = vmatpush.bf16.msrb.mxu0 %v3978_v10  ;;  %v4482_v42 = vld [vmem:[#allocation2 + $0x4d4] sm:$0xf0] }
 0x123   :  { %2100 = vmatpush.bf16.msrb.mxu3 %v3726_v7  ;;  %v4217_v7 = vld [vmem:[#allocation2 + $0x4c8] sm:$0xf]  ;;  %v4450_v10 = vld [vmem:[#allocation2 + $0x3d4] sm:$0xf0] }
 0x124   :  { %v1507_v33 = vpop.f32.mrf.mxu2  ;;  %2002 = vmatpush.bf16.msrb.mxu1 %v4106_v43  ;;  %v3961_v43 = vld [vmem:[#allocation2 + $0x2c8] sm:$0xf] }
 0x125   :  { %v1508_v17 = vadd.f32 %v1507_v33, %v1459_v24  ;;  %v1556_v28 = vpop.f32.mrf.mxu3  ;;  %v1411_v47 = vpop.f32.mrf.mxu0 }
 0x126   :  { %v1412_v4 = vadd.f32 %v1411_v47, %v5130_v35  ;;  %v1460_v1 = vpop.f32.mrf.mxu1  ;;  %v4218_v47 = vor.u32 %v4482_v42, %v4217_v7 }
 0x127   :  { %v5176_v39 = vadd.f32 %v1556_v28, %v1508_v17 }
 0x128   :  { %v1461_v0 = vadd.f32 %v1460_v1, %v1412_v4  ;;  %v3962_v4 = vor.u32 %v4418_v16, %v3961_v43  ;;  %v4089_v1 = vld [vmem:[#allocation2 + $0x3c8] sm:$0xf]  ;;  %2052 = vmatpush.bf16.msrb.mxu2 %v4218_v47 }
 0x12a   :  { %1954 = vmatpush.bf16.msrb.mxu0 %v3962_v4  ;;  %v4201_v4 = vld [vmem:[#allocation2 + $0x4a8] sm:$0xf] }
 0x12c   :  { %v1509_v24 = vpop.f32.mrf.mxu2 }
 0x12d   :  { %v1510_v33 = vadd.f32 %v1509_v24, %v1461_v0  ;;  %v1558_v13 = vpop.f32.mrf.mxu3  ;;  %v1570_v23 = vpop.f32.mrf.mxu0 }
 0x12e   :  { %v1619_v60 = vpop.f32.mrf.mxu1  ;;  %v1571_v43 = vadd.f32 %v1570_v23, %v5064_v49  ;;  %v4348_v23 = vld [vmem:[#allocation2 + $0xac] sm:$0xf] }
 0x12f   :  { %v5178_v56 = vadd.f32 %v1558_v13, %v1510_v33  ;;  %v1620_v19 = vadd.f32 %v1619_v60, %v5052_v9  ;;  %v3710_v60 = vor.u32 %v4352_v25, %v3707_v62  ;;  %v4090_v33 = vor.u32 %v4450_v10, %v4089_v1  ;;  %v3945_v1 = vld [vmem:[#allocation2 + $0x2a8] sm:$0xf] }
 0x130   :  { %1765 = vmatmul.bf16.vlgmr.msra.gmra.mxu0 %v4917_v59  ;;  %1814 = vmatmul.bf16.vlgmr.msra.gmra.mxu1 %v5054_v12  ;;  %v4239_v47 = vmul.f32 -1.442695, %v1571_v43 }
 0x131   :  { %1863 = vmatmul.bf16.vlgmr.msra.gmra.mxu2 %v4911_v50  ;;  %2101 = vmatpush.bf16.msrb.mxu3 %v3710_v60  ;;  %v4478_v60 = vld [vmem:[#allocation2 + $0x4b4] sm:$0xf0] }
 0x132   :  { %1912 = vmatmul.bf16.vlgmr.msra.gmra.mxu3 %v4913_v55  ;;  %2003 = vmatpush.bf16.msrb.mxu1 %v4090_v33  ;;  %v4202_v49 = vor.u32 %v4478_v60, %v4201_v4  ;;  %v3691_v33 = vld [vmem:[#allocation2 + $0xb8] sm:$0xf0]  ;;  %4501 = vpow2.f32 %v4239_v47 }
 0x134   :  { %v1668_v41 = vpop.f32.mrf.mxu2  ;;  %2053 = vmatpush.bf16.msrb.mxu2 %v4202_v49 }
 0x135   :  { %v1669_v0 = vadd.f32 %v1668_v41, %v1620_v19  ;;  %v1717_v17 = vpop.f32.mrf.mxu3  ;;  %v1572_v28 = vpop.f32.mrf.mxu0 }
 0x136   :  { %v1621_v52 = vpop.f32.mrf.mxu1  ;;  %v1573_v43 = vadd.f32 %v1572_v28, %v5071_v18 }
 0x137   :  { %v5185_v24 = vadd.f32 %v1717_v17, %v1669_v0  ;;  %v1622_v13 = vadd.f32 %v1621_v52, %v5061_v20 }
 0x13c   :  { %v1670_v19 = vpop.f32.mrf.mxu2 }
 0x13d   :  { %v1671_v41 = vadd.f32 %v1670_v19, %v1622_v13  ;;  %v1719_v7 = vpop.f32.mrf.mxu3  ;;  %v1575_v42 = vpop.f32.mrf.mxu0  ;;  %v3694_v19 = vor.u32 %v4348_v23, %v3691_v33 }
 0x13e   :  { %v1624_v55 = vpop.f32.mrf.mxu1  ;;  %v4502_v33 = vpop.eup %4501  ;;  %v1576_v28 = vadd.f32 %v1575_v42, %v5080_v3  ;;  %v4185_v3 = vld [vmem:[#allocation2 + $0x488] sm:$0xf]  ;;  %v4474_v42 = vld [vmem:[#allocation2 + $0x494] sm:$0xf0] }
 0x13f   :  { %v5188_v9 = vadd.f32 %v1719_v7, %v1671_v41  ;;  %v1625_v0 = vadd.f32 %v1624_v55, %v5066_v2  ;;  %v4414_v55 = vld [vmem:[#allocation2 + $0x2b4] sm:$0xf0]  ;;  %v4073_v41 = vld [vmem:[#allocation2 + $0x3a8] sm:$0xf]  ;;  %2102 = vmatpush.bf16.msrb.mxu3 %v3694_v19 }
 0x140   :  { %1770 = vmatmul.bf16.gmra.mxu0 %v4938_v32  ;;  %1819 = vmatmul.bf16.gmra.mxu1 %v5068_v11  ;;  %v3946_v13 = vor.u32 %v4414_v55, %v3945_v1  ;;  %v4446_v7 = vld [vmem:[#allocation2 + $0x3b4] sm:$0xf0] }
 0x141   :  { %1868 = vmatmul.bf16.gmra.mxu2 %v4932_v29 }
 0x142   :  { %1917 = vmatmul.bf16.gmra.mxu3 %v4934_v30  ;;  %1955 = vmatpush.bf16.msrb.mxu0 %v3946_v13 }
 0x144   :  { %v1673_v17 = vpop.f32.mrf.mxu2 }
 0x145   :  { %v1674_v16 = vadd.f32 %v1673_v17, %v1625_v0  ;;  %v1722_v25 = vpop.f32.mrf.mxu3  ;;  %v5196_v62 = vpop.f32.mrf.mxu0  ;;  %v4074_v0 = vor.u32 %v4446_v7, %v4073_v41 }
 0x146   :  { %v1626_v52 = vpop.f32.mrf.mxu1 }
 0x147   :  { %v5198_v10 = vadd.f32 %v1722_v25, %v1674_v16  ;;  %v1627_v17 = vadd.f32 %v1626_v52, %v5077_v36  ;;  %2004 = vmatpush.bf16.msrb.mxu1 %v4074_v0  ;;  %v4243_v25 = vmul.f32 -1.442695, %v1573_v43  ;;  %v4247_v52 = vmul.f32 -1.442695, %v1576_v28  ;;  %v3929_v43 = vld [vmem:[#allocation2 + $0x288] sm:$0xf] }
 0x148   :  { %v4057_v28 = vld [vmem:[#allocation2 + $0x388] sm:$0xf] }
 0x149   :  { %4503 = vpow2.f32 %v4243_v25  ;;  %v4410_v25 = vld [vmem:[#allocation2 + $0x294] sm:$0xf0] }
 0x14c   :  { %v1675_v16 = vpop.f32.mrf.mxu2 }
 0x14d   :  { %v1676_v4 = vadd.f32 %v1675_v16, %v1627_v17  ;;  %v1724_v60 = vpop.f32.mrf.mxu3  ;;  %v1580_v30 = vpop.f32.mrf.mxu0  ;;  %v4186_v16 = vor.u32 %v4474_v42, %v4185_v3 }
 0x14e   :  { %v1581_v1 = vadd.f32 %v1580_v30, %v5096_v37  ;;  %v1629_v55 = vpop.f32.mrf.mxu1  ;;  %v5211_v30 = vadd.f32 1.0, %v4502_v33  ;;  %v3930_v33 = vor.u32 %v4410_v25, %v3929_v43  ;;  %v4169_v25 = vld [vmem:[#allocation2 + $0x468] sm:$0xf] }
 0x14f   :  { %v5203_v23 = vadd.f32 %v1724_v60, %v1676_v4  ;;  %v1630_v47 = vadd.f32 %v1629_v55, %v5082_v15  ;;  %v4504_v0 = vpop.eup %4503  ;;  %v4344_v4 = vld [vmem:[#allocation2 + $0x8c] sm:$0xf]  ;;  %v3675_v60 = vld [vmem:[#allocation2 + $0x98] sm:$0xf0]  ;;  %2054 = vmatpush.bf16.msrb.mxu2 %v4186_v16 }
 0x150   :  { %v4255_v18 = vmul.f32 -1.442695, %v1581_v1  ;;  %1775 = vmatmul.bf16.gmra.mxu0 %v4953_v61  ;;  %1824 = vmatmul.bf16.gmra.mxu1 %v5084_v21  ;;  %vm2414_vm0 = vweird.f32 %v5211_v30  ;;  %v3643_v15 = vld [vmem:[#allocation2 + $0x58] sm:$0xf0]  ;;  %v6588_v61 = vld [vmem:[#allocation54_spill] sm:$0xff] }
 0x151   :  { %6573 = vst [vmem:[#allocation61_spill] sm:$0xff] %v5203_v23  ;;  %1873 = vmatmul.bf16.gmra.mxu2 %v4947_v57  ;;  %1956 = vmatpush.bf16.msrb.mxu0 %v3930_v33  ;;  %v4340_v33 = vld [vmem:[#allocation2 + $0x6c] sm:$0xf]  ;;  %v4402_v23 = vld [vmem:[#allocation2 + $0x254] sm:$0xf0] }
 0x152   :  { %4505 = vpow2.f32 %v4255_v18  ;;  %1922 = vmatmul.bf16.gmra.mxu3 %v4949_v58  ;;  %v3678_v18 = vor.u32 %v4344_v4, %v3675_v60  ;;  %v4470_v4 = vld [vmem:[#allocation2 + $0x474] sm:$0xf0]  ;;  %v3913_v60 = vld [vmem:[#allocation2 + $0x268] sm:$0xf] }
 0x153   :  { %4507 = vrcp.f32 %v5211_v30  ;;  %v4025_v57 = vld [vmem:[#allocation2 + $0x348] sm:$0xf] }
 0x154   :  { %v1678_v37 = vpop.f32.mrf.mxu2  ;;  %4509 = vpow2.f32 %v4247_v52  ;;  %2103 = vmatpush.bf16.msrb.mxu3 %v3678_v18  ;;  %v3659_v18 = vld [vmem:[#allocation2 + $0x78] sm:$0xf0] }
 0x155   :  { %v1679_v49 = vadd.f32 %v1678_v37, %v1630_v47  ;;  %v1727_v13 = vpop.f32.mrf.mxu3  ;;  %v1582_v19 = vpop.f32.mrf.mxu0  ;;  %v4442_v47 = vld [vmem:[#allocation2 + $0x394] sm:$0xf0] }
 0x156   :  { %v1583_v41 = vadd.f32 %v1582_v19, %v5103_v14  ;;  %v1631_v7 = vpop.f32.mrf.mxu1  ;;  %v1578_v14 = vadd.f32 %v5196_v62, %v5087_v40  ;;  %v4058_v19 = vor.u32 %v4442_v47, %v4057_v28 }
 0x157   :  { %v5215_v17 = vadd.f32 %v1727_v13, %v1679_v49  ;;  %v5221_v49 = vadd.f32 1.0, %v4504_v0  ;;  %v1632_v13 = vadd.f32 %v1631_v7, %v5093_v51  ;;  %v4170_v7 = vor.u32 %v4470_v4, %v4169_v25  ;;  %v6575_v4 = vld [vmem:[#allocation23_spill] sm:$0xff] }
 0x158   :  { %v4506_v1 = vpop.eup %4505  ;;  %v4259_v55 = vmul.f32 -1.442695, %v1583_v41  ;;  %2005 = vmatpush.bf16.msrb.mxu1 %v4058_v19  ;;  %v4251_v52 = vmul.f32 -1.442695, %v1578_v14  ;;  %v3662_v19 = vor.u32 %v4340_v33, %v3659_v18 }
 0x159   :  { %v5219_v37 = vadd.f32 1.0, %v4506_v1  ;;  %v5225_v3 = vpop.eup %4507  ;;  %2055 = vmatpush.bf16.msrb.mxu2 %v4170_v7  ;;  %v2418_v7 = vand.u32 2147483647, %v5211_v30  ;;  %vm2474_vm12 = vweird.f32 %v5221_v49 }
 0x15a   :  { %4511 = vpow2.f32 %v4259_v55  ;;  %v4510_v0 = vpop.eup %4509  ;;  %v4406_v55 = vld [vmem:[#allocation2 + $0x274] sm:$0xf0]  ;;  %v2410_v47 = vmul.f32 %v5225_v3, %v5211_v30  ;;  %2104 = vmatpush.bf16.msrb.mxu3 %v3662_v19  ;;  %vm2415_vm2 = vweird.f32 %v5225_v3 }
 0x15b   :  { %4513 = vrcp.f32 %v5219_v37  ;;  %vm5271_vm1 = vcmp.eq.f32.partialorder %v2418_v7, 8.507059e+37  ;;  %vm2718_vm4 = vweird.f32 %v5219_v37  ;;  %vm5293_vm5 = vmor %vm2414_vm0, %vm2415_vm2 }
 0x15c   :  { %v1680_v41 = vpop.f32.mrf.mxu2  ;;  %4515 = vrcp.f32 %v5221_v49 }
 0x15d   :  { %v1681_v42 = vadd.f32 %v1680_v41, %v1632_v13  ;;  %v1729_v40 = vpop.f32.mrf.mxu3  ;;  %v1585_v62 = vpop.f32.mrf.mxu0  ;;  %v4041_v13 = vld [vmem:[#allocation2 + $0x368] sm:$0xf]  ;;  %v4438_v41 = vld [vmem:[#allocation2 + $0x374] sm:$0xf0]  ;;  %4517 = vpow2.f32 %v4251_v52  ;;  %v2411_v52 = vsub.f32 1.0, %v2410_v47 }
 0x15e   :  { %v1586_v43 = vadd.f32 %v1585_v62, %v5114_v26  ;;  %v1634_v16 = vpop.f32.mrf.mxu1  ;;  %v3914_v26 = vor.u32 %v4406_v55, %v3913_v60  ;;  %v4042_v25 = vor.u32 %v4438_v41, %v4041_v13  ;;  %v5244_v60 = vadd.f32 1.0, %v4510_v0  ;;  %v6576_v41 = vld [vmem:[#allocation55_spill] sm:$0xff] }
 0x15f   :  { %v5229_v1 = vadd.f32 %v1729_v40, %v1681_v42  ;;  %v1635_v40 = vadd.f32 %v1634_v16, %v5098_v38 }
 0x160   :  { %v4512_v28 = vpop.eup %4511  ;;  %v4263_v14 = vmul.f32 -1.442695, %v1586_v43  ;;  %1780 = vmatmul.bf16.gmra.mxu0 %v4983_v27  ;;  %1829 = vmatmul.bf16.gmra.mxu1 %v5100_v53  ;;  %v3897_v53 = vld [vmem:[#allocation2 + $0x248] sm:$0xf] }
 0x161   :  { %6574 = vst [vmem:[#allocation62_spill] sm:$0xff] %v5229_v1  ;;  %v5234_v62 = vpop.eup %4513  ;;  %v5236_v42 = vadd.f32 1.0, %v4512_v28  ;;  %1878 = vmatmul.bf16.gmra.mxu2 %v4971_v22  ;;  %1957 = vmatpush.bf16.msrb.mxu0 %v3914_v26  ;;  %v4336_v1 = vld [vmem:[#allocation2 + $0x4c] sm:$0xf] }
 0x162   :  { %v2714_v43 = vmul.f32 %v5234_v62, %v5219_v37  ;;  %4519 = vpow2.f32 %v4263_v14  ;;  %1927 = vmatmul.bf16.gmra.mxu3 %v6575_v4  ;;  %2006 = vmatpush.bf16.msrb.mxu1 %v4042_v25  ;;  %v5247_v55 = vpop.eup %4515  ;;  %vm2719_vm3 = vweird.f32 %v5234_v62 }
 0x163   :  { %4521 = vrcp.f32 %v5236_v42  ;;  %v4518_v4 = vpop.eup %4517  ;;  %v5256_v47 = vmul.f32 %v5247_v55, %v5221_v49  ;;  %vm5302_vm6 = vmor %vm2718_vm4, %vm2719_vm3  ;;  %vm2475_vm8 = vweird.f32 %v5247_v55  ;;  %vm2778_vm10 = vweird.f32 %v5236_v42 }
 0x164   :  { %v1683_v16 = vpop.f32.mrf.mxu2  ;;  %v2715_v33 = vsub.f32 1.0, %v2714_v43  ;;  %4523 = vrcp.f32 %v5244_v60  ;;  %vm5359_vm13 = vmor %vm2474_vm12, %vm2475_vm8  ;;  %vm2534_vm4 = vweird.f32 %v5244_v60 }
 0x165   :  { %v1684_v18 = vadd.f32 %v1683_v16, %v1635_v40  ;;  %v1732_v28 = vpop.f32.mrf.mxu3  ;;  %v1587_v13 = vpop.f32.mrf.mxu0  ;;  %v2412_v40 = vmul.f32 %v5225_v3, %v2411_v52  ;;  %v2784_v52 = vand.u32 2147483648, %v5236_v42 }
 0x166   :  { %v1588_v14 = vadd.f32 %v1587_v13, %v6576_v41  ;;  %v1636_v58 = vpop.f32.mrf.mxu1  ;;  %v2716_v43 = vmul.f32 %v5234_v62, %v2715_v33  ;;  %v5264_v13 = vadd.f32 1.0, %v4518_v4  ;;  %v2420_v33 = vand.u32 2147483648, %v5211_v30 }
 0x167   :  { %v5251_v0 = vadd.f32 %v1732_v28, %v1684_v18  ;;  %v6578_v28 = vld [vmem:[#allocation50_spill] sm:$0xff]  ;;  %v2471_v4 = vsub.f32 1.0, %v5256_v47  ;;  %v2413_v22 = vadd.f32 %v5225_v3, %v2412_v40  ;;  %v2724_v47 = vand.u32 2147483648, %v5219_v37 }
 0x168   :  { %v4520_v26 = vpop.eup %4519  ;;  %v4267_v19 = vmul.f32 -1.442695, %v1588_v14  ;;  %v1637_v41 = vadd.f32 %v1636_v58, %v6578_v28  ;;  %v4153_v14 = vld [vmem:[#allocation2 + $0x448] sm:$0xf]  ;;  %v2717_v51 = vadd.f32 %v5234_v62, %v2716_v43  ;;  %v6589_v43 = vld [vmem:[#allocation26_spill] sm:$0xff]  ;;  %vm2594_vm12 = vweird.f32 %v5264_v13 }
 0x169   :  { %6577 = vst [vmem:[#allocation55_spill] sm:$0xff] %v5251_v0  ;;  %v5259_v25 = vpop.eup %4521  ;;  %v5262_v16 = vadd.f32 1.0, %v4520_v26  ;;  %v4466_v26 = vld [vmem:[#allocation2 + $0x454] sm:$0xf0]  ;;  %v2417_v30 = vsel %vm5293_vm5, %v5225_v3, %v2413_v22  ;;  %v2725_v22 = vor.u32 1.1754944e-38, %v2724_v47  ;;  %v2421_v3 = vor.u32 1.1754944e-38, %v2420_v33 }
 0x16a   :  { %v2774_v18 = vmul.f32 %v5259_v25, %v5236_v42  ;;  %4525 = vpow2.f32 %v4267_v19  ;;  %v4154_v19 = vor.u32 %v4466_v26, %v4153_v14  ;;  %v5279_v27 = vpop.eup %4523  ;;  %v3898_v26 = vor.u32 %v4402_v23, %v3897_v53 }
 0x16b   :  { %4527 = vrcp.f32 %v5262_v16  ;;  %v2530_v53 = vmul.f32 %v5279_v27, %v5244_v60  ;;  %v2422_v33 = vsel %vm5271_vm1, %v2421_v3, %v2417_v30  ;;  %vm2779_vm9 = vweird.f32 %v5259_v25 }
 0x16c   :  { %v1685_v38 = vpop.f32.mrf.mxu2  ;;  %v2775_v58 = vsub.f32 1.0, %v2774_v18  ;;  %4529 = vrcp.f32 %v5264_v13  ;;  %2056 = vmatpush.bf16.msrb.mxu2 %v4154_v19  ;;  %v2722_v18 = vand.u32 2147483647, %v5219_v37  ;;  %1958 = vmatpush.bf16.msrb.mxu0 %v3898_v26  ;;  %vm5347_vm11 = vmor %vm2778_vm10, %vm2779_vm9  ;;  %vm2535_vm1 = vweird.f32 %v5279_v27 }
 0x16d   :  { %v1686_v7 = vadd.f32 %v1685_v38, %v1637_v41  ;;  %v1734_v28 = vpop.f32.mrf.mxu3  ;;  %v1590_v0 = vpop.f32.mrf.mxu0  ;;  %vm2838_vm2 = vweird.f32 %v5262_v16  ;;  %vm5416_vm5 = vmor %vm2534_vm4, %vm2535_vm1 }
 0x16e   :  { %v1591_v40 = vadd.f32 %v1590_v0, %v5136_v63  ;;  %v1639_v14 = vpop.f32.mrf.mxu1  ;;  %v3646_v63 = vor.u32 %v4336_v1, %v3643_v15  ;;  %v4434_v0 = vld [vmem:[#allocation2 + $0x354] sm:$0xf0]  ;;  %v2776_v1 = vmul.f32 %v5259_v25, %v2775_v58  ;;  %v2472_v58 = vmul.f32 %v5247_v55, %v2471_v4  ;;  %v3273_v4 = vld [vmem:[%s6441_s1] sm:$0xff] }
 0x16f   :  { %v5287_v38 = vadd.f32 %v1734_v28, %v1686_v7  ;;  %v6586_v28 = vld [vmem:[#allocation29_spill] sm:$0xff]  ;;  %v4026_v37 = vor.u32 %v4434_v0, %v4025_v57  ;;  %v2721_v7 = vsel %vm5302_vm6, %v5234_v62, %v2717_v51  ;;  %vm2723_vm7 = vcmp.eq.f32.partialorder %v2722_v18, 8.507059e+37 }
 0x170   :  { %v4526_v41 = vpop.eup %4525  ;;  %4531 = vtanh.f32 %v1591_v40  ;;  %1785 = vmatmul.bf16.gmra.mxu0 %v6586_v28  ;;  %1834 = vmatmul.bf16.gmra.mxu1 %v6588_v61  ;;  %v6590_v40 = vld [vmem:[#allocation27_spill] sm:$0xff]  ;;  %v2478_v51 = vand.u32 2147483647, %v5221_v49  ;;  %v2480_v62 = vand.u32 2147483648, %v5221_v49  ;;  %v2726_v0 = vsel %vm2723_vm7, %v2725_v22, %v2721_v7 }
 0x171   :  { %6581 = vst [vmem:[#allocation63_spill] sm:$0xff] %v5287_v38  ;;  %v5310_v15 = vpop.eup %4527  ;;  %v5313_v19 = vadd.f32 1.0, %v4526_v41  ;;  %v6587_v38 = vld [vmem:[#allocation53_spill] sm:$0xff]  ;;  %1883 = vmatmul.bf16.gmra.mxu2 %v6589_v43  ;;  %2105 = vmatpush.bf16.msrb.mxu3 %v3646_v63  ;;  %v2531_v18 = vsub.f32 1.0, %v2530_v53  ;;  %v2473_v7 = vadd.f32 %v5247_v55, %v2472_v58  ;;  %v3289_v3 = vmul.f32 %v3273_v4, %v2726_v0 }
 0x172   :  { %v1640_v21 = vadd.f32 %v1639_v14, %v6587_v38  ;;  %v2834_v57 = vmul.f32 %v5310_v15, %v5262_v16  ;;  %1932 = vmatmul.bf16.gmra.mxu3 %v6590_v40  ;;  %2007 = vmatpush.bf16.msrb.mxu1 %v4026_v37  ;;  %v5328_v14 = vpop.eup %4529  ;;  %v2777_v37 = vadd.f32 %v5259_v25, %v2776_v1  ;;  %vm5363_vm14 = vcmp.eq.f32.partialorder %v2478_v51, 8.507059e+37 }
 0x173   :  { %4533 = vrcp.f32 %v5313_v19  ;;  %v2532_v49 = vmul.f32 %v5279_v27, %v2531_v18  ;;  %v2785_v0 = vor.u32 1.1754944e-38, %v2784_v52  ;;  %v2477_v51 = vsel %vm5359_vm13, %v5247_v55, %v2473_v7 }
 0x174   :  { %v2835_v47 = vsub.f32 1.0, %v2834_v57  ;;  %v1688_v26 = vpop.f32.mrf.mxu2  ;;  %vm2839_vm0 = vweird.f32 %v5310_v15  ;;  %v2844_v1 = vand.u32 2147483648, %v5262_v16  ;;  %vm2595_vm8 = vweird.f32 %v5328_v14 }
 0x175   :  { %v1689_v41 = vadd.f32 %v1688_v26, %v1640_v21  ;;  %v1737_v63 = vpop.f32.mrf.mxu3  ;;  %v1592_v23 = vpop.f32.mrf.mxu0  ;;  %v2782_v21 = vand.u32 2147483647, %v5236_v42  ;;  %vm5395_vm3 = vmor %vm2838_vm2, %vm2839_vm0  ;;  %vm2898_vm10 = vweird.f32 %v5313_v19 }
 0x176   :  { %v4532_v57 = vpop.eup %4531  ;;  %v1593_v30 = vadd.f32 %v1592_v23, %v5143_v48  ;;  %v1641_v22 = vpop.f32.mrf.mxu1  ;;  %v2836_v26 = vmul.f32 %v5310_v15, %v2835_v47  ;;  %v2781_v47 = vsel %vm5347_vm11, %v5259_v25, %v2777_v37  ;;  %v2538_v25 = vand.u32 2147483647, %v5244_v60  ;;  %v3277_v23 = vld [vmem:[%s6441_s1 + $0x20] sm:$0xff]  ;;  %vm5458_vm13 = vmor %vm2594_vm12, %vm2595_vm8 }
 0x177   :  { %v3305_v40 = vmul.f32 %v4532_v57, %v2422_v33  ;;  %v5342_v53 = vadd.f32 %v1737_v63, %v1689_v41  ;;  %v2481_v41 = vor.u32 1.1754944e-38, %v2480_v62  ;;  %vm2783_vm15 = vcmp.eq.f32.partialorder %v2782_v21, 8.507059e+37 }
 0x178   :  { %4535 = vtanh.f32 %v1593_v30  ;;  %v1642_v63 = vadd.f32 %v1641_v22, %v5133_v31  ;;  %v2786_v18 = vsel %vm2783_vm15, %v2785_v0, %v2781_v47  ;;  %v2837_v55 = vadd.f32 %v5310_v15, %v2836_v26 }
 0x179   :  { %v5353_v48 = vpop.eup %4533  ;;  %v5355_v58 = vadd.f32 %v3305_v40, %v3289_v3  ;;  %v2590_v40 = vmul.f32 %v5328_v14, %v5264_v13  ;;  %v2482_v62 = vsel %vm5363_vm14, %v2481_v41, %v2477_v51  ;;  %v2533_v22 = vadd.f32 %v5279_v27, %v2532_v49 }
 0x17a   :  { %v2894_v4 = vmul.f32 %v5353_v48, %v5313_v19  ;;  %v3293_v42 = vmul.f32 %v3277_v23, %v2786_v18  ;;  %v2842_v49 = vand.u32 2147483647, %v5262_v16  ;;  %v2841_v51 = vsel %vm5395_vm3, %v5310_v15, %v2837_v55  ;;  %v6600_v18 = vld [vmem:[#allocation57_spill] sm:$0xff]  ;;  %v6602_v16 = vld [vmem:[#allocation30_spill] sm:$0xff]  ;;  %v6605_v55 = vld [vmem:[#allocation31_spill] sm:$0xff] }
 0x17b   :  { %3369 = vst [vmem:[#allocation8] sm:$0xff] %v5355_v58  ;;  %v2591_v21 = vsub.f32 1.0, %v2590_v40  ;;  %v2540_v40 = vand.u32 2147483648, %v5244_v60  ;;  %v2537_v60 = vsel %vm5416_vm5, %v5279_v27, %v2533_v22  ;;  %vm5426_vm6 = vcmp.eq.f32.partialorder %v2538_v25, 8.507059e+37 }
 0x17c   :  { %v1690_v37 = vpop.f32.mrf.mxu2  ;;  %v2895_v57 = vsub.f32 1.0, %v2894_v4  ;;  %vm2843_vm7 = vcmp.eq.f32.partialorder %v2842_v49, 8.507059e+37  ;;  %vm2899_vm9 = vweird.f32 %v5353_v48  ;;  %v2904_v27 = vand.u32 2147483648, %v5313_v19 }
 0x17d   :  { %v1691_v52 = vadd.f32 %v1690_v37, %v1642_v63  ;;  %v1739_v30 = vpop.f32.mrf.mxu3  ;;  %v1595_v7 = vpop.f32.mrf.mxu0  ;;  %v6601_v37 = vld [vmem:[#allocation58_spill] sm:$0xff]  ;;  %vm5448_vm11 = vmor %vm2898_vm10, %vm2899_vm9 }
 0x17e   :  { %v4536_v3 = vpop.eup %4535  ;;  %v1596_v33 = vadd.f32 %v1595_v7, %v5152_v34  ;;  %v1644_v47 = vpop.f32.mrf.mxu1  ;;  %v6599_v34 = vld [vmem:[#allocation33_spill] sm:$0xff]  ;;  %v2896_v41 = vmul.f32 %v5353_v48, %v2895_v57  ;;  %v2592_v57 = vmul.f32 %v5328_v14, %v2591_v21  ;;  %v2600_v21 = vand.u32 2147483648, %v5264_v13 }
 0x17f   :  { %v3309_v0 = vmul.f32 %v4536_v3, %v2482_v62  ;;  %v5399_v4 = vadd.f32 %v1739_v30, %v1691_v52  ;;  %v1645_v23 = vadd.f32 %v1644_v47, %v6600_v18  ;;  %v2845_v62 = vor.u32 1.1754944e-38, %v2844_v1  ;;  %v3281_v3 = vld [vmem:[%s6441_s1 + $0x40] sm:$0xff] }
 0x180   :  { %4537 = vtanh.f32 %v1596_v33  ;;  %1790 = vmatmul.bf16.gmra.mxu0 %v6599_v34  ;;  %1839 = vmatmul.bf16.gmra.mxu1 %v6601_v37  ;;  %v2541_v30 = vor.u32 1.1754944e-38, %v2540_v40  ;;  %v2897_v47 = vadd.f32 %v5353_v48, %v2896_v41  ;;  %v2593_v49 = vadd.f32 %v5328_v14, %v2592_v57 }
 0x181   :  { %v5408_v63 = vadd.f32 %v3309_v0, %v3293_v42  ;;  %1888 = vmatmul.bf16.gmra.mxu2 %v6602_v16  ;;  %v2846_v7 = vsel %vm2843_vm7, %v2845_v62, %v2841_v51 }
 0x182   :  { %1937 = vmatmul.bf16.gmra.mxu3 %v6605_v55  ;;  %v2542_v42 = vsel %vm5426_vm6, %v2541_v30, %v2537_v60  ;;  %v3297_v51 = vmul.f32 %v3281_v3, %v2846_v7  ;;  %v2598_v60 = vand.u32 2147483647, %v5264_v13  ;;  %v2901_v30 = vsel %vm5448_vm11, %v5353_v48, %v2897_v47  ;;  %v3285_v7 = vld [vmem:[%s6441_s1 + $0x60] sm:$0xff]  ;;  %v4137_v13 = vld [vmem:[#allocation2 + $0x428] sm:$0xf] }
 0x183   :  { %3373 = vst [vmem:[#allocation8 + $0x20] sm:$0xff] %v5408_v63  ;;  %v4462_v3 = vld [vmem:[#allocation2 + $0x434] sm:$0xf0] }
 0x184   :  { %v1693_v1 = vpop.f32.mrf.mxu2  ;;  %vm2599_vm15 = vcmp.eq.f32.partialorder %v2598_v60, 8.507059e+37  ;;  %v4394_v60 = vld [vmem:[#allocation2 + $0x214] sm:$0xf0] }
 0x185   :  { %v1694_v25 = vadd.f32 %v1693_v1, %v1645_v23  ;;  %v1742_v22 = vpop.f32.mrf.mxu3  ;;  %v1597_v33 = vpop.f32.mrf.mxu0  ;;  %v2902_v23 = vand.u32 2147483647, %v5313_v19  ;;  %v2601_v19 = vor.u32 1.1754944e-38, %v2600_v21  ;;  %v3881_v1 = vld [vmem:[#allocation2 + $0x228] sm:$0xf] }
 0x186   :  { %v4538_v26 = vpop.eup %4537  ;;  %v1598_v0 = vadd.f32 %v1597_v33, %v5157_v8  ;;  %v1646_v40 = vpop.f32.mrf.mxu1  ;;  %v2905_v8 = vor.u32 1.1754944e-38, %v2904_v27  ;;  %v2597_v27 = vsel %vm5458_vm13, %v5328_v14, %v2593_v49  ;;  %v4332_v33 = vld [vmem:[#allocation2 + $0x2c] sm:$0xf] }
 0x187   :  { %v3313_v62 = vmul.f32 %v4538_v26, %v2542_v42  ;;  %v5443_v15 = vadd.f32 %v1742_v22, %v1694_v25  ;;  %vm2903_vm14 = vcmp.eq.f32.partialorder %v2902_v23, 8.507059e+37  ;;  %v1647_v21 = vadd.f32 %v1646_v40, %v5149_v46  ;;  %v4398_v22 = vld [vmem:[#allocation2 + $0x234] sm:$0xf0]  ;;  %v3627_v42 = vld [vmem:[#allocation2 + $0x38] sm:$0xf0] }
 0x188   :  { %4539 = vtanh.f32 %v1598_v0  ;;  %v4138_v25 = vor.u32 %v4462_v3, %v4137_v13  ;;  %v2906_v48 = vsel %vm2903_vm14, %v2905_v8, %v2901_v30  ;;  %v3882_v26 = vor.u32 %v4398_v22, %v3881_v1  ;;  %v4009_v0 = vld [vmem:[#allocation2 + $0x328] sm:$0xf]  ;;  %v4458_v8 = vld [vmem:[#allocation2 + $0x414] sm:$0xf0] }
 0x189   :  { %v5454_v57 = vadd.f32 %v3313_v62, %v3297_v51  ;;  %v4430_v51 = vld [vmem:[#allocation2 + $0x334] sm:$0xf0]  ;;  %v3630_v18 = vor.u32 %v4332_v33, %v3627_v42  ;;  %v2602_v49 = vsel %vm2599_vm15, %v2601_v19, %v2597_v27  ;;  %v4121_v13 = vld [vmem:[#allocation2 + $0x408] sm:$0xf]  ;;  %v3301_v3 = vmul.f32 %v3285_v7, %v2906_v48 }
 0x18a   :  { %2057 = vmatpush.bf16.msrb.mxu2 %v4138_v25  ;;  %v4010_v52 = vor.u32 %v4430_v51, %v4009_v0  ;;  %1959 = vmatpush.bf16.msrb.mxu0 %v3882_v26  ;;  %v3865_v30 = vld [vmem:[#allocation2 + $0x208] sm:$0xf]  ;;  %v3611_v25 = vld [vmem:[#allocation2 + $0x18] sm:$0xf0]  ;;  %v4122_v19 = vor.u32 %v4458_v8, %v4121_v13  ;;  %v4426_v26 = vld [vmem:[#allocation2 + $0x314] sm:$0xf0] }
 0x18b   :  { %3377 = vst [vmem:[#allocation8 + $0x40] sm:$0xff] %v5454_v57  ;;  %2106 = vmatpush.bf16.msrb.mxu3 %v3630_v18  ;;  %v3866_v27 = vor.u32 %v4394_v60, %v3865_v30  ;;  %v6614_v8 = vld [vmem:[#allocation51_spill] sm:$0xff] }
 0x18c   :  { %v1695_v47 = vpop.f32.mrf.mxu2  ;;  %2008 = vmatpush.bf16.msrb.mxu1 %v4010_v52 }
 0x18d   :  { %v1696_v62 = vadd.f32 %v1695_v47, %v1647_v21  ;;  %v1744_v41 = vpop.f32.mrf.mxu3  ;;  %v1600_v55 = vpop.f32.mrf.mxu0  ;;  %v4328_v21 = vld [vmem:[#allocation2 + $0xc] sm:$0xf]  ;;  %v6612_v47 = vld [vmem:[#allocation36_spill] sm:$0xff] }
 0x18e   :  { %v4540_v14 = vpop.eup %4539  ;;  %v1601_v40 = vadd.f32 %v1600_v55, %v5164_v54  ;;  %v1649_v23 = vpop.f32.mrf.mxu1  ;;  %v3614_v54 = vor.u32 %v4328_v21, %v3611_v25  ;;  %v3993_v55 = vld [vmem:[#allocation2 + $0x308] sm:$0xf]  ;;  %2058 = vmatpush.bf16.msrb.mxu2 %v4122_v19  ;;  %1960 = vmatpush.bf16.msrb.mxu0 %v3866_v27 }
 0x18f   :  { %v3317_v1 = vmul.f32 %v4540_v14, %v2602_v49  ;;  %v5474_v22 = vadd.f32 %v1744_v41, %v1696_v62  ;;  %v1650_v7 = vadd.f32 %v1649_v23, %v5116_v44  ;;  %v3994_v18 = vor.u32 %v4426_v26, %v3993_v55  ;;  %v6613_v41 = vld [vmem:[#allocation60_spill] sm:$0xff] }
 0x190   :  { %v4271_v33 = vmul.f32 -1.442695, %v1601_v40  ;;  %1795 = vmatmul.bf16.gmra.mxu0 %v6612_v47  ;;  %1844 = vmatmul.bf16.gmra.mxu1 %v5154_v45  ;;  %v6615_v55 = vld [vmem:[#allocation40_spill] sm:$0xff] }
 0x191   :  { %v5477_v42 = vadd.f32 %v3317_v1, %v3301_v3  ;;  %1893 = vmatmul.bf16.gmra.mxu2 %v5028_v5  ;;  %2107 = vmatpush.bf16.msrb.mxu3 %v3614_v54 }
 0x192   :  { %4541 = vpow2.f32 %v4271_v33  ;;  %1942 = vmatmul.bf16.gmra.mxu3 %v5030_v6  ;;  %2009 = vmatpush.bf16.msrb.mxu1 %v3994_v18  ;;  %v6616_v18 = vld [vmem:[#allocation52_spill] sm:$0xff]  ;;  %v4484_v6 = vld [vmem:[#allocation2 + $0x4ec] sm:$0xf] }
 0x193   :  { %3381 = vst [vmem:[#allocation8 + $0x60] sm:$0xff] %v5477_v42 }
 0x194   :  { %v1698_v48 = vpop.f32.mrf.mxu2 }
 0x195   :  { %v1699_v0 = vadd.f32 %v1698_v48, %v1650_v7  ;;  %v1747_v51 = vpop.f32.mrf.mxu3  ;;  %v1602_v62 = vpop.f32.mrf.mxu0 }
 0x196   :  { %v1603_v52 = vadd.f32 %v1602_v62, %v6613_v41  ;;  %v1651_v14 = vpop.f32.mrf.mxu1  ;;  %v6619_v41 = vld [vmem:[#allocation38_spill] sm:$0xff] }
 0x197   :  { %v5485_v49 = vadd.f32 %v1747_v51, %v1699_v0  ;;  %v1652_v30 = vadd.f32 %v1651_v14, %v6614_v8  ;;  %v6617_v0 = vld [vmem:[#allocation59_spill] sm:$0xff]  ;;  %v6618_v51 = vld [vmem:[#allocation37_spill] sm:$0xff] }
 0x198   :  { %v4542_v40 = vpop.eup %4541  ;;  %v4275_v23 = vmul.f32 -1.442695, %v1603_v52 }
 0x199   :  { %v3017_v13 = vadd.f32 1.0, %v4542_v40 }
 0x19a   :  { %4543 = vpow2.f32 %v4275_v23 }
 0x19b   :  { %4545 = vrcp.f32 %v3017_v13  ;;  %v3042_v14 = vand.u32 2147483647, %v3017_v13  ;;  %v3044_v40 = vand.u32 2147483648, %v3017_v13  ;;  %vm3038_vm1 = vweird.f32 %v3017_v13 }
 0x19c   :  { %v1700_v3 = vpop.f32.mrf.mxu2 }
 0x19d   :  { %v1701_v1 = vadd.f32 %v1700_v3, %v1652_v30  ;;  %v1749_v60 = vpop.f32.mrf.mxu3  ;;  %v1605_v21 = vpop.f32.mrf.mxu0  ;;  %vm3043_vm3 = vcmp.eq.f32.partialorder %v3042_v14, 8.507059e+37 }
 0x19e   :  { %v1606_v25 = vadd.f32 %v1605_v21, %v5176_v39  ;;  %v1654_v33 = vpop.f32.mrf.mxu1 }
 0x19f   :  { %v5489_v19 = vadd.f32 %v1749_v60, %v1701_v1  ;;  %v1655_v48 = vadd.f32 %v1654_v33, %v6616_v18  ;;  %v4107_v33 = vld [vmem:[#allocation2 + $0x3f8] sm:$0xf0] }
 0x1a0   :  { %v4544_v27 = vpop.eup %4543  ;;  %v4279_v54 = vmul.f32 -1.442695, %v1606_v25  ;;  %1800 = vmatmul.bf16.gmra.mxu0 %v6615_v55  ;;  %1849 = vmatmul.bf16.gmra.mxu1 %v6617_v0  ;;  %v4452_v25 = vld [vmem:[#allocation2 + $0x3ec] sm:$0xf]  ;;  %v3979_v55 = vld [vmem:[#allocation2 + $0x2f8] sm:$0xf0] }
 0x1a1   :  { %v4546_v26 = vpop.eup %4545  ;;  %v5492_v7 = vadd.f32 1.0, %v4544_v27  ;;  %1898 = vmatmul.bf16.gmra.mxu2 %v6618_v51  ;;  %v4388_v27 = vld [vmem:[#allocation2 + $0x1ec] sm:$0xf] }
 0x1a2   :  { %v3034_v62 = vmul.f32 %v4546_v26, %v3017_v13  ;;  %4547 = vpow2.f32 %v4279_v54  ;;  %1947 = vmatmul.bf16.gmra.mxu3 %v6619_v41  ;;  %vm3039_vm0 = vweird.f32 %v4546_v26  ;;  %v3851_v41 = vld [vmem:[#allocation2 + $0x1f8] sm:$0xf0] }
 0x1a3   :  { %4549 = vrcp.f32 %v5492_v7  ;;  %vm3040_vm2 = vmor %vm3038_vm1, %vm3039_vm0  ;;  %vm3098_vm5 = vweird.f32 %v5492_v7 }
 0x1a4   :  { %v3035_v39 = vsub.f32 1.0, %v3034_v62  ;;  %v1703_v52 = vpop.f32.mrf.mxu2  ;;  %4551 = vtanh.f32 %v5355_v58  ;;  %v4110_v62 = vor.u32 %v4452_v25, %v4107_v33  ;;  %v4235_v58 = vld [vmem:[#allocation2 + $0x4f8] sm:$0xf0]  ;;  %v3102_v25 = vand.u32 2147483647, %v5492_v7 }
 0x1a5   :  { %v1704_v23 = vadd.f32 %v1703_v52, %v1655_v48  ;;  %v1752_v30 = vpop.f32.mrf.mxu3  ;;  %v1607_v3 = vpop.f32.mrf.mxu0  ;;  %v3854_v52 = vor.u32 %v4388_v27, %v3851_v41  ;;  %v4238_v0 = vor.u32 %v4484_v6, %v4235_v58 }
 0x1a6   :  { %v3036_v1 = vmul.f32 %v4546_v26, %v3035_v39  ;;  %v1608_v60 = vadd.f32 %v1607_v3, %v5178_v56  ;;  %v1656_v21 = vpop.f32.mrf.mxu1  ;;  %v4420_v39 = vld [vmem:[#allocation2 + $0x2ec] sm:$0xf]  ;;  %v3045_v56 = vor.u32 1.1754944e-38, %v3044_v40  ;;  %2247 = vmatpush.bf16.msra.mxu2 %v4110_v62  ;;  %vm3103_vm7 = vcmp.eq.f32.partialorder %v3102_v25, 8.507059e+37 }
 0x1a7   :  { %v5501_v54 = vadd.f32 %v1752_v30, %v1704_v23  ;;  %v3982_v13 = vor.u32 %v4420_v39, %v3979_v55  ;;  %2149 = vmatpush.bf16.msra.mxu0 %v3854_v52  ;;  %2296 = vmatpush.bf16.msra.mxu3 %v4238_v0  ;;  %v1657_v6 = vadd.f32 %v1656_v21, %v5130_v35  ;;  %v3104_v55 = vand.u32 2147483648, %v5492_v7 }
 0x1a8   :  { %v4548_v18 = vpop.eup %4547  ;;  %v3037_v51 = vadd.f32 %v4546_v26, %v3036_v1  ;;  %v4283_v48 = vmul.f32 -1.442695, %v1608_v60 }
 0x1a9   :  { %v4550_v8 = vpop.eup %4549  ;;  %v5504_v3 = vadd.f32 1.0, %v4548_v18  ;;  %2198 = vmatpush.bf16.msra.mxu1 %v3982_v13 }
 0x1aa   :  { %v3041_v23 = vsel %vm3040_vm2, %v4546_v26, %v3037_v51  ;;  %v3094_v30 = vmul.f32 %v4550_v8, %v5492_v7  ;;  %4553 = vpow2.f32 %v4283_v48  ;;  %v4552_v1 = vpop.eup %4551  ;;  %vm3099_vm4 = vweird.f32 %v4550_v8 }
 0x1ab   :  { %v3046_v41 = vsel %vm3043_vm3, %v3045_v56, %v3041_v23  ;;  %4555 = vrcp.f32 %v5504_v3  ;;  %vm3100_vm6 = vmor %vm3098_vm5, %vm3099_vm4  ;;  %v3105_v48 = vor.u32 1.1754944e-38, %v3104_v55  ;;  %vm3158_vm9 = vweird.f32 %v5504_v3 }
 0x1ac   :  { %v3353_v60 = vmul.f32 %v4552_v1, %v3046_v41  ;;  %v3095_v40 = vsub.f32 1.0, %v3094_v30  ;;  %v1705_v18 = vpop.f32.mrf.mxu2  ;;  %4557 = vtanh.f32 %v5408_v63  ;;  %v6620_v63 = vld [vmem:[#allocation15_spill] sm:$0xff]  ;;  %v3162_v41 = vand.u32 2147483647, %v5504_v3 }
 0x1ad   :  { %v1706_v26 = vadd.f32 %v1705_v18, %v1657_v6  ;;  %v1754_v51 = vpop.f32.mrf.mxu3  ;;  %v5511_v14 = vpop.f32.mrf.mxu0  ;;  %v3164_v6 = vand.u32 2147483648, %v5504_v3 }
 0x1ae   :  { %3385 = vst [vmem:[#allocation7] sm:$0xff] %v3353_v60  ;;  %v3096_v0 = vmul.f32 %v4550_v8, %v3095_v40  ;;  %v5514_v33 = vpop.f32.mrf.mxu1  ;;  %v6621_v60 = vld [vmem:[#allocation41_spill] sm:$0xff]  ;;  %vm3163_vm11 = vcmp.eq.f32.partialorder %v3162_v41, 8.507059e+37 }
 0x1af   :  { %v5516_v21 = vadd.f32 %v1754_v51, %v1706_v26  ;;  %v4448_v26 = vld [vmem:[#allocation2 + $0x3cc] sm:$0xf]  ;;  %v4091_v51 = vld [vmem:[#allocation2 + $0x3d8] sm:$0xf0] }
 0x1b0   :  { %v4554_v27 = vpop.eup %4553  ;;  %v3097_v62 = vadd.f32 %v4550_v8, %v3096_v0  ;;  %1961 = vmatmul.bf16.vlgmr.msrb.gmra.mxu0 %v6620_v63  ;;  %2010 = vmatmul.bf16.vlgmr.msrb.gmra.mxu1 %v4917_v59  ;;  %v4094_v25 = vor.u32 %v4448_v26, %v4091_v51 }
 0x1b1   :  { %v4556_v58 = vpop.eup %4555  ;;  %v5520_v52 = vadd.f32 1.0, %v4554_v27  ;;  %2059 = vmatmul.bf16.vlgmr.msrb.gmra.mxu2 %v5054_v12  ;;  %v3835_v27 = vld [vmem:[#allocation2 + $0x1d8] sm:$0xf0] }
 0x1b2   :  { %v3101_v39 = vsel %vm3100_vm6, %v4550_v8, %v3097_v62  ;;  %v3154_v56 = vmul.f32 %v4556_v58, %v5504_v3  ;;  %2108 = vmatmul.bf16.vlgmr.msrb.gmra.mxu3 %v4911_v50  ;;  %v4558_v13 = vpop.eup %4557  ;;  %vm3159_vm8 = vweird.f32 %v4556_v58  ;;  %v4480_v62 = vld [vmem:[#allocation2 + $0x4cc] sm:$0xf]  ;;  %2248 = vmatpush.bf16.msra.mxu2 %v4094_v25 }
 0x1b3   :  { %v3106_v23 = vsel %vm3103_vm7, %v3105_v48, %v3101_v39  ;;  %4559 = vrcp.f32 %v5520_v52  ;;  %vm3160_vm10 = vmor %vm3158_vm9, %vm3159_vm8  ;;  %v3222_v41 = vand.u32 2147483647, %v5520_v52  ;;  %vm3218_vm13 = vweird.f32 %v5520_v52 }
 0x1b4   :  { %v3357_v7 = vmul.f32 %v4558_v13, %v3106_v23  ;;  %v3155_v30 = vsub.f32 1.0, %v3154_v56  ;;  %v1864_v1 = vpop.f32.mrf.mxu2  ;;  %4561 = vtanh.f32 %v5454_v57  ;;  %v4384_v57 = vld [vmem:[#allocation2 + $0x1cc] sm:$0xf]  ;;  %v4219_v56 = vld [vmem:[#allocation2 + $0x4d8] sm:$0xf0] }
 0x1b5   :  { %v1865_v8 = vadd.f32 %v1864_v1, %v6621_v60  ;;  %v1913_v40 = vpop.f32.mrf.mxu3  ;;  %v5531_v18 = vpop.f32.mrf.mxu0  ;;  %v3838_v39 = vor.u32 %v4384_v57, %v3835_v27  ;;  %v4416_v13 = vld [vmem:[#allocation2 + $0x2cc] sm:$0xf]  ;;  %v3963_v23 = vld [vmem:[#allocation2 + $0x2d8] sm:$0xf0]  ;;  %v4222_v1 = vor.u32 %v4480_v62, %v4219_v56  ;;  %4563 = vtanh.f32 %v5477_v42 }
 0x1b6   :  { %3389 = vst [vmem:[#allocation7 + $0x20] sm:$0xff] %v3357_v7  ;;  %v3156_v50 = vmul.f32 %v4556_v58, %v3155_v30  ;;  %v5533_v55 = vpop.f32.mrf.mxu1  ;;  %v3165_v30 = vor.u32 1.1754944e-38, %v3164_v6  ;;  %v3966_v60 = vor.u32 %v4416_v13, %v3963_v23  ;;  %v3224_v27 = vand.u32 2147483648, %v5520_v52  ;;  %v6623_v56 = vld [vmem:[#allocation17_spill] sm:$0xff] }
 0x1b7   :  { %v5535_v0 = vadd.f32 %v1913_v40, %v1865_v8  ;;  %2150 = vmatpush.bf16.msra.mxu0 %v3838_v39  ;;  %2297 = vmatpush.bf16.msra.mxu3 %v4222_v1  ;;  %vm3223_vm15 = vcmp.eq.f32.partialorder %v3222_v41, 8.507059e+37  ;;  %v1767_v23 = vadd.f32 %v5511_v14, %v5185_v24  ;;  %v4444_v24 = vld [vmem:[#allocation2 + $0x3ac] sm:$0xf] }
 0x1b8   :  { %v3157_v48 = vadd.f32 %v4556_v58, %v3156_v50  ;;  %2199 = vmatpush.bf16.msra.mxu1 %v3966_v60  ;;  %v3225_v42 = vor.u32 1.1754944e-38, %v3224_v27  ;;  %v4380_v14 = vld [vmem:[#allocation2 + $0x1ac] sm:$0xf] }
 0x1b9   :  { %v4560_v7 = vpop.eup %4559 }
 0x1ba   :  { %v3161_v8 = vsel %vm3160_vm10, %v4556_v58, %v3157_v48  ;;  %v3214_v40 = vmul.f32 %v4560_v7, %v5520_v52  ;;  %v4562_v26 = vpop.eup %4561  ;;  %vm3219_vm12 = vweird.f32 %v4560_v7 }
 0x1bb   :  { %v3166_v50 = vsel %vm3163_vm11, %v3165_v30, %v3161_v8  ;;  %vm3220_vm14 = vmor %vm3218_vm13, %vm3219_vm12  ;;  %v4564_v30 = vpop.eup %4563 }
 0x1bc   :  { %v3361_v3 = vmul.f32 %v4562_v26, %v3166_v50  ;;  %v3215_v51 = vsub.f32 1.0, %v3214_v40  ;;  %v1866_v57 = vpop.f32.mrf.mxu2 }
 0x1bd   :  { %v1867_v6 = vadd.f32 %v1866_v57, %v5061_v20  ;;  %v1915_v25 = vpop.f32.mrf.mxu3  ;;  %v1771_v62 = vpop.f32.mrf.mxu0 }
 0x1be   :  { %3393 = vst [vmem:[#allocation7 + $0x40] sm:$0xff] %v3361_v3  ;;  %v3216_v58 = vmul.f32 %v4560_v7, %v3215_v51  ;;  %v1820_v48 = vpop.f32.mrf.mxu1  ;;  %v1816_v3 = vadd.f32 %v5514_v33, %v1767_v23 }
 0x1bf   :  { %v5544_v39 = vadd.f32 %v1915_v25, %v1867_v6  ;;  %v3819_v6 = vld [vmem:[#allocation2 + $0x1b8] sm:$0xf0]  ;;  %v4476_v25 = vld [vmem:[#allocation2 + $0x4ac] sm:$0xf] }
 0x1c0   :  { %v3217_v60 = vadd.f32 %v4560_v7, %v3216_v58  ;;  %1966 = vmatmul.bf16.gmra.mxu0 %v6623_v56  ;;  %2015 = vmatmul.bf16.gmra.mxu1 %v4938_v32  ;;  %v4203_v58 = vld [vmem:[#allocation2 + $0x4b8] sm:$0xf0]  ;;  %v4240_v41 = vmul.f32 -1.442695, %v1816_v3  ;;  %v1772_v3 = vadd.f32 %v1771_v62, %v5198_v10 }
 0x1c1   :  { %6622 = vst [vmem:[#allocation29_spill] sm:$0xff] %v5544_v39  ;;  %2064 = vmatmul.bf16.gmra.mxu2 %v5068_v11  ;;  %v6647_v39 = vld [vmem:[#allocation28_spill] sm:$0xff] }
 0x1c2   :  { %v3221_v13 = vsel %vm3220_vm14, %v4560_v7, %v3217_v60  ;;  %2113 = vmatmul.bf16.gmra.mxu3 %v4932_v29  ;;  %v1769_v7 = vadd.f32 %v5531_v18, %v5188_v9  ;;  %v4075_v29 = vld [vmem:[#allocation2 + $0x3b8] sm:$0xf0]  ;;  %v3822_v60 = vor.u32 %v4380_v14, %v3819_v6  ;;  %4565 = vpow2.f32 %v4240_v41  ;;  %v6628_v14 = vld [vmem:[#allocation46_spill] sm:$0xff] }
 0x1c3   :  { %v3226_v1 = vsel %vm3223_vm15, %v3225_v42, %v3221_v13  ;;  %v4078_v27 = vor.u32 %v4444_v24, %v4075_v29  ;;  %v4206_v42 = vor.u32 %v4476_v25, %v4203_v58  ;;  %v4412_v13 = vld [vmem:[#allocation2 + $0x2ac] sm:$0xf]  ;;  %v6627_v29 = vld [vmem:[#allocation21_spill] sm:$0xff]  ;;  %v6629_v6 = vld [vmem:[#allocation18_spill] sm:$0xff]  ;;  %v1821_v25 = vadd.f32 %v1820_v48, %v1772_v3 }
 0x1c4   :  { %v3365_v8 = vmul.f32 %v4564_v30, %v3226_v1  ;;  %v1869_v40 = vpop.f32.mrf.mxu2  ;;  %v3947_v30 = vld [vmem:[#allocation2 + $0x2b8] sm:$0xf0]  ;;  %v1818_v33 = vadd.f32 %v5533_v55, %v1769_v7  ;;  %2151 = vmatpush.bf16.msra.mxu0 %v3822_v60  ;;  %v6626_v7 = vld [vmem:[#allocation20_spill] sm:$0xff] }
 0x1c5   :  { %v1870_v52 = vadd.f32 %v1869_v40, %v5066_v2  ;;  %v1918_v26 = vpop.f32.mrf.mxu3  ;;  %v1773_v50 = vpop.f32.mrf.mxu0  ;;  %2249 = vmatpush.bf16.msra.mxu2 %v4078_v27  ;;  %v3950_v23 = vor.u32 %v4412_v13, %v3947_v30  ;;  %2298 = vmatpush.bf16.msra.mxu3 %v4206_v42  ;;  %v6630_v41 = vld [vmem:[#allocation45_spill] sm:$0xff]  ;;  %v6631_v42 = vld [vmem:[#allocation62_spill] sm:$0xff] }
 0x1c6   :  { %3397 = vst [vmem:[#allocation7 + $0x60] sm:$0xff] %v3365_v8  ;;  %v5555_v51 = vpop.f32.mrf.mxu1  ;;  %v4059_v48 = vld [vmem:[#allocation2 + $0x398] sm:$0xf0] }
 0x1c7   :  { %v5559_v57 = vadd.f32 %v1918_v26, %v1870_v52  ;;  %2200 = vmatpush.bf16.msra.mxu1 %v3950_v23  ;;  %v4244_v26 = vmul.f32 -1.442695, %v1818_v33  ;;  %v4248_v23 = vmul.f32 -1.442695, %v1821_v25  ;;  %v3931_v2 = vld [vmem:[#allocation2 + $0x298] sm:$0xf0] }
 0x1c8   :  { %v4566_v58 = vpop.eup %4565 }
 0x1c9   :  { %6624 = vst [vmem:[#allocation53_spill] sm:$0xff] %v5559_v57  ;;  %4567 = vpow2.f32 %v4244_v26  ;;  %v5573_v33 = vadd.f32 1.0, %v4566_v58  ;;  %v4408_v58 = vld [vmem:[#allocation2 + $0x28c] sm:$0xf] }
 0x1ca   :  { %v4368_v57 = vld [vmem:[#allocation2 + $0x14c] sm:$0xf] }
 0x1cb   :  { %vm2429_vm0 = vweird.f32 %v5573_v33 }
 0x1cc   :  { %v1871_v1 = vpop.f32.mrf.mxu2 }
 0x1cd   :  { %v1872_v9 = vadd.f32 %v1871_v1, %v5077_v36  ;;  %v1920_v18 = vpop.f32.mrf.mxu3  ;;  %v1776_v8 = vpop.f32.mrf.mxu0  ;;  %v6632_v1 = vld [vmem:[#allocation61_spill] sm:$0xff] }
 0x1ce   :  { %v1777_v40 = vadd.f32 %v1776_v8, %v5215_v17  ;;  %v1825_v52 = vpop.f32.mrf.mxu1 }
 0x1cf   :  { %v5565_v24 = vadd.f32 %v1920_v18, %v1872_v9  ;;  %v1774_v9 = vadd.f32 %v1773_v50, %v6632_v1  ;;  %v4568_v26 = vpop.eup %4567 }
 0x1d0   :  { %v1826_v55 = vadd.f32 %v1825_v52, %v1777_v40  ;;  %1971 = vmatmul.bf16.gmra.mxu0 %v6626_v7  ;;  %2020 = vmatmul.bf16.gmra.mxu1 %v6627_v29  ;;  %v4440_v40 = vld [vmem:[#allocation2 + $0x38c] sm:$0xf]  ;;  %v3771_v7 = vld [vmem:[#allocation2 + $0x158] sm:$0xf0] }
 0x1d1   :  { %6625 = vst [vmem:[#allocation54_spill] sm:$0xff] %v5565_v24  ;;  %2069 = vmatmul.bf16.gmra.mxu2 %v6628_v14  ;;  %v4376_v52 = vld [vmem:[#allocation2 + $0x18c] sm:$0xf]  ;;  %v4062_v3 = vor.u32 %v4440_v40, %v4059_v48  ;;  %v1823_v50 = vadd.f32 %v5555_v51, %v1774_v9 }
 0x1d2   :  { %v4256_v27 = vmul.f32 -1.442695, %v1826_v55  ;;  %2118 = vmatmul.bf16.gmra.mxu3 %v6629_v6  ;;  %v3803_v55 = vld [vmem:[#allocation2 + $0x198] sm:$0xf0]  ;;  %v6635_v48 = vld [vmem:[#allocation55_spill] sm:$0xff] }
 0x1d3   :  { %v4187_v6 = vld [vmem:[#allocation2 + $0x498] sm:$0xf0]  ;;  %2250 = vmatpush.bf16.msra.mxu2 %v4062_v3 }
 0x1d4   :  { %4569 = vpow2.f32 %v4256_v27  ;;  %v1874_v17 = vpop.f32.mrf.mxu2  ;;  %v4472_v27 = vld [vmem:[#allocation2 + $0x48c] sm:$0xf] }
 0x1d5   :  { %v1875_v60 = vadd.f32 %v1874_v17, %v6630_v41  ;;  %v1923_v10 = vpop.f32.mrf.mxu3  ;;  %v1778_v62 = vpop.f32.mrf.mxu0  ;;  %4571 = vrcp.f32 %v5573_v33 }
 0x1d6   :  { %v1779_v13 = vadd.f32 %v1778_v62, %v6631_v42  ;;  %v1827_v30 = vpop.f32.mrf.mxu1  ;;  %v3806_v62 = vor.u32 %v4376_v52, %v3803_v55  ;;  %v4190_v42 = vor.u32 %v4472_v27, %v4187_v6  ;;  %v4252_v52 = vmul.f32 -1.442695, %v1823_v50  ;;  %v4436_v55 = vld [vmem:[#allocation2 + $0x36c] sm:$0xf]  ;;  %v6638_v6 = vld [vmem:[#allocation25_spill] sm:$0xff] }
 0x1d7   :  { %v5576_v18 = vadd.f32 %v1923_v10, %v1875_v60  ;;  %v3934_v60 = vor.u32 %v4408_v58, %v3931_v2  ;;  %v4468_v58 = vld [vmem:[#allocation2 + $0x46c] sm:$0xf] }
 0x1d8   :  { %v1828_v8 = vadd.f32 %v1827_v30, %v1779_v13  ;;  %2152 = vmatpush.bf16.msra.mxu0 %v3806_v62  ;;  %2299 = vmatpush.bf16.msra.mxu3 %v4190_v42  ;;  %v5582_v13 = vadd.f32 1.0, %v4568_v26  ;;  %v6634_v30 = vld [vmem:[#allocation47_spill] sm:$0xff]  ;;  %v4043_v26 = vld [vmem:[#allocation2 + $0x378] sm:$0xf0] }
 0x1d9   :  { %6633 = vst [vmem:[#allocation26_spill] sm:$0xff] %v5576_v18  ;;  %2201 = vmatpush.bf16.msra.mxu1 %v3934_v60  ;;  %v4372_v62 = vld [vmem:[#allocation2 + $0x16c] sm:$0xf]  ;;  %v3787_v42 = vld [vmem:[#allocation2 + $0x178] sm:$0xf0] }
 0x1da   :  { %v4570_v17 = vpop.eup %4569  ;;  %v4260_v36 = vmul.f32 -1.442695, %v1828_v8  ;;  %vm2489_vm4 = vweird.f32 %v5582_v13 }
 0x1db   :  { %v5580_v25 = vadd.f32 1.0, %v4570_v17  ;;  %v5590_v27 = vpop.eup %4571  ;;  %v6639_v17 = vld [vmem:[#allocation49_spill] sm:$0xff] }
 0x1dc   :  { %4573 = vpow2.f32 %v4260_v36  ;;  %v1876_v10 = vpop.f32.mrf.mxu2  ;;  %v6637_v36 = vld [vmem:[#allocation24_spill] sm:$0xff]  ;;  %vm2430_vm1 = vweird.f32 %v5590_v27 }
 0x1dd   :  { %4575 = vrcp.f32 %v5580_v25  ;;  %v1877_v1 = vadd.f32 %v1876_v10, %v6634_v30  ;;  %v1925_v8 = vpop.f32.mrf.mxu3  ;;  %v1781_v40 = vpop.f32.mrf.mxu0  ;;  %v6640_v10 = vld [vmem:[#allocation22_spill] sm:$0xff]  ;;  %v3915_v30 = vld [vmem:[#allocation2 + $0x278] sm:$0xf0]  ;;  %vm2733_vm5 = vweird.f32 %v5580_v25  ;;  %vm5679_vm7 = vmor %vm2429_vm0, %vm2430_vm1 }
 0x1de   :  { %4577 = vpow2.f32 %v4248_v23  ;;  %v1782_v51 = vadd.f32 %v1781_v40, %v6635_v48  ;;  %v1830_v9 = vpop.f32.mrf.mxu1  ;;  %v4046_v23 = vor.u32 %v4436_v55, %v4043_v26  ;;  %v4404_v40 = vld [vmem:[#allocation2 + $0x26c] sm:$0xf] }
 0x1df   :  { %v5587_v3 = vadd.f32 %v1925_v8, %v1877_v1  ;;  %4579 = vrcp.f32 %v5582_v13  ;;  %v3790_v1 = vor.u32 %v4372_v62, %v3787_v42  ;;  %v4171_v8 = vld [vmem:[#allocation2 + $0x478] sm:$0xf0]  ;;  %v2425_v62 = vmul.f32 %v5590_v27, %v5573_v33  ;;  %v6641_v42 = vld [vmem:[#allocation48_spill] sm:$0xff] }
 0x1e0   :  { %v1831_v2 = vadd.f32 %v1830_v9, %v1782_v51  ;;  %1976 = vmatmul.bf16.gmra.mxu0 %v6637_v36  ;;  %2025 = vmatmul.bf16.gmra.mxu1 %v6638_v6  ;;  %4581 = vpow2.f32 %v4252_v52  ;;  %v4174_v9 = vor.u32 %v4468_v58, %v4171_v8 }
 0x1e1   :  { %6636 = vst [vmem:[#allocation33_spill] sm:$0xff] %v5587_v3  ;;  %2074 = vmatmul.bf16.gmra.mxu2 %v6639_v17  ;;  %2153 = vmatpush.bf16.msra.mxu0 %v3790_v1  ;;  %v2435_v17 = vand.u32 2147483648, %v5573_v33  ;;  %v2426_v36 = vsub.f32 1.0, %v2425_v62 }
 0x1e2   :  { %v4574_v50 = vpop.eup %4573  ;;  %v4264_v60 = vmul.f32 -1.442695, %v1831_v2  ;;  %2123 = vmatmul.bf16.gmra.mxu3 %v6640_v10  ;;  %2251 = vmatpush.bf16.msra.mxu2 %v4046_v23  ;;  %v3918_v2 = vor.u32 %v4404_v40, %v3915_v30  ;;  %v6642_v23 = vld [vmem:[#allocation63_spill] sm:$0xff] }
 0x1e3   :  { %v5596_v48 = vpop.eup %4575  ;;  %v5598_v51 = vadd.f32 1.0, %v4574_v50  ;;  %2300 = vmatpush.bf16.msra.mxu3 %v4174_v9 }
 0x1e4   :  { %v4578_v41 = vpop.eup %4577  ;;  %v2729_v55 = vmul.f32 %v5596_v48, %v5580_v25  ;;  %4583 = vpow2.f32 %v4264_v60  ;;  %v1879_v26 = vpop.f32.mrf.mxu2  ;;  %2202 = vmatpush.bf16.msra.mxu1 %v3918_v2  ;;  %vm2734_vm2 = vweird.f32 %v5596_v48 }
 0x1e5   :  { %4585 = vrcp.f32 %v5598_v51  ;;  %v1880_v52 = vadd.f32 %v1879_v26, %v6641_v42  ;;  %v1928_v50 = vpop.f32.mrf.mxu3  ;;  %v1783_v10 = vpop.f32.mrf.mxu0  ;;  %v5609_v60 = vadd.f32 1.0, %v4578_v41  ;;  %vm5655_vm6 = vmor %vm2733_vm5, %vm2734_vm2  ;;  %vm2793_vm11 = vweird.f32 %v5598_v51 }
 0x1e6   :  { %v1784_v58 = vadd.f32 %v1783_v10, %v6642_v23  ;;  %v1832_v8 = vpop.f32.mrf.mxu1  ;;  %v5607_v20 = vpop.eup %4579  ;;  %v2730_v1 = vsub.f32 1.0, %v2729_v55  ;;  %v2433_v55 = vand.u32 2147483647, %v5573_v33  ;;  %v6644_v23 = vld [vmem:[#allocation50_spill] sm:$0xff] }
 0x1e7   :  { %v5611_v30 = vadd.f32 %v1928_v50, %v1880_v52  ;;  %v4582_v6 = vpop.eup %4581  ;;  %v2485_v9 = vmul.f32 %v5607_v20, %v5582_v13  ;;  %4587 = vrcp.f32 %v5609_v60  ;;  %v5626_v50 = vor.u32 1.1754944e-38, %v2435_v17 }
 0x1e8   :  { %v1833_v40 = vadd.f32 %v1832_v8, %v1784_v58  ;;  %v2731_v41 = vmul.f32 %v5596_v48, %v2730_v1  ;;  %v2427_v1 = vmul.f32 %v5590_v27, %v2426_v36  ;;  %v5632_v3 = vadd.f32 1.0, %v4582_v6 }
 0x1e9   :  { %6643 = vst [vmem:[#allocation58_spill] sm:$0xff] %v5611_v30  ;;  %v4027_v30 = vld [vmem:[#allocation2 + $0x358] sm:$0xf0]  ;;  %v2486_v24 = vsub.f32 1.0, %v2485_v9  ;;  %vm5638_vm3 = vcmp.eq.f32.partialorder %v2433_v55, 8.507059e+37  ;;  %v2739_v6 = vand.u32 2147483648, %v5580_v25  ;;  %vm2490_vm9 = vweird.f32 %v5607_v20 }
 0x1ea   :  { %v4584_v26 = vpop.eup %4583  ;;  %v4268_v42 = vmul.f32 -1.442695, %v1833_v40  ;;  %v2732_v36 = vadd.f32 %v5596_v48, %v2731_v41  ;;  %v4464_v9 = vld [vmem:[#allocation2 + $0x44c] sm:$0xf]  ;;  %v2428_v55 = vadd.f32 %v5590_v27, %v2427_v1  ;;  %vm5708_vm12 = vmor %vm2489_vm4, %vm2490_vm9  ;;  %vm2549_vm4 = vweird.f32 %v5609_v60 }
 0x1eb   :  { %v5616_v10 = vpop.eup %4585  ;;  %v5620_v2 = vadd.f32 1.0, %v4584_v26  ;;  %v4432_v26 = vld [vmem:[#allocation2 + $0x34c] sm:$0xf] }
 0x1ec   :  { %v2789_v52 = vmul.f32 %v5616_v10, %v5598_v51  ;;  %4589 = vpow2.f32 %v4268_v42  ;;  %v1881_v62 = vpop.f32.mrf.mxu2  ;;  %vm2794_vm10 = vweird.f32 %v5616_v10 }
 0x1ed   :  { %4591 = vrcp.f32 %v5620_v2  ;;  %v1882_v58 = vadd.f32 %v1881_v62, %v6644_v23  ;;  %v1930_v8 = vpop.f32.mrf.mxu3  ;;  %v1786_v40 = vpop.f32.mrf.mxu0  ;;  %v4030_v23 = vor.u32 %v4432_v26, %v4027_v30  ;;  %v2737_v30 = vand.u32 2147483647, %v5580_v25  ;;  %vm5715_vm13 = vmor %vm2793_vm11, %vm2794_vm10 }
 0x1ee   :  { %v1787_v17 = vadd.f32 %v1786_v40, %v5342_v53  ;;  %v1835_v42 = vpop.f32.mrf.mxu1  ;;  %v2790_v14 = vsub.f32 1.0, %v2789_v52  ;;  %v3774_v53 = vor.u32 %v4368_v57, %v3771_v7  ;;  %v4155_v52 = vld [vmem:[#allocation2 + $0x458] sm:$0xf0]  ;;  %v2487_v7 = vmul.f32 %v5607_v20, %v2486_v24 }
 0x1ef   :  { %v5636_v29 = vadd.f32 %v1930_v8, %v1882_v58  ;;  %v4400_v58 = vld [vmem:[#allocation2 + $0x24c] sm:$0xf]  ;;  %v5646_v8 = vpop.eup %4587  ;;  %v4158_v41 = vor.u32 %v4464_v9, %v4155_v52  ;;  %v3899_v40 = vld [vmem:[#allocation2 + $0x258] sm:$0xf0]  ;;  %v2493_v25 = vand.u32 2147483647, %v5582_v13  ;;  %2252 = vmatpush.bf16.msra.mxu2 %v4030_v23  ;;  %vm2853_vm2 = vweird.f32 %v5620_v2 }
 0x1f0   :  { %v1836_v18 = vadd.f32 %v1835_v42, %v1787_v17  ;;  %1981 = vmatmul.bf16.gmra.mxu0 %v6647_v39  ;;  %2030 = vmatmul.bf16.gmra.mxu1 %v6586_v28  ;;  %v3902_v1 = vor.u32 %v4400_v58, %v3899_v40  ;;  %v2791_v42 = vmul.f32 %v5616_v10, %v2790_v14  ;;  %v2740_v24 = vor.u32 1.1754944e-38, %v2739_v6 }
 0x1f1   :  { %2079 = vmatmul.bf16.gmra.mxu2 %v6588_v61  ;;  %2154 = vmatpush.bf16.msra.mxu0 %v3774_v53  ;;  %vm2738_vm8 = vcmp.eq.f32.partialorder %v2737_v30, 8.507059e+37  ;;  %v2488_v57 = vadd.f32 %v5607_v20, %v2487_v7  ;;  %vm5719_vm14 = vcmp.eq.f32.partialorder %v2493_v25, 8.507059e+37  ;;  %vm2550_vm0 = vweird.f32 %v5646_v8 }
 0x1f2   :  { %v4590_v26 = vpop.eup %4589  ;;  %4593 = vtanh.f32 %v1836_v18  ;;  %2128 = vmatmul.bf16.gmra.mxu3 %v6589_v43  ;;  %v2736_v18 = vsel %vm5655_vm6, %v5596_v48, %v2732_v36  ;;  %v2545_v43 = vmul.f32 %v5646_v8, %v5609_v60  ;;  %v2495_v48 = vand.u32 2147483648, %v5582_v13  ;;  %2203 = vmatpush.bf16.msra.mxu1 %v3902_v1  ;;  %vm5778_vm5 = vmor %vm2549_vm4, %vm2550_vm0 }
 0x1f3   :  { %v5662_v17 = vpop.eup %4591  ;;  %4595 = vrcp.f32 %v5632_v3  ;;  %v5666_v9 = vadd.f32 1.0, %v4590_v26  ;;  %2301 = vmatpush.bf16.msra.mxu3 %v4158_v41  ;;  %v2432_v36 = vsel %vm5679_vm7, %v5590_v27, %v2428_v55  ;;  %v2741_v33 = vsel %vm2738_vm8, %v2740_v24, %v2736_v18  ;;  %v3274_v41 = vld [vmem:[%s6441_s1 + $0x8] sm:$0xff] }
 0x1f4   :  { %v2849_v23 = vmul.f32 %v5662_v17, %v5620_v2  ;;  %v1884_v52 = vpop.f32.mrf.mxu2  ;;  %v2792_v30 = vadd.f32 %v5616_v10, %v2791_v42  ;;  %v2546_v18 = vsub.f32 1.0, %v2545_v43  ;;  %v2799_v24 = vand.u32 2147483648, %v5598_v51 }
 0x1f5   :  { %4597 = vrcp.f32 %v5666_v9  ;;  %v1885_v6 = vadd.f32 %v1884_v52, %v6587_v38  ;;  %v1933_v53 = vpop.f32.mrf.mxu3  ;;  %v1788_v58 = vpop.f32.mrf.mxu0  ;;  %v3290_v7 = vmul.f32 %v3274_v41, %v2741_v33  ;;  %v2797_v42 = vand.u32 2147483647, %v5598_v51 }
 0x1f6   :  { %v1789_v40 = vadd.f32 %v1788_v58, %v5399_v4  ;;  %v1837_v26 = vpop.f32.mrf.mxu1  ;;  %v2850_v27 = vsub.f32 1.0, %v2849_v23  ;;  %v2437_v4 = vsel %vm5638_vm3, %v5626_v50, %v2432_v36  ;;  %v2496_v43 = vor.u32 1.1754944e-38, %v2495_v48 }
 0x1f7   :  { %v5696_v55 = vadd.f32 %v1933_v53, %v1885_v6  ;;  %v2492_v51 = vsel %vm5708_vm12, %v5607_v20, %v2488_v57  ;;  %v2796_v53 = vsel %vm5715_vm13, %v5616_v10, %v2792_v30  ;;  %v2800_v33 = vor.u32 1.1754944e-38, %v2799_v24  ;;  %v3278_v24 = vld [vmem:[%s6441_s1 + $0x28] sm:$0xff] }
 0x1f8   :  { %v4594_v1 = vpop.eup %4593  ;;  %v1838_v14 = vadd.f32 %v1837_v26, %v1789_v40  ;;  %v2851_v13 = vmul.f32 %v5662_v17, %v2850_v27  ;;  %v2547_v40 = vmul.f32 %v5646_v8, %v2546_v18  ;;  %vm2798_vm15 = vcmp.eq.f32.partialorder %v2797_v42, 8.507059e+37 }
 0x1f9   :  { %v5703_v52 = vpop.eup %4595  ;;  %v3306_v58 = vmul.f32 %v4594_v1, %v2437_v4  ;;  %v2553_v27 = vand.u32 2147483647, %v5609_v60  ;;  %v2555_v10 = vand.u32 2147483648, %v5609_v60  ;;  %v2497_v30 = vsel %vm5719_vm14, %v2496_v43, %v2492_v51  ;;  %v6658_v51 = vld [vmem:[#allocation32_spill] sm:$0xff] }
 0x1fa   :  { %4599 = vtanh.f32 %v1838_v14  ;;  %v2605_v25 = vmul.f32 %v5703_v52, %v5632_v3  ;;  %v2801_v1 = vsel %vm2798_vm15, %v2800_v33, %v2796_v53  ;;  %vm2854_vm1 = vweird.f32 %v5662_v17 }
 0x1fb   :  { %v5723_v36 = vpop.eup %4597  ;;  %v5726_v6 = vadd.f32 %v3306_v58, %v3290_v7  ;;  %v2852_v58 = vadd.f32 %v5662_v17, %v2851_v13  ;;  %v2859_v62 = vand.u32 2147483648, %v5620_v2  ;;  %v2548_v43 = vadd.f32 %v5646_v8, %v2547_v40  ;;  %vm5763_vm3 = vmor %vm2853_vm2, %vm2854_vm1 }
 0x1fc   :  { %v2909_v48 = vmul.f32 %v5723_v36, %v5666_v9  ;;  %v1886_v41 = vpop.f32.mrf.mxu2  ;;  %v2606_v42 = vsub.f32 1.0, %v2605_v25  ;;  %v2857_v33 = vand.u32 2147483647, %v5620_v2  ;;  %vm5782_vm6 = vcmp.eq.f32.partialorder %v2553_v27, 8.507059e+37 }
 0x1fd   :  { %3370 = vst [vmem:[#allocation8 + $0x8] sm:$0xff] %v5726_v6  ;;  %v1887_v26 = vadd.f32 %v1886_v41, %v5133_v31  ;;  %v1935_v20 = vpop.f32.mrf.mxu3  ;;  %v1791_v57 = vpop.f32.mrf.mxu0  ;;  %v2856_v2 = vsel %vm5763_vm3, %v5662_v17, %v2852_v58  ;;  %v2613_v41 = vand.u32 2147483647, %v5632_v3  ;;  %v2860_v40 = vor.u32 1.1754944e-38, %v2859_v62 }
 0x1fe   :  { %v1792_v18 = vadd.f32 %v1791_v57, %v5443_v15  ;;  %v1840_v4 = vpop.f32.mrf.mxu1  ;;  %v2910_v14 = vsub.f32 1.0, %v2909_v48  ;;  %v3294_v15 = vmul.f32 %v3278_v24, %v2801_v1  ;;  %v2552_v17 = vsel %vm5778_vm5, %v5646_v8, %v2548_v43  ;;  %v6665_v57 = vld [vmem:[#allocation57_spill] sm:$0xff] }
 0x1ff   :  { %v5751_v7 = vadd.f32 %v1935_v20, %v1887_v26  ;;  %vm2858_vm7 = vcmp.eq.f32.partialorder %v2857_v33, 8.507059e+37  ;;  %vm2914_vm8 = vweird.f32 %v5723_v36  ;;  %v2615_v58 = vand.u32 2147483648, %v5632_v3 }
 0x200   :  { %v4600_v23 = vpop.eup %4599  ;;  %v1841_v50 = vadd.f32 %v1840_v4, %v1792_v18  ;;  %1986 = vmatmul.bf16.gmra.mxu0 %v6658_v51  ;;  %2035 = vmatmul.bf16.gmra.mxu1 %v6599_v34  ;;  %v2911_v25 = vmul.f32 %v5723_v36, %v2910_v14  ;;  %v2607_v18 = vmul.f32 %v5703_v52, %v2606_v42  ;;  %vm2610_vm9 = vweird.f32 %v5703_v52 }
 0x201   :  { %v3310_v53 = vmul.f32 %v4600_v23, %v2497_v30  ;;  %2084 = vmatmul.bf16.gmra.mxu2 %v6601_v37  ;;  %v2861_v27 = vsel %vm2858_vm7, %v2860_v40, %v2856_v2  ;;  %vm5801_vm10 = vcmp.eq.f32.partialorder %v2613_v41, 8.507059e+37  ;;  %vm2913_vm11 = vweird.f32 %v5666_v9  ;;  %v4428_v2 = vld [vmem:[#allocation2 + $0x32c] sm:$0xf]  ;;  %v4011_v41 = vld [vmem:[#allocation2 + $0x338] sm:$0xf0] }
 0x202   :  { %4601 = vtanh.f32 %v1841_v50  ;;  %2133 = vmatmul.bf16.gmra.mxu3 %v6602_v16  ;;  %v2556_v16 = vor.u32 1.1754944e-38, %v2555_v10  ;;  %v3282_v10 = vld [vmem:[%s6441_s1 + $0x48] sm:$0xff]  ;;  %v2912_v42 = vadd.f32 %v5723_v36, %v2911_v25  ;;  %v2919_v50 = vand.u32 2147483648, %v5666_v9  ;;  %vm5812_vm12 = vmor %vm2913_vm11, %vm2914_vm8 }
 0x203   :  { %v5770_v48 = vadd.f32 %v3310_v53, %v3294_v15  ;;  %v3298_v53 = vmul.f32 %v3282_v10, %v2861_v27  ;;  %v2608_v13 = vadd.f32 %v5703_v52, %v2607_v18  ;;  %v2917_v25 = vand.u32 2147483647, %v5666_v9  ;;  %v4364_v40 = vld [vmem:[#allocation2 + $0x12c] sm:$0xf]  ;;  %v3867_v9 = vld [vmem:[#allocation2 + $0x218] sm:$0xf0] }
 0x204   :  { %v1889_v20 = vpop.f32.mrf.mxu2  ;;  %vm2609_vm13 = vweird.f32 %v5632_v3  ;;  %v2916_v60 = vsel %vm5812_vm12, %v5723_v36, %v2912_v42  ;;  %v4396_v3 = vld [vmem:[#allocation2 + $0x22c] sm:$0xf] }
 0x205   :  { %3374 = vst [vmem:[#allocation8 + $0x28] sm:$0xff] %v5770_v48  ;;  %v1890_v30 = vadd.f32 %v1889_v20, %v6665_v57  ;;  %v1938_v1 = vpop.f32.mrf.mxu3  ;;  %v1793_v24 = vpop.f32.mrf.mxu0  ;;  %v3755_v20 = vld [vmem:[#allocation2 + $0x138] sm:$0xf0]  ;;  %vm5826_vm14 = vmor %vm2609_vm13, %vm2610_vm9  ;;  %vm2918_vm15 = vcmp.eq.f32.partialorder %v2917_v25, 8.507059e+37 }
 0x206   :  { %v1794_v4 = vadd.f32 %v1793_v24, %v5474_v22  ;;  %v1842_v14 = vpop.f32.mrf.mxu1  ;;  %v2557_v22 = vsel %vm5782_vm6, %v2556_v16, %v2552_v17  ;;  %v4014_v16 = vor.u32 %v4428_v2, %v4011_v41  ;;  %v4460_v17 = vld [vmem:[#allocation2 + $0x42c] sm:$0xf]  ;;  %v2616_v24 = vor.u32 1.1754944e-38, %v2615_v58  ;;  %v3739_v2 = vld [vmem:[#allocation2 + $0x118] sm:$0xf0] }
 0x207   :  { %v5798_v8 = vadd.f32 %v1938_v1, %v1890_v30  ;;  %v4139_v30 = vld [vmem:[#allocation2 + $0x438] sm:$0xf0]  ;;  %v2920_v1 = vor.u32 1.1754944e-38, %v2919_v50  ;;  %v3758_v27 = vor.u32 %v4364_v40, %v3755_v20  ;;  %v2612_v36 = vsel %vm5826_vm14, %v5703_v52, %v2608_v13  ;;  %v4360_v52 = vld [vmem:[#allocation2 + $0x10c] sm:$0xf] }
 0x208   :  { %v4602_v62 = vpop.eup %4601  ;;  %v1843_v43 = vadd.f32 %v1842_v14, %v1794_v4  ;;  %v4142_v10 = vor.u32 %v4460_v17, %v4139_v30  ;;  %v3883_v4 = vld [vmem:[#allocation2 + $0x238] sm:$0xf0]  ;;  %v3286_v14 = vld [vmem:[%s6441_s1 + $0x68] sm:$0xff]  ;;  %2253 = vmatpush.bf16.msra.mxu2 %v4014_v16  ;;  %v2617_v16 = vsel %vm5801_vm10, %v2616_v24, %v2612_v36 }
 0x209   :  { %v3314_v33 = vmul.f32 %v4602_v62, %v2557_v22  ;;  %v3886_v50 = vor.u32 %v4396_v3, %v3883_v4  ;;  %v2921_v22 = vsel %vm2918_vm15, %v2920_v1, %v2916_v60  ;;  %2155 = vmatpush.bf16.msra.mxu0 %v3758_v27  ;;  %v4456_v41 = vld [vmem:[#allocation2 + $0x40c] sm:$0xf]  ;;  %v4123_v40 = vld [vmem:[#allocation2 + $0x418] sm:$0xf0] }
 0x20a   :  { %4603 = vtanh.f32 %v1843_v43  ;;  %2302 = vmatpush.bf16.msra.mxu3 %v4142_v10  ;;  %v6672_v17 = vld [vmem:[#allocation35_spill] sm:$0xff]  ;;  %v4126_v30 = vor.u32 %v4456_v41, %v4123_v40 }
 0x20b   :  { %v5818_v26 = vadd.f32 %v3314_v33, %v3298_v53  ;;  %v4424_v53 = vld [vmem:[#allocation2 + $0x30c] sm:$0xf]  ;;  %v3995_v33 = vld [vmem:[#allocation2 + $0x318] sm:$0xf0]  ;;  %2204 = vmatpush.bf16.msra.mxu1 %v3886_v50 }
 0x20c   :  { %v1891_v18 = vpop.f32.mrf.mxu2  ;;  %v3998_v25 = vor.u32 %v4424_v53, %v3995_v33  ;;  %v4392_v1 = vld [vmem:[#allocation2 + $0x20c] sm:$0xf] }
 0x20d   :  { %3378 = vst [vmem:[#allocation8 + $0x48] sm:$0xff] %v5818_v26  ;;  %v1892_v42 = vadd.f32 %v1891_v18, %v5149_v46  ;;  %v1940_v62 = vpop.f32.mrf.mxu3  ;;  %v1796_v58 = vpop.f32.mrf.mxu0  ;;  %v3302_v18 = vmul.f32 %v3286_v14, %v2921_v22  ;;  %v3870_v10 = vor.u32 %v4392_v1, %v3867_v9  ;;  %v6677_v1 = vld [vmem:[#allocation37_spill] sm:$0xff] }
 0x20e   :  { %v1797_v43 = vadd.f32 %v1796_v58, %v5485_v49  ;;  %v1845_v15 = vpop.f32.mrf.mxu1  ;;  %v3742_v49 = vor.u32 %v4360_v52, %v3739_v2  ;;  %2254 = vmatpush.bf16.msra.mxu2 %v3998_v25  ;;  %2303 = vmatpush.bf16.msra.mxu3 %v4126_v30  ;;  %v6673_v52 = vld [vmem:[#allocation51_spill] sm:$0xff] }
 0x20f   :  { %v5839_v13 = vadd.f32 %v1940_v62, %v1892_v42  ;;  %2205 = vmatpush.bf16.msra.mxu1 %v3870_v10 }
 0x210   :  { %v4604_v20 = vpop.eup %4603  ;;  %v1846_v60 = vadd.f32 %v1845_v15, %v1797_v43  ;;  %1991 = vmatmul.bf16.gmra.mxu0 %v6672_v17  ;;  %2040 = vmatmul.bf16.gmra.mxu1 %v6612_v47 }
 0x211   :  { %v3318_v27 = vmul.f32 %v4604_v20, %v2617_v16  ;;  %2089 = vmatmul.bf16.gmra.mxu2 %v5154_v45  ;;  %2156 = vmatpush.bf16.msra.mxu0 %v3742_v49  ;;  %v6674_v20 = vld [vmem:[#allocation39_spill] sm:$0xff]  ;;  %v6675_v16 = vld [vmem:[#allocation40_spill] sm:$0xff] }
 0x212   :  { %v4272_v3 = vmul.f32 -1.442695, %v1846_v60  ;;  %2138 = vmatmul.bf16.gmra.mxu3 %v5028_v5  ;;  %v6676_v60 = vld [vmem:[#allocation59_spill] sm:$0xff] }
 0x213   :  { %v5847_v23 = vadd.f32 %v3318_v27, %v3302_v18 }
 0x214   :  { %4605 = vpow2.f32 %v4272_v3  ;;  %v1894_v24 = vpop.f32.mrf.mxu2 }
 0x215   :  { %3382 = vst [vmem:[#allocation8 + $0x68] sm:$0xff] %v5847_v23  ;;  %v1895_v4 = vadd.f32 %v1894_v24, %v5116_v44  ;;  %v1943_v36 = vpop.f32.mrf.mxu3  ;;  %v1798_v14 = vpop.f32.mrf.mxu0 }
 0x216   :  { %v1799_v42 = vadd.f32 %v1798_v14, %v5489_v19  ;;  %v1847_v62 = vpop.f32.mrf.mxu1 }
 0x217   :  { %v5852_v58 = vadd.f32 %v1943_v36, %v1895_v4  ;;  %v6678_v4 = vld [vmem:[#allocation52_spill] sm:$0xff] }
 0x218   :  { %v1848_v5 = vadd.f32 %v1847_v62, %v1799_v42 }
 0x21a   :  { %v4606_v50 = vpop.eup %4605  ;;  %v4276_v22 = vmul.f32 -1.442695, %v1848_v5 }
 0x21b   :  { %v3018_v43 = vadd.f32 1.0, %v4606_v50 }
 0x21c   :  { %4607 = vpow2.f32 %v4276_v22  ;;  %v1896_v15 = vpop.f32.mrf.mxu2 }
 0x21d   :  { %4609 = vrcp.f32 %v3018_v43  ;;  %v1945_v53 = vpop.f32.mrf.mxu3  ;;  %v1801_v33 = vpop.f32.mrf.mxu0  ;;  %v1897_v25 = vadd.f32 %v1896_v15, %v6673_v52  ;;  %v3057_v62 = vand.u32 2147483647, %v3018_v43  ;;  %v3059_v5 = vand.u32 2147483648, %v3018_v43 }
 0x21e   :  { %v1802_v2 = vadd.f32 %v1801_v33, %v5501_v54  ;;  %v1850_v41 = vpop.f32.mrf.mxu1  ;;  %vm3053_vm1 = vweird.f32 %v3018_v43 }
 0x21f   :  { %v5856_v40 = vadd.f32 %v1945_v53, %v1897_v25  ;;  %vm3058_vm3 = vcmp.eq.f32.partialorder %v3057_v62, 8.507059e+37  ;;  %v6679_v62 = vld [vmem:[#allocation14_spill] sm:$0xff] }
 0x220   :  { %v1851_v19 = vadd.f32 %v1850_v41, %v1802_v2  ;;  %1996 = vmatmul.bf16.gmra.mxu0 %v6674_v20  ;;  %2045 = vmatmul.bf16.gmra.mxu1 %v6675_v16  ;;  %v3060_v41 = vor.u32 1.1754944e-38, %v3059_v5 }
 0x221   :  { %2094 = vmatmul.bf16.gmra.mxu2 %v6676_v60 }
 0x222   :  { %v4608_v49 = vpop.eup %4607  ;;  %v4280_v30 = vmul.f32 -1.442695, %v1851_v19  ;;  %2143 = vmatmul.bf16.gmra.mxu3 %v6677_v1 }
 0x223   :  { %v4610_v9 = vpop.eup %4609  ;;  %v3022_v18 = vadd.f32 1.0, %v4608_v49 }
 0x224   :  { %v3049_v27 = vmul.f32 %v4610_v9, %v3018_v43  ;;  %4611 = vpow2.f32 %v4280_v30  ;;  %v1899_v10 = vpop.f32.mrf.mxu2  ;;  %vm3054_vm0 = vweird.f32 %v4610_v9 }
 0x225   :  { %4613 = vrcp.f32 %v3022_v18  ;;  %v1948_v54 = vpop.f32.mrf.mxu3  ;;  %v1803_v3 = vpop.f32.mrf.mxu0  ;;  %v1900_v36 = vadd.f32 %v1899_v10, %v6678_v4  ;;  %vm3055_vm2 = vmor %vm3053_vm1, %vm3054_vm0  ;;  %vm3113_vm5 = vweird.f32 %v3022_v18 }
 0x226   :  { %v3050_v24 = vsub.f32 1.0, %v3049_v27  ;;  %v1804_v14 = vadd.f32 %v1803_v3, %v5516_v21  ;;  %v1852_v42 = vpop.f32.mrf.mxu1  ;;  %4615 = vtanh.f32 %v5726_v6 }
 0x227   :  { %v5865_v22 = vadd.f32 %v1948_v54, %v1900_v36  ;;  %v3119_v36 = vand.u32 2147483648, %v3022_v18 }
 0x228   :  { %v3051_v50 = vmul.f32 %v4610_v9, %v3050_v24  ;;  %v1853_v15 = vadd.f32 %v1852_v42, %v1804_v14  ;;  %v3117_v14 = vand.u32 2147483647, %v3022_v18 }
 0x22a   :  { %v4612_v53 = vpop.eup %4611  ;;  %v3052_v33 = vadd.f32 %v4610_v9, %v3051_v50  ;;  %v4284_v25 = vmul.f32 -1.442695, %v1853_v15  ;;  %vm3118_vm7 = vcmp.eq.f32.partialorder %v3117_v14, 8.507059e+37 }
 0x22b   :  { %v4614_v2 = vpop.eup %4613  ;;  %v3026_v19 = vadd.f32 1.0, %v4612_v53 }
 0x22c   :  { %v3056_v49 = vsel %vm3055_vm2, %v4610_v9, %v3052_v33  ;;  %v3109_v21 = vmul.f32 %v4614_v2, %v3022_v18  ;;  %4617 = vpow2.f32 %v4284_v25  ;;  %v1901_v6 = vpop.f32.mrf.mxu2  ;;  %v4616_v30 = vpop.eup %4615  ;;  %vm3114_vm4 = vweird.f32 %v4614_v2 }
 0x22d   :  { %v3061_v1 = vsel %vm3058_vm3, %v3060_v41, %v3056_v49  ;;  %4619 = vrcp.f32 %v3026_v19  ;;  %v1950_v27 = vpop.f32.mrf.mxu3  ;;  %v5867_v10 = vpop.f32.mrf.mxu0  ;;  %v1902_v43 = vadd.f32 %v1901_v6, %v5130_v35  ;;  %vm3115_vm6 = vmor %vm3113_vm5, %vm3114_vm4  ;;  %vm3173_vm9 = vweird.f32 %v3026_v19 }
 0x22e   :  { %v3354_v54 = vmul.f32 %v4616_v30, %v3061_v1  ;;  %v3110_v3 = vsub.f32 1.0, %v3109_v21  ;;  %v5870_v24 = vpop.f32.mrf.mxu1  ;;  %4621 = vtanh.f32 %v5770_v48  ;;  %v3120_v48 = vor.u32 1.1754944e-38, %v3119_v36 }
 0x22f   :  { %v5873_v42 = vadd.f32 %v1950_v27, %v1902_v43  ;;  %v3177_v27 = vand.u32 2147483647, %v3026_v19 }
 0x230   :  { %3386 = vst [vmem:[#allocation7 + $0x8] sm:$0xff] %v3354_v54  ;;  %v3111_v9 = vmul.f32 %v4614_v2, %v3110_v3  ;;  %2157 = vmatmul.bf16.vlgmr.msra.gmra.mxu0 %v6679_v62  ;;  %2206 = vmatmul.bf16.vlgmr.msra.gmra.mxu1 %v6620_v63 }
 0x231   :  { %2255 = vmatmul.bf16.vlgmr.msra.gmra.mxu2 %v4917_v59  ;;  %vm3178_vm11 = vcmp.eq.f32.partialorder %v3177_v27, 8.507059e+37  ;;  %v1963_v27 = vadd.f32 %v5867_v10, %v5535_v0 }
 0x232   :  { %v4618_v5 = vpop.eup %4617  ;;  %v3112_v50 = vadd.f32 %v4614_v2, %v3111_v9  ;;  %2304 = vmatmul.bf16.vlgmr.msra.gmra.mxu3 %v5054_v12  ;;  %v3179_v12 = vand.u32 2147483648, %v3026_v19 }
 0x233   :  { %v4620_v15 = vpop.eup %4619  ;;  %v3030_v53 = vadd.f32 1.0, %v4618_v5 }
 0x234   :  { %v3116_v33 = vsel %vm3115_vm6, %v4614_v2, %v3112_v50  ;;  %v3169_v25 = vmul.f32 %v4620_v15, %v3026_v19  ;;  %v2060_v41 = vpop.f32.mrf.mxu2  ;;  %v4622_v49 = vpop.eup %4621  ;;  %vm3174_vm8 = vweird.f32 %v4620_v15  ;;  %v3180_v3 = vor.u32 1.1754944e-38, %v3179_v12 }
 0x235   :  { %v3121_v21 = vsel %vm3118_vm7, %v3120_v48, %v3116_v33  ;;  %4623 = vrcp.f32 %v3030_v53  ;;  %v5879_v6 = vpop.f32.mrf.mxu3  ;;  %v1964_v63 = vpop.f32.mrf.mxu0  ;;  %vm3175_vm10 = vmor %vm3173_vm9, %vm3174_vm8  ;;  %vm3233_vm13 = vweird.f32 %v3030_v53 }
 0x236   :  { %v3358_v59 = vmul.f32 %v4622_v49, %v3121_v21  ;;  %v3170_v30 = vsub.f32 1.0, %v3169_v25  ;;  %v2013_v1 = vpop.f32.mrf.mxu1  ;;  %4625 = vtanh.f32 %v5818_v26  ;;  %v3239_v25 = vand.u32 2147483648, %v3030_v53  ;;  %v6680_v21 = vld [vmem:[#allocation16_spill] sm:$0xff] }
 0x237   :  { %4627 = vtanh.f32 %v5847_v23  ;;  %v3237_v49 = vand.u32 2147483647, %v3030_v53 }
 0x238   :  { %3390 = vst [vmem:[#allocation7 + $0x28] sm:$0xff] %v3358_v59  ;;  %v3171_v18 = vmul.f32 %v4620_v15, %v3170_v30  ;;  %v3240_v59 = vor.u32 1.1754944e-38, %v3239_v25 }
 0x239   :  { %vm3238_vm15 = vcmp.eq.f32.partialorder %v3237_v49, 8.507059e+37  ;;  %v6683_v49 = vld [vmem:[#allocation19_spill] sm:$0xff] }
 0x23a   :  { %v3172_v2 = vadd.f32 %v4620_v15, %v3171_v18 }
 0x23b   :  { %v4624_v54 = vpop.eup %4623 }
 0x23c   :  { %v3176_v43 = vsel %vm3175_vm10, %v4620_v15, %v3172_v2  ;;  %v3229_v36 = vmul.f32 %v4624_v54, %v3030_v53  ;;  %v2062_v9 = vpop.f32.mrf.mxu2  ;;  %v4626_v14 = vpop.eup %4625  ;;  %vm3234_vm12 = vweird.f32 %v4624_v54  ;;  %v6681_v53 = vld [vmem:[#allocation29_spill] sm:$0xff] }
 0x23d   :  { %v3181_v62 = vsel %vm3178_vm11, %v3180_v3, %v3176_v43  ;;  %v5882_v5 = vpop.f32.mrf.mxu3  ;;  %v1967_v50 = vpop.f32.mrf.mxu0  ;;  %vm3235_vm14 = vmor %vm3233_vm13, %vm3234_vm12 }
 0x23e   :  { %v3362_v26 = vmul.f32 %v4626_v14, %v3181_v62  ;;  %v3230_v48 = vsub.f32 1.0, %v3229_v36  ;;  %v2016_v33 = vpop.f32.mrf.mxu1  ;;  %v4628_v12 = vpop.eup %4627 }
 0x240   :  { %3394 = vst [vmem:[#allocation7 + $0x48] sm:$0xff] %v3362_v26  ;;  %v3231_v19 = vmul.f32 %v4624_v54, %v3230_v48  ;;  %2162 = vmatmul.bf16.gmra.mxu0 %v6680_v21  ;;  %2211 = vmatmul.bf16.gmra.mxu1 %v6623_v56  ;;  %v6684_v21 = vld [vmem:[#allocation20_spill] sm:$0xff] }
 0x241   :  { %2260 = vmatmul.bf16.gmra.mxu2 %v4938_v32  ;;  %v2012_v32 = vadd.f32 %v5870_v24, %v1963_v27  ;;  %v6686_v24 = vld [vmem:[#allocation46_spill] sm:$0xff] }
 0x242   :  { %v3232_v15 = vadd.f32 %v4624_v54, %v3231_v19  ;;  %2309 = vmatmul.bf16.gmra.mxu3 %v5068_v11  ;;  %v1965_v11 = vadd.f32 %v1964_v63, %v6681_v53  ;;  %v6682_v19 = vld [vmem:[#allocation26_spill] sm:$0xff] }
 0x243   :  { %v2061_v36 = vadd.f32 %v2060_v41, %v2012_v32  ;;  %v6688_v32 = vld [vmem:[#allocation33_spill] sm:$0xff] }
 0x244   :  { %v3236_v30 = vsel %vm3235_vm14, %v4624_v54, %v3232_v15  ;;  %v2065_v23 = vpop.f32.mrf.mxu2  ;;  %v2014_v26 = vadd.f32 %v2013_v1, %v1965_v11  ;;  %v6685_v15 = vld [vmem:[#allocation21_spill] sm:$0xff] }
 0x245   :  { %v3241_v18 = vsel %vm3238_vm15, %v3240_v59, %v3236_v30  ;;  %v5891_v2 = vpop.f32.mrf.mxu3  ;;  %v1969_v3 = vpop.f32.mrf.mxu0  ;;  %v4241_v25 = vmul.f32 -1.442695, %v2061_v36  ;;  %v6687_v30 = vld [vmem:[#allocation53_spill] sm:$0xff] }
 0x246   :  { %v3366_v56 = vmul.f32 %v4628_v12, %v3241_v18  ;;  %v2018_v43 = vpop.f32.mrf.mxu1  ;;  %v2063_v10 = vadd.f32 %v2062_v9, %v2014_v26  ;;  %v1968_v12 = vadd.f32 %v1967_v50, %v6687_v30 }
 0x247   :  { %4629 = vpow2.f32 %v4241_v25 }
 0x248   :  { %3398 = vst [vmem:[#allocation7 + $0x68] sm:$0xff] %v3366_v56  ;;  %v4245_v63 = vmul.f32 -1.442695, %v2063_v10  ;;  %v2017_v36 = vadd.f32 %v2016_v33, %v1968_v12 }
 0x24a   :  { %4631 = vpow2.f32 %v4245_v63  ;;  %v6690_v63 = vld [vmem:[#allocation58_spill] sm:$0xff] }
 0x24c   :  { %v2067_v14 = vpop.f32.mrf.mxu2 }
 0x24d   :  { %v5895_v54 = vpop.f32.mrf.mxu3  ;;  %v1972_v62 = vpop.f32.mrf.mxu0 }
 0x24e   :  { %v2021_v48 = vpop.f32.mrf.mxu1  ;;  %v1973_v0 = vadd.f32 %v1972_v62, %v6682_v19  ;;  %v4630_v11 = vpop.eup %4629  ;;  %v2066_v62 = vadd.f32 %v2065_v23, %v2017_v36  ;;  %v6689_v19 = vld [vmem:[#allocation54_spill] sm:$0xff]  ;;  %v6691_v23 = vld [vmem:[#allocation23_spill] sm:$0xff] }
 0x24f   :  { %v5906_v25 = vadd.f32 1.0, %v4630_v11 }
 0x250   :  { %2167 = vmatmul.bf16.gmra.mxu0 %v6683_v49  ;;  %2216 = vmatmul.bf16.gmra.mxu1 %v6684_v21  ;;  %v2022_v41 = vadd.f32 %v2021_v48, %v1973_v0  ;;  %v1970_v0 = vadd.f32 %v1969_v3, %v6689_v19  ;;  %v4632_v21 = vpop.eup %4631  ;;  %v6692_v3 = vld [vmem:[#allocation24_spill] sm:$0xff] }
 0x251   :  { %2265 = vmatmul.bf16.gmra.mxu2 %v6685_v15  ;;  %vm2444_vm1 = vweird.f32 %v5906_v25 }
 0x252   :  { %2314 = vmatmul.bf16.gmra.mxu3 %v6686_v24  ;;  %v2019_v12 = vadd.f32 %v2018_v43, %v1970_v0 }
 0x254   :  { %v2070_v59 = vpop.f32.mrf.mxu2 }
 0x255   :  { %v2071_v1 = vadd.f32 %v2070_v59, %v2022_v41  ;;  %v5903_v18 = vpop.f32.mrf.mxu3  ;;  %v1974_v27 = vpop.f32.mrf.mxu0  ;;  %v4249_v41 = vmul.f32 -1.442695, %v2066_v62 }
 0x256   :  { %v2023_v56 = vpop.f32.mrf.mxu1  ;;  %v1975_v53 = vadd.f32 %v1974_v27, %v6688_v32  ;;  %v5918_v27 = vadd.f32 1.0, %v4632_v21 }
 0x257   :  { %v4257_v9 = vmul.f32 -1.442695, %v2071_v1  ;;  %v6693_v1 = vld [vmem:[#allocation25_spill] sm:$0xff] }
 0x258   :  { %v2024_v26 = vadd.f32 %v2023_v56, %v1975_v53  ;;  %v6694_v56 = vld [vmem:[#allocation49_spill] sm:$0xff]  ;;  %vm2504_vm8 = vweird.f32 %v5918_v27 }
 0x259   :  { %4633 = vpow2.f32 %v4257_v9  ;;  %v2068_v9 = vadd.f32 %v2067_v14, %v2019_v12 }
 0x25a   :  { %4635 = vrcp.f32 %v5906_v25 }
 0x25b   :  { %v4253_v19 = vmul.f32 -1.442695, %v2068_v9 }
 0x25c   :  { %v2072_v48 = vpop.f32.mrf.mxu2 }
 0x25d   :  { %v2073_v50 = vadd.f32 %v2072_v48, %v2024_v26  ;;  %v5909_v10 = vpop.f32.mrf.mxu3  ;;  %v1977_v49 = vpop.f32.mrf.mxu0 }
 0x25e   :  { %v2026_v15 = vpop.f32.mrf.mxu1  ;;  %v1978_v30 = vadd.f32 %v1977_v49, %v6690_v63 }
 0x25f   :  { %v4634_v24 = vpop.eup %4633  ;;  %v4261_v59 = vmul.f32 -1.442695, %v2073_v50 }
 0x260   :  { %v5913_v33 = vadd.f32 1.0, %v4634_v24  ;;  %2172 = vmatmul.bf16.gmra.mxu0 %v6691_v23  ;;  %2221 = vmatmul.bf16.gmra.mxu1 %v6692_v3  ;;  %v2027_v32 = vadd.f32 %v2026_v15, %v1978_v30  ;;  %v5924_v43 = vpop.eup %4635 }
 0x261   :  { %4637 = vpow2.f32 %v4261_v59  ;;  %2270 = vmatmul.bf16.gmra.mxu2 %v6693_v1  ;;  %v2440_v24 = vmul.f32 %v5924_v43, %v5906_v25  ;;  %vm2445_vm3 = vweird.f32 %v5924_v43 }
 0x262   :  { %4639 = vrcp.f32 %v5913_v33  ;;  %2319 = vmatmul.bf16.gmra.mxu3 %v6694_v56  ;;  %vm2748_vm2 = vweird.f32 %v5913_v33  ;;  %vm6005_vm6 = vmor %vm2444_vm1, %vm2445_vm3 }
 0x263   :  { %4641 = vpow2.f32 %v4249_v41  ;;  %v2441_v1 = vsub.f32 1.0, %v2440_v24  ;;  %v2448_v24 = vand.u32 2147483647, %v5906_v25 }
 0x264   :  { %v2075_v53 = vpop.f32.mrf.mxu2  ;;  %4643 = vrcp.f32 %v5918_v27 }
 0x265   :  { %v2076_v11 = vadd.f32 %v2075_v53, %v2027_v32  ;;  %v5922_v36 = vpop.f32.mrf.mxu3  ;;  %v1979_v62 = vpop.f32.mrf.mxu0  ;;  %vm5982_vm5 = vcmp.eq.f32.partialorder %v2448_v24, 8.507059e+37 }
 0x266   :  { %v2028_v26 = vpop.f32.mrf.mxu1  ;;  %v1980_v50 = vadd.f32 %v1979_v62, %v5636_v29 }
 0x267   :  { %v4638_v48 = vpop.eup %4637  ;;  %v4265_v0 = vmul.f32 -1.442695, %v2076_v11 }
 0x268   :  { %v5928_v49 = vpop.eup %4639  ;;  %v5930_v21 = vadd.f32 1.0, %v4638_v48  ;;  %v2029_v41 = vadd.f32 %v2028_v26, %v1980_v50 }
 0x269   :  { %v4642_v14 = vpop.eup %4641  ;;  %v2744_v15 = vmul.f32 %v5928_v49, %v5913_v33  ;;  %4645 = vpow2.f32 %v4265_v0  ;;  %vm2749_vm0 = vweird.f32 %v5928_v49 }
 0x26a   :  { %4647 = vrcp.f32 %v5930_v21  ;;  %v5937_v59 = vpop.eup %4643  ;;  %v5939_v63 = vadd.f32 1.0, %v4642_v14  ;;  %vm5978_vm4 = vmor %vm2748_vm2, %vm2749_vm0  ;;  %vm2808_vm11 = vweird.f32 %v5930_v21 }
 0x26b   :  { %4649 = vpow2.f32 %v4253_v19  ;;  %v2745_v29 = vsub.f32 1.0, %v2744_v15  ;;  %v2500_v32 = vmul.f32 %v5937_v59, %v5918_v27  ;;  %v6695_v19 = vld [vmem:[#allocation27_spill] sm:$0xff]  ;;  %vm2505_vm9 = vweird.f32 %v5937_v59 }
 0x26c   :  { %v2077_v30 = vpop.f32.mrf.mxu2  ;;  %4651 = vrcp.f32 %v5939_v63  ;;  %vm6034_vm12 = vmor %vm2504_vm8, %vm2505_vm9 }
 0x26d   :  { %v2078_v23 = vadd.f32 %v2077_v30, %v2029_v41  ;;  %v5941_v12 = vpop.f32.mrf.mxu3  ;;  %v1982_v3 = vpop.f32.mrf.mxu0  ;;  %v2746_v26 = vmul.f32 %v5928_v49, %v2745_v29  ;;  %v2501_v14 = vsub.f32 1.0, %v2500_v32  ;;  %v2752_v32 = vand.u32 2147483647, %v5913_v33 }
 0x26e   :  { %v2031_v56 = vpop.f32.mrf.mxu1  ;;  %v1983_v11 = vadd.f32 %v1982_v3, %v5696_v55  ;;  %v2442_v55 = vmul.f32 %v5924_v43, %v2441_v1 }
 0x26f   :  { %v4646_v9 = vpop.eup %4645  ;;  %v4269_v53 = vmul.f32 -1.442695, %v2078_v23  ;;  %vm2753_vm7 = vcmp.eq.f32.partialorder %v2752_v32, 8.507059e+37  ;;  %v2814_v32 = vand.u32 2147483648, %v5930_v21 }
 0x270   :  { %v5946_v62 = vpop.eup %4647  ;;  %v5950_v48 = vadd.f32 1.0, %v4646_v9  ;;  %2177 = vmatmul.bf16.gmra.mxu0 %v6695_v19  ;;  %2226 = vmatmul.bf16.gmra.mxu1 %v6647_v39  ;;  %v2032_v15 = vadd.f32 %v2031_v56, %v1983_v11  ;;  %v2747_v39 = vadd.f32 %v5928_v49, %v2746_v26  ;;  %v2443_v9 = vadd.f32 %v5924_v43, %v2442_v55 }
 0x271   :  { %v4650_v0 = vpop.eup %4649  ;;  %v2804_v50 = vmul.f32 %v5946_v62, %v5930_v21  ;;  %4653 = vpow2.f32 %v4269_v53  ;;  %2275 = vmatmul.bf16.gmra.mxu2 %v6586_v28  ;;  %v2754_v28 = vand.u32 2147483648, %v5913_v33  ;;  %vm2809_vm10 = vweird.f32 %v5946_v62 }
 0x272   :  { %4655 = vrcp.f32 %v5950_v48  ;;  %2324 = vmatmul.bf16.gmra.mxu3 %v6588_v61  ;;  %v5961_v41 = vadd.f32 1.0, %v4650_v0  ;;  %v2450_v61 = vand.u32 2147483648, %v5906_v25  ;;  %v5970_v56 = vpop.eup %4651  ;;  %v2751_v24 = vsel %vm5978_vm4, %v5928_v49, %v2747_v39  ;;  %vm6042_vm13 = vmor %vm2808_vm11, %vm2809_vm10 }
 0x273   :  { %v2805_v29 = vsub.f32 1.0, %v2804_v50  ;;  %v2502_v50 = vmul.f32 %v5937_v59, %v2501_v14  ;;  %v2447_v49 = vsel %vm6005_vm6, %v5924_v43, %v2443_v9  ;;  %v2812_v19 = vand.u32 2147483647, %v5930_v21 }
 0x274   :  { %v2080_v30 = vpop.f32.mrf.mxu2  ;;  %vm2565_vm0 = vweird.f32 %v5970_v56  ;;  %vm2868_vm2 = vweird.f32 %v5950_v48  ;;  %vm2564_vm4 = vweird.f32 %v5939_v63 }
 0x275   :  { %v2081_v23 = vadd.f32 %v2080_v30, %v2032_v15  ;;  %v5968_v3 = vpop.f32.mrf.mxu3  ;;  %v1984_v1 = vpop.f32.mrf.mxu0  ;;  %v2806_v33 = vmul.f32 %v5946_v62, %v2805_v29  ;;  %v2560_v30 = vmul.f32 %v5970_v56, %v5939_v63  ;;  %v2451_v29 = vor.u32 1.1754944e-38, %v2450_v61 }
 0x276   :  { %v2033_v53 = vpop.f32.mrf.mxu1  ;;  %v1985_v0 = vadd.f32 %v1984_v1, %v5751_v7  ;;  %v2510_v1 = vand.u32 2147483648, %v5918_v27  ;;  %v2503_v26 = vadd.f32 %v5937_v59, %v2502_v50  ;;  %vm2813_vm14 = vcmp.eq.f32.partialorder %v2812_v19, 8.507059e+37 }
 0x277   :  { %v4654_v11 = vpop.eup %4653  ;;  %4657 = vtanh.f32 %v2081_v23  ;;  %v2755_v23 = vor.u32 1.1754944e-38, %v2754_v28  ;;  %v3275_v28 = vld [vmem:[%s6441_s1 + $0x10] sm:$0xff]  ;;  %v2807_v14 = vadd.f32 %v5946_v62, %v2806_v33  ;;  %v2561_v9 = vsub.f32 1.0, %v2560_v30 }
 0x278   :  { %v5988_v55 = vpop.eup %4655  ;;  %4659 = vrcp.f32 %v5961_v41  ;;  %v5992_v15 = vadd.f32 1.0, %v4654_v11  ;;  %v2034_v25 = vadd.f32 %v2033_v53, %v1985_v0  ;;  %v2507_v21 = vsel %vm6034_vm12, %v5937_v59, %v2503_v26  ;;  %v3279_v26 = vld [vmem:[%s6441_s1 + $0x30] sm:$0xff] }
 0x279   :  { %v2864_v7 = vmul.f32 %v5988_v55, %v5950_v48  ;;  %v2756_v39 = vsel %vm2753_vm7, %v2755_v23, %v2751_v24  ;;  %v2452_v24 = vsel %vm5982_vm5, %v2451_v29, %v2447_v49  ;;  %v2508_v29 = vand.u32 2147483647, %v5918_v27  ;;  %vm6098_vm5 = vmor %vm2564_vm4, %vm2565_vm0 }
 0x27a   :  { %4661 = vrcp.f32 %v5992_v15  ;;  %v3291_v50 = vmul.f32 %v3275_v28, %v2756_v39  ;;  %v2811_v27 = vsel %vm6042_vm13, %v5946_v62, %v2807_v14  ;;  %v2511_v59 = vor.u32 1.1754944e-38, %v2510_v1 }
 0x27b   :  { %v2865_v61 = vsub.f32 1.0, %v2864_v7  ;;  %vm2509_vm15 = vcmp.eq.f32.partialorder %v2508_v29, 8.507059e+37  ;;  %vm2869_vm1 = vweird.f32 %v5988_v55  ;;  %v2872_v49 = vand.u32 2147483647, %v5950_v48 }
 0x27c   :  { %v2082_v11 = vpop.f32.mrf.mxu2  ;;  %vm6082_vm3 = vmor %vm2868_vm2, %vm2869_vm1  ;;  %vm2928_vm10 = vweird.f32 %v5992_v15  ;;  %vm2624_vm12 = vweird.f32 %v5961_v41 }
 0x27d   :  { %v4658_v43 = vpop.eup %4657  ;;  %v2083_v53 = vadd.f32 %v2082_v11, %v2034_v25  ;;  %v6025_v0 = vpop.f32.mrf.mxu3  ;;  %v2866_v25 = vmul.f32 %v5988_v55, %v2865_v61  ;;  %v2562_v61 = vmul.f32 %v5970_v56, %v2561_v9  ;;  %vm2873_vm6 = vcmp.eq.f32.partialorder %v2872_v49, 8.507059e+37 }
 0x27e   :  { %v1987_v23 = vpop.f32.mrf.mxu0  ;;  %v6027_v35 = vpop.eup %4659  ;;  %v3307_v7 = vmul.f32 %v4658_v43, %v2452_v24  ;;  %v6706_v43 = vld [vmem:[#allocation31_spill] sm:$0xff] }
 0x27f   :  { %v2036_v30 = vpop.f32.mrf.mxu1  ;;  %4663 = vtanh.f32 %v2083_v53  ;;  %v1988_v39 = vadd.f32 %v1987_v23, %v5798_v8  ;;  %v2620_v24 = vmul.f32 %v6027_v35, %v5961_v41  ;;  %v2815_v53 = vor.u32 1.1754944e-38, %v2814_v32 }
 0x280   :  { %v6047_v28 = vpop.eup %4661  ;;  %v6050_v11 = vadd.f32 %v3307_v7, %v3291_v50  ;;  %2182 = vmatmul.bf16.gmra.mxu0 %v6706_v43  ;;  %2231 = vmatmul.bf16.gmra.mxu1 %v6658_v51  ;;  %v2512_v51 = vsel %vm2509_vm15, %v2511_v59, %v2507_v21  ;;  %v2867_v32 = vadd.f32 %v5988_v55, %v2866_v25  ;;  %v2570_v21 = vand.u32 2147483648, %v5939_v63 }
 0x281   :  { %v2924_v8 = vmul.f32 %v6047_v28, %v5992_v15  ;;  %2280 = vmatmul.bf16.gmra.mxu2 %v6599_v34  ;;  %v2816_v62 = vsel %vm2813_vm14, %v2815_v53, %v2811_v27  ;;  %v2037_v14 = vadd.f32 %v2036_v30, %v1988_v39  ;;  %v2621_v23 = vsub.f32 1.0, %v2620_v24 }
 0x282   :  { %3371 = vst [vmem:[#allocation8 + $0x10] sm:$0xff] %v6050_v11  ;;  %2329 = vmatmul.bf16.gmra.mxu3 %v6601_v37  ;;  %v2874_v37 = vand.u32 2147483648, %v5950_v48  ;;  %v2563_v7 = vadd.f32 %v5970_v56, %v2562_v61  ;;  %v3295_v30 = vmul.f32 %v3279_v26, %v2816_v62  ;;  %v2568_v48 = vand.u32 2147483647, %v5939_v63 }
 0x283   :  { %v2925_v34 = vsub.f32 1.0, %v2924_v8  ;;  %v2871_v8 = vsel %vm6082_vm3, %v5988_v55, %v2867_v32  ;;  %v2622_v59 = vmul.f32 %v6027_v35, %v2621_v23  ;;  %v2571_v63 = vor.u32 1.1754944e-38, %v2570_v21  ;;  %v3283_v55 = vld [vmem:[%s6441_s1 + $0x50] sm:$0xff] }
 0x284   :  { %v2085_v9 = vpop.f32.mrf.mxu2  ;;  %v2875_v53 = vor.u32 1.1754944e-38, %v2874_v37  ;;  %vm2569_vm7 = vcmp.eq.f32.partialorder %v2568_v48, 8.507059e+37  ;;  %vm2625_vm8 = vweird.f32 %v6027_v35  ;;  %vm2929_vm9 = vweird.f32 %v6047_v28 }
 0x285   :  { %v4664_v1 = vpop.eup %4663  ;;  %v2086_v50 = vadd.f32 %v2085_v9, %v2037_v14  ;;  %v6076_v33 = vpop.f32.mrf.mxu3  ;;  %v2926_v43 = vmul.f32 %v6047_v28, %v2925_v34  ;;  %v2934_v9 = vand.u32 2147483648, %v5992_v15  ;;  %vm6120_vm11 = vmor %vm2928_vm10, %vm2929_vm9  ;;  %v2628_v21 = vand.u32 2147483647, %v5961_v41 }
 0x286   :  { %v1989_v19 = vpop.f32.mrf.mxu0  ;;  %v3311_v29 = vmul.f32 %v4664_v1, %v2512_v51  ;;  %v2876_v62 = vsel %vm2873_vm6, %v2875_v53, %v2871_v8  ;;  %v2623_v1 = vadd.f32 %v6027_v35, %v2622_v59  ;;  %vm6135_vm13 = vmor %vm2624_vm12, %vm2625_vm8  ;;  %v3287_v8 = vld [vmem:[%s6441_s1 + $0x70] sm:$0xff] }
 0x287   :  { %v2038_v39 = vpop.f32.mrf.mxu1  ;;  %4665 = vtanh.f32 %v2086_v50  ;;  %v1990_v27 = vadd.f32 %v1989_v19, %v5839_v13  ;;  %v2567_v13 = vsel %vm6098_vm5, %v5970_v56, %v2563_v7  ;;  %v2927_v34 = vadd.f32 %v6047_v28, %v2926_v43 }
 0x288   :  { %v6090_v24 = vadd.f32 %v3311_v29, %v3295_v30  ;;  %v2572_v56 = vsel %vm2569_vm7, %v2571_v63, %v2567_v13  ;;  %v3299_v50 = vmul.f32 %v3283_v55, %v2876_v62  ;;  %v2932_v19 = vand.u32 2147483647, %v5992_v15 }
 0x289   :  { %v2039_v26 = vadd.f32 %v2038_v39, %v1990_v27  ;;  %v2630_v29 = vand.u32 2147483648, %v5961_v41  ;;  %v2931_v15 = vsel %vm6120_vm11, %v6047_v28, %v2927_v34  ;;  %v6713_v27 = vld [vmem:[#allocation34_spill] sm:$0xff]  ;;  %v2935_v48 = vor.u32 1.1754944e-38, %v2934_v9 }
 0x28a   :  { %3375 = vst [vmem:[#allocation8 + $0x30] sm:$0xff] %v6090_v24  ;;  %vm2933_vm14 = vcmp.eq.f32.partialorder %v2932_v19, 8.507059e+37  ;;  %vm2629_vm15 = vcmp.eq.f32.partialorder %v2628_v21, 8.507059e+37 }
 0x28b   :  { %v2631_v41 = vor.u32 1.1754944e-38, %v2630_v29  ;;  %v2936_v28 = vsel %vm2933_vm14, %v2935_v48, %v2931_v15 }
 0x28c   :  { %v2087_v14 = vpop.f32.mrf.mxu2  ;;  %v3303_v62 = vmul.f32 %v3287_v8, %v2936_v28 }
 0x28d   :  { %v4666_v51 = vpop.eup %4665  ;;  %v2088_v32 = vadd.f32 %v2087_v14, %v2039_v26  ;;  %v6115_v23 = vpop.f32.mrf.mxu3 }
 0x28e   :  { %v1992_v37 = vpop.f32.mrf.mxu0  ;;  %v3315_v7 = vmul.f32 %v4666_v51, %v2572_v56 }
 0x28f   :  { %v2041_v30 = vpop.f32.mrf.mxu1  ;;  %4667 = vtanh.f32 %v2088_v32  ;;  %v1993_v39 = vadd.f32 %v1992_v37, %v5852_v58  ;;  %v2627_v58 = vsel %vm6135_vm13, %v6027_v35, %v2623_v1 }
 0x290   :  { %v6125_v25 = vadd.f32 %v3315_v7, %v3299_v50  ;;  %2187 = vmatmul.bf16.gmra.mxu0 %v6713_v27  ;;  %2236 = vmatmul.bf16.gmra.mxu1 %v6672_v17 }
 0x291   :  { %2285 = vmatmul.bf16.gmra.mxu2 %v6612_v47  ;;  %v2042_v53 = vadd.f32 %v2041_v30, %v1993_v39  ;;  %v2632_v47 = vsel %vm2629_vm15, %v2631_v41, %v2627_v58  ;;  %v6716_v30 = vld [vmem:[#allocation38_spill] sm:$0xff] }
 0x292   :  { %3379 = vst [vmem:[#allocation8 + $0x50] sm:$0xff] %v6125_v25  ;;  %2334 = vmatmul.bf16.gmra.mxu3 %v5154_v45 }
 0x294   :  { %v2090_v17 = vpop.f32.mrf.mxu2 }
 0x295   :  { %v4668_v61 = vpop.eup %4667  ;;  %v2091_v59 = vadd.f32 %v2090_v17, %v2042_v53  ;;  %v6149_v13 = vpop.f32.mrf.mxu3 }
 0x296   :  { %v1994_v63 = vpop.f32.mrf.mxu0  ;;  %v3319_v35 = vmul.f32 %v4668_v61, %v2632_v47 }
 0x297   :  { %v2043_v55 = vpop.f32.mrf.mxu1  ;;  %v4273_v26 = vmul.f32 -1.442695, %v2091_v59  ;;  %v1995_v45 = vadd.f32 %v1994_v63, %v5856_v40 }
 0x298   :  { %v6152_v14 = vadd.f32 %v3319_v35, %v3303_v62 }
 0x299   :  { %4669 = vpow2.f32 %v4273_v26  ;;  %v2044_v34 = vadd.f32 %v2043_v55, %v1995_v45 }
 0x29a   :  { %3383 = vst [vmem:[#allocation8 + $0x70] sm:$0xff] %v6152_v14 }
 0x29c   :  { %v2092_v51 = vpop.f32.mrf.mxu2 }
 0x29d   :  { %v2093_v9 = vadd.f32 %v2092_v51, %v2044_v34  ;;  %v6155_v56 = vpop.f32.mrf.mxu3 }
 0x29e   :  { %v1997_v32 = vpop.f32.mrf.mxu0 }
 0x29f   :  { %v2046_v1 = vpop.f32.mrf.mxu1  ;;  %v4670_v37 = vpop.eup %4669  ;;  %v4277_v50 = vmul.f32 -1.442695, %v2093_v9  ;;  %v1998_v7 = vadd.f32 %v1997_v32, %v5865_v22 }
 0x2a0   :  { %v3019_v19 = vadd.f32 1.0, %v4670_v37  ;;  %2192 = vmatmul.bf16.gmra.mxu0 %v6716_v30  ;;  %2241 = vmatmul.bf16.gmra.mxu1 %v6674_v20 }
 0x2a1   :  { %4671 = vpow2.f32 %v4277_v50  ;;  %2290 = vmatmul.bf16.gmra.mxu2 %v6675_v16  ;;  %v2047_v40 = vadd.f32 %v2046_v1, %v1998_v7 }
 0x2a2   :  { %4673 = vrcp.f32 %v3019_v19  ;;  %2339 = vmatmul.bf16.gmra.mxu3 %v6676_v60  ;;  %v3074_v60 = vand.u32 2147483648, %v3019_v19  ;;  %v3072_v53 = vand.u32 2147483647, %v3019_v19  ;;  %vm3068_vm1 = vweird.f32 %v3019_v19 }
 0x2a4   :  { %v2095_v29 = vpop.f32.mrf.mxu2  ;;  %v3075_v55 = vor.u32 1.1754944e-38, %v3074_v60  ;;  %vm3073_vm3 = vcmp.eq.f32.partialorder %v3072_v53, 8.507059e+37 }
 0x2a5   :  { %v2096_v49 = vadd.f32 %v2095_v29, %v2047_v40  ;;  %v6162_v39 = vpop.f32.mrf.mxu3 }
 0x2a6   :  { %v1999_v21 = vpop.f32.mrf.mxu0 }
 0x2a7   :  { %v2048_v15 = vpop.f32.mrf.mxu1  ;;  %v4672_v27 = vpop.eup %4671  ;;  %v4281_v22 = vmul.f32 -1.442695, %v2096_v49  ;;  %v2000_v43 = vadd.f32 %v1999_v21, %v5873_v42 }
 0x2a8   :  { %v4674_v48 = vpop.eup %4673  ;;  %v3023_v58 = vadd.f32 1.0, %v4672_v27 }
 0x2a9   :  { %v3064_v41 = vmul.f32 %v4674_v48, %v3019_v19  ;;  %4675 = vpow2.f32 %v4281_v22  ;;  %v2049_v16 = vadd.f32 %v2048_v15, %v2000_v43  ;;  %vm3069_vm0 = vweird.f32 %v4674_v48 }
 0x2aa   :  { %4677 = vrcp.f32 %v3023_v58  ;;  %vm3070_vm2 = vmor %vm3068_vm1, %vm3069_vm0  ;;  %v3134_v1 = vand.u32 2147483648, %v3023_v58  ;;  %v3132_v7 = vand.u32 2147483647, %v3023_v58  ;;  %vm3128_vm5 = vweird.f32 %v3023_v58 }
 0x2ab   :  { %v3065_v20 = vsub.f32 1.0, %v3064_v41  ;;  %4679 = vtanh.f32 %v6050_v11 }
 0x2ac   :  { %v2097_v28 = vpop.f32.mrf.mxu2  ;;  %v3135_v15 = vor.u32 1.1754944e-38, %v3134_v1  ;;  %vm3133_vm7 = vcmp.eq.f32.partialorder %v3132_v7, 8.507059e+37 }
 0x2ad   :  { %v3066_v8 = vmul.f32 %v4674_v48, %v3065_v20  ;;  %v2098_v17 = vadd.f32 %v2097_v28, %v2049_v16  ;;  %v6166_v61 = vpop.f32.mrf.mxu3 }
 0x2ae   :  { %v6168_v47 = vpop.f32.mrf.mxu0 }
 0x2af   :  { %v6170_v42 = vpop.f32.mrf.mxu1  ;;  %v4676_v59 = vpop.eup %4675  ;;  %v3067_v63 = vadd.f32 %v4674_v48, %v3066_v8  ;;  %v4285_v62 = vmul.f32 -1.442695, %v2098_v17 }
 0x2b0   :  { %v4678_v35 = vpop.eup %4677  ;;  %v3027_v11 = vadd.f32 1.0, %v4676_v59 }
 0x2b1   :  { %v3071_v26 = vsel %vm3070_vm2, %v4674_v48, %v3067_v63  ;;  %v3124_v45 = vmul.f32 %v4678_v35, %v3023_v58  ;;  %4681 = vpow2.f32 %v4285_v62  ;;  %v4680_v34 = vpop.eup %4679  ;;  %vm3129_vm4 = vweird.f32 %v4678_v35  ;;  %v6717_v62 = vld [vmem:[#allocation41_spill] sm:$0xff] }
 0x2b2   :  { %v3076_v51 = vsel %vm3073_vm3, %v3075_v55, %v3071_v26  ;;  %4683 = vrcp.f32 %v3027_v11  ;;  %vm3130_vm6 = vmor %vm3128_vm5, %vm3129_vm4  ;;  %v3194_v16 = vand.u32 2147483648, %v3027_v11  ;;  %v3192_v58 = vand.u32 2147483647, %v3027_v11 }
 0x2b3   :  { %v3355_v9 = vmul.f32 %v4680_v34, %v3076_v51  ;;  %v3125_v32 = vsub.f32 1.0, %v3124_v45  ;;  %4685 = vtanh.f32 %v6090_v24  ;;  %vm3188_vm9 = vweird.f32 %v3027_v11 }
 0x2b4   :  { %v6173_v37 = vpop.f32.mrf.mxu2  ;;  %v3195_v55 = vor.u32 1.1754944e-38, %v3194_v16  ;;  %vm3193_vm11 = vcmp.eq.f32.partialorder %v3192_v58, 8.507059e+37 }
 0x2b5   :  { %3387 = vst [vmem:[#allocation7 + $0x10] sm:$0xff] %v3355_v9  ;;  %v3126_v50 = vmul.f32 %v4678_v35, %v3125_v32  ;;  %v6175_v19 = vpop.f32.mrf.mxu3 }
 0x2b6   :  { %v2160_v30 = vpop.f32.mrf.mxu0 }
 0x2b7   :  { %v6177_v40 = vpop.f32.mrf.mxu1  ;;  %v4682_v29 = vpop.eup %4681  ;;  %v3127_v49 = vadd.f32 %v4678_v35, %v3126_v50 }
 0x2b8   :  { %v4684_v21 = vpop.eup %4683  ;;  %v3031_v27 = vadd.f32 1.0, %v4682_v29 }
 0x2b9   :  { %v3131_v24 = vsel %vm3130_vm6, %v4678_v35, %v3127_v49  ;;  %v3184_v22 = vmul.f32 %v4684_v21, %v3027_v11  ;;  %v4686_v43 = vpop.eup %4685  ;;  %vm3189_vm8 = vweird.f32 %v4684_v21  ;;  %v2110_v35 = vadd.f32 %v5879_v6, %v6717_v62  ;;  %v6718_v49 = vld [vmem:[#allocation42_spill] sm:$0xff] }
 0x2ba   :  { %v3136_v48 = vsel %vm3133_vm7, %v3135_v15, %v3131_v24  ;;  %4687 = vrcp.f32 %v3031_v27  ;;  %vm3190_vm10 = vmor %vm3188_vm9, %vm3189_vm8  ;;  %v3254_v1 = vand.u32 2147483648, %v3031_v27  ;;  %v3252_v7 = vand.u32 2147483647, %v3031_v27 }
 0x2bb   :  { %v3359_v41 = vmul.f32 %v4686_v43, %v3136_v48  ;;  %v3185_v20 = vsub.f32 1.0, %v3184_v22  ;;  %4689 = vtanh.f32 %v6125_v25  ;;  %v2159_v51 = vadd.f32 %v6168_v47, %v2110_v35  ;;  %v6720_v35 = vld [vmem:[#allocation43_spill] sm:$0xff] }
 0x2bc   :  { %v2258_v60 = vpop.f32.mrf.mxu2  ;;  %4691 = vtanh.f32 %v6152_v14  ;;  %vm3248_vm13 = vweird.f32 %v3031_v27  ;;  %v3255_v47 = vor.u32 1.1754944e-38, %v3254_v1  ;;  %vm3253_vm15 = vcmp.eq.f32.partialorder %v3252_v7, 8.507059e+37 }
 0x2bd   :  { %3391 = vst [vmem:[#allocation7 + $0x30] sm:$0xff] %v3359_v41  ;;  %v3186_v28 = vmul.f32 %v4684_v21, %v3185_v20  ;;  %v2307_v8 = vpop.f32.mrf.mxu3  ;;  %v2208_v15 = vadd.f32 %v6170_v42, %v2159_v51  ;;  %v6721_v51 = vld [vmem:[#allocation47_spill] sm:$0xff] }
 0x2be   :  { %v2163_v53 = vpop.f32.mrf.mxu0 }
 0x2bf   :  { %v2212_v17 = vpop.f32.mrf.mxu1  ;;  %v3187_v59 = vadd.f32 %v4684_v21, %v3186_v28  ;;  %v2257_v14 = vadd.f32 %v6173_v37, %v2208_v15  ;;  %v2115_v37 = vadd.f32 %v5891_v2, %v6720_v35 }
 0x2c0   :  { %v4688_v63 = vpop.eup %4687 }
 0x2c1   :  { %v3191_v26 = vsel %vm3190_vm10, %v4684_v21, %v3187_v59  ;;  %v3244_v25 = vmul.f32 %v4688_v63, %v3031_v27  ;;  %v4690_v45 = vpop.eup %4689  ;;  %vm3249_vm12 = vweird.f32 %v4688_v63  ;;  %v2112_v21 = vadd.f32 %v5882_v5, %v6718_v49  ;;  %v6719_v59 = vld [vmem:[#allocation45_spill] sm:$0xff] }
 0x2c2   :  { %v3196_v34 = vsel %vm3193_vm11, %v3195_v55, %v3191_v26  ;;  %vm3250_vm14 = vmor %vm3248_vm13, %vm3249_vm12  ;;  %v4692_v41 = vpop.eup %4691  ;;  %v2306_v28 = vadd.f32 %v6175_v19, %v2257_v14  ;;  %v2120_v42 = vadd.f32 %v5903_v18, %v6719_v59 }
 0x2c3   :  { %v3363_v9 = vmul.f32 %v4690_v45, %v3196_v34  ;;  %v3245_v32 = vsub.f32 1.0, %v3244_v25  ;;  %v2161_v43 = vadd.f32 %v2160_v30, %v2112_v21  ;;  %v2164_v25 = vadd.f32 %v2163_v53, %v2115_v37  ;;  %v6722_v21 = vld [vmem:[#allocation44_spill] sm:$0xff] }
 0x2c4   :  { %v2261_v50 = vpop.f32.mrf.mxu2  ;;  %v4242_v26 = vmul.f32 -1.442695, %v2306_v28  ;;  %v2117_v15 = vadd.f32 %v5895_v54, %v6722_v21 }
 0x2c5   :  { %3395 = vst [vmem:[#allocation7 + $0x50] sm:$0xff] %v3363_v9  ;;  %v3246_v11 = vmul.f32 %v4688_v63, %v3245_v32  ;;  %v2310_v6 = vpop.f32.mrf.mxu3  ;;  %v2210_v58 = vadd.f32 %v6177_v40, %v2161_v43  ;;  %v2213_v19 = vadd.f32 %v2212_v17, %v2164_v25  ;;  %v2122_v9 = vadd.f32 %v5909_v10, %v6721_v51  ;;  %v6723_v10 = vld [vmem:[#allocation48_spill] sm:$0xff] }
 0x2c6   :  { %v2165_v29 = vpop.f32.mrf.mxu0  ;;  %4693 = vpow2.f32 %v4242_v26  ;;  %v2125_v43 = vadd.f32 %v5922_v36, %v6723_v10 }
 0x2c7   :  { %v2214_v24 = vpop.f32.mrf.mxu1  ;;  %v3247_v22 = vadd.f32 %v4688_v63, %v3246_v11  ;;  %v2259_v30 = vadd.f32 %v2258_v60, %v2210_v58  ;;  %v2262_v7 = vadd.f32 %v2261_v50, %v2213_v19  ;;  %v2166_v17 = vadd.f32 %v2165_v29, %v2117_v15 }
 0x2c9   :  { %v3251_v48 = vsel %vm3250_vm14, %v4688_v63, %v3247_v22  ;;  %v2308_v45 = vadd.f32 %v2307_v8, %v2259_v30  ;;  %v2311_v22 = vadd.f32 %v2310_v6, %v2262_v7  ;;  %v2215_v58 = vadd.f32 %v2214_v24, %v2166_v17 }
 0x2ca   :  { %v3256_v20 = vsel %vm3253_vm15, %v3255_v47, %v3251_v48 }
 0x2cb   :  { %v3367_v16 = vmul.f32 %v4692_v41, %v3256_v20  ;;  %v4246_v11 = vmul.f32 -1.442695, %v2308_v45 }
 0x2cc   :  { %v2263_v5 = vpop.f32.mrf.mxu2  ;;  %v4694_v8 = vpop.eup %4693 }
 0x2cd   :  { %3399 = vst [vmem:[#allocation7 + $0x70] sm:$0xff] %v3367_v16  ;;  %v2312_v27 = vpop.f32.mrf.mxu3  ;;  %4695 = vpow2.f32 %v4246_v11  ;;  %v6200_v48 = vadd.f32 1.0, %v4694_v8  ;;  %v4250_v16 = vmul.f32 -1.442695, %v2311_v22  ;;  %v2264_v6 = vadd.f32 %v2263_v5, %v2215_v58 }
 0x2ce   :  { %v2168_v62 = vpop.f32.mrf.mxu0 }
 0x2cf   :  { %v2217_v63 = vpop.f32.mrf.mxu1  ;;  %v2169_v55 = vadd.f32 %v2168_v62, %v2120_v42  ;;  %vm2459_vm0 = vweird.f32 %v6200_v48 }
 0x2d1   :  { %v2218_v34 = vadd.f32 %v2217_v63, %v2169_v55  ;;  %v6724_v63 = vld [vmem:[#allocation50_spill] sm:$0xff]  ;;  %v2313_v55 = vadd.f32 %v2312_v27, %v2264_v6 }
 0x2d2   :  { %v2127_v24 = vadd.f32 %v5941_v12, %v6724_v63 }
 0x2d3   :  { %v4696_v42 = vpop.eup %4695 }
 0x2d4   :  { %v2266_v40 = vpop.f32.mrf.mxu2  ;;  %v6205_v37 = vadd.f32 1.0, %v4696_v42  ;;  %v2132_v42 = vadd.f32 %v6025_v0, %v5133_v31 }
 0x2d5   :  { %v2267_v18 = vadd.f32 %v2266_v40, %v2218_v34  ;;  %v2315_v32 = vpop.f32.mrf.mxu3 }
 0x2d6   :  { %v2170_v1 = vpop.f32.mrf.mxu0  ;;  %vm2519_vm6 = vweird.f32 %v6205_v37 }
 0x2d7   :  { %v2219_v49 = vpop.f32.mrf.mxu1  ;;  %v2316_v2 = vadd.f32 %v2315_v32, %v2267_v18  ;;  %v2171_v60 = vadd.f32 %v2170_v1, %v2122_v9  ;;  %v4254_v18 = vmul.f32 -1.442695, %v2313_v55 }
 0x2d9   :  { %v4258_v53 = vmul.f32 -1.442695, %v2316_v2  ;;  %v2220_v47 = vadd.f32 %v2219_v49, %v2171_v60  ;;  %v2130_v60 = vadd.f32 %v5968_v3, %v6587_v38 }
 0x2db   :  { %4697 = vpow2.f32 %v4258_v53 }
 0x2dc   :  { %v2268_v14 = vpop.f32.mrf.mxu2  ;;  %4699 = vrcp.f32 %v6200_v48 }
 0x2dd   :  { %v2269_v50 = vadd.f32 %v2268_v14, %v2220_v47  ;;  %v2317_v41 = vpop.f32.mrf.mxu3  ;;  %4701 = vpow2.f32 %v4250_v16  ;;  %v2463_v16 = vand.u32 2147483647, %v6200_v48 }
 0x2de   :  { %v2173_v20 = vpop.f32.mrf.mxu0 }
 0x2df   :  { %v2222_v28 = vpop.f32.mrf.mxu1  ;;  %v2318_v54 = vadd.f32 %v2317_v41, %v2269_v50  ;;  %v2174_v59 = vadd.f32 %v2173_v20, %v2125_v43  ;;  %vm6252_vm2 = vcmp.eq.f32.partialorder %v2463_v16, 8.507059e+37 }
 0x2e1   :  { %v4698_v62 = vpop.eup %4697  ;;  %v4262_v29 = vmul.f32 -1.442695, %v2318_v54  ;;  %v2223_v36 = vadd.f32 %v2222_v28, %v2174_v59  ;;  %v2465_v59 = vand.u32 2147483648, %v6200_v48 }
 0x2e2   :  { %v6203_v35 = vadd.f32 1.0, %v4698_v62  ;;  %v6210_v5 = vpop.eup %4699 }
 0x2e3   :  { %4703 = vpow2.f32 %v4262_v29  ;;  %v4702_v51 = vpop.eup %4701  ;;  %v2455_v7 = vmul.f32 %v6210_v5, %v6200_v48  ;;  %v2135_v29 = vadd.f32 %v6076_v33, %v6665_v57  ;;  %vm2460_vm4 = vweird.f32 %v6210_v5  ;;  %v3276_v48 = vld [vmem:[%s6441_s1 + $0x18] sm:$0xff] }
 0x2e4   :  { %4705 = vrcp.f32 %v6203_v35  ;;  %v2271_v30 = vpop.f32.mrf.mxu2  ;;  %v6221_v49 = vadd.f32 1.0, %v4702_v51  ;;  %v2769_v33 = vand.u32 2147483648, %v6203_v35  ;;  %vm2763_vm3 = vweird.f32 %v6203_v35  ;;  %vm6287_vm7 = vmor %vm2459_vm0, %vm2460_vm4 }
 0x2e5   :  { %v2272_v26 = vadd.f32 %v2271_v30, %v2223_v36  ;;  %v2320_v25 = vpop.f32.mrf.mxu3  ;;  %4707 = vrcp.f32 %v6205_v37  ;;  %v2456_v10 = vsub.f32 1.0, %v2455_v7  ;;  %v2767_v51 = vand.u32 2147483647, %v6203_v35 }
 0x2e6   :  { %v2175_v45 = vpop.f32.mrf.mxu0  ;;  %vm2579_vm4 = vweird.f32 %v6221_v49 }
 0x2e7   :  { %v2224_v34 = vpop.f32.mrf.mxu1  ;;  %v2321_v19 = vadd.f32 %v2320_v25, %v2272_v26  ;;  %v2176_v40 = vadd.f32 %v2175_v45, %v2127_v24  ;;  %v2457_v6 = vmul.f32 %v6210_v5, %v2456_v10  ;;  %vm2768_vm8 = vcmp.eq.f32.partialorder %v2767_v51, 8.507059e+37 }
 0x2e9   :  { %v4704_v9 = vpop.eup %4703  ;;  %v4266_v32 = vmul.f32 -1.442695, %v2321_v19  ;;  %v2225_v27 = vadd.f32 %v2224_v34, %v2176_v40  ;;  %v2466_v34 = vor.u32 1.1754944e-38, %v2465_v59  ;;  %v2458_v40 = vadd.f32 %v6210_v5, %v2457_v6 }
 0x2ea   :  { %v6213_v1 = vpop.eup %4705  ;;  %v6215_v11 = vadd.f32 1.0, %v4704_v9 }
 0x2eb   :  { %v2759_v12 = vmul.f32 %v6213_v1, %v6203_v35  ;;  %4709 = vpow2.f32 %v4266_v32  ;;  %v6226_v8 = vpop.eup %4707  ;;  %vm2764_vm1 = vweird.f32 %v6213_v1  ;;  %v3280_v32 = vld [vmem:[%s6441_s1 + $0x38] sm:$0xff] }
 0x2ec   :  { %4711 = vrcp.f32 %v6215_v11  ;;  %v2273_v2 = vpop.f32.mrf.mxu2  ;;  %v2515_v50 = vmul.f32 %v6226_v8, %v6205_v37  ;;  %vm6266_vm5 = vmor %vm2763_vm3, %vm2764_vm1  ;;  %vm2520_vm9 = vweird.f32 %v6226_v8  ;;  %vm2823_vm11 = vweird.f32 %v6215_v11 }
 0x2ed   :  { %4713 = vpow2.f32 %v4254_v18  ;;  %v2274_v21 = vadd.f32 %v2273_v2, %v2225_v27  ;;  %v2322_v15 = vpop.f32.mrf.mxu3  ;;  %v2760_v22 = vsub.f32 1.0, %v2759_v12  ;;  %vm6314_vm12 = vmor %vm2519_vm6, %vm2520_vm9 }
 0x2ee   :  { %v2178_v53 = vpop.f32.mrf.mxu0  ;;  %4715 = vrcp.f32 %v6221_v49  ;;  %v2516_v36 = vsub.f32 1.0, %v2515_v50 }
 0x2ef   :  { %v2227_v17 = vpop.f32.mrf.mxu1  ;;  %v2323_v47 = vadd.f32 %v2322_v15, %v2274_v21  ;;  %v2179_v14 = vadd.f32 %v2178_v53, %v2130_v60  ;;  %v2761_v38 = vmul.f32 %v6213_v1, %v2760_v22  ;;  %v2770_v60 = vor.u32 1.1754944e-38, %v2769_v33 }
 0x2f0   :  { %v2517_v12 = vmul.f32 %v6226_v8, %v2516_v36  ;;  %v2523_v22 = vand.u32 2147483647, %v6205_v37 }
 0x2f1   :  { %v4710_v43 = vpop.eup %4709  ;;  %v4270_v41 = vmul.f32 -1.442695, %v2323_v47  ;;  %v2228_v54 = vadd.f32 %v2227_v17, %v2179_v14  ;;  %v2762_v25 = vadd.f32 %v6213_v1, %v2761_v38  ;;  %v2525_v47 = vand.u32 2147483648, %v6205_v37 }
 0x2f2   :  { %v6231_v20 = vpop.eup %4711  ;;  %v6234_v3 = vadd.f32 1.0, %v4710_v43  ;;  %v2518_v50 = vadd.f32 %v6226_v8, %v2517_v12  ;;  %vm2524_vm14 = vcmp.eq.f32.partialorder %v2523_v22, 8.507059e+37 }
 0x2f3   :  { %v4714_v28 = vpop.eup %4713  ;;  %v2819_v58 = vmul.f32 %v6231_v20, %v6215_v11  ;;  %4717 = vpow2.f32 %v4270_v41  ;;  %v2766_v2 = vsel %vm6266_vm5, %v6213_v1, %v2762_v25  ;;  %v2462_v1 = vsel %vm6287_vm7, %v6210_v5, %v2458_v40 }
 0x2f4   :  { %4719 = vrcp.f32 %v6234_v3  ;;  %v2276_v62 = vpop.f32.mrf.mxu2  ;;  %v6247_v55 = vpop.eup %4715  ;;  %v6249_v26 = vadd.f32 1.0, %v4714_v28  ;;  %v2771_v14 = vsel %vm2768_vm8, %v2770_v60, %v2766_v2  ;;  %vm2824_vm10 = vweird.f32 %v6231_v20 }
 0x2f5   :  { %v2277_v30 = vadd.f32 %v2276_v62, %v2228_v54  ;;  %v2325_v63 = vpop.f32.mrf.mxu3  ;;  %v2820_v31 = vsub.f32 1.0, %v2819_v58  ;;  %v2575_v18 = vmul.f32 %v6247_v55, %v6221_v49  ;;  %v2829_v54 = vand.u32 2147483648, %v6215_v11  ;;  %vm6321_vm13 = vmor %vm2823_vm11, %vm2824_vm10 }
 0x2f6   :  { %v2180_v24 = vpop.f32.mrf.mxu0  ;;  %v2467_v59 = vsel %vm6252_vm2, %v2466_v34, %v2462_v1  ;;  %v3292_v36 = vmul.f32 %v3276_v48, %v2771_v14  ;;  %v2526_v0 = vor.u32 1.1754944e-38, %v2525_v47  ;;  %v2137_v40 = vadd.f32 %v6115_v23, %v5149_v46 }
 0x2f7   :  { %v2229_v57 = vpop.f32.mrf.mxu1  ;;  %v2326_v45 = vadd.f32 %v2325_v63, %v2277_v30  ;;  %v2181_v19 = vadd.f32 %v2180_v24, %v2132_v42  ;;  %v2821_v35 = vmul.f32 %v6231_v20, %v2820_v31  ;;  %v2576_v38 = vsub.f32 1.0, %v2575_v18 }
 0x2f8   :  { %v2827_v24 = vand.u32 2147483647, %v6215_v11  ;;  %v2522_v31 = vsel %vm6314_vm12, %v6226_v8, %v2518_v50  ;;  %v2830_v34 = vor.u32 1.1754944e-38, %v2829_v54  ;;  %vm2580_vm0 = vweird.f32 %v6247_v55 }
 0x2f9   :  { %v4718_v9 = vpop.eup %4717  ;;  %4721 = vtanh.f32 %v2326_v45  ;;  %v2230_v53 = vadd.f32 %v2229_v57, %v2181_v19  ;;  %v2822_v16 = vadd.f32 %v6231_v20, %v2821_v35  ;;  %v2577_v33 = vmul.f32 %v6247_v55, %v2576_v38  ;;  %vm6366_vm5 = vmor %vm2579_vm4, %vm2580_vm0 }
 0x2fa   :  { %v6272_v27 = vpop.eup %4719  ;;  %4723 = vrcp.f32 %v6249_v26  ;;  %v6276_v7 = vadd.f32 1.0, %v4718_v9  ;;  %vm2828_vm15 = vcmp.eq.f32.partialorder %v2827_v24, 8.507059e+37  ;;  %v2527_v9 = vsel %vm2524_vm14, %v2526_v0, %v2522_v31 }
 0x2fb   :  { %v2879_v21 = vmul.f32 %v6272_v27, %v6234_v3  ;;  %v2826_v11 = vsel %vm6321_vm13, %v6231_v20, %v2822_v16  ;;  %v2585_v20 = vand.u32 2147483648, %v6221_v49  ;;  %vm2884_vm1 = vweird.f32 %v6272_v27 }
 0x2fc   :  { %4725 = vrcp.f32 %v6276_v7  ;;  %v2278_v17 = vpop.f32.mrf.mxu2  ;;  %v2831_v18 = vsel %vm2828_vm15, %v2830_v34, %v2826_v11  ;;  %v2578_v23 = vadd.f32 %v6247_v55, %v2577_v33  ;;  %v2889_v22 = vand.u32 2147483648, %v6234_v3 }
 0x2fd   :  { %v2279_v10 = vadd.f32 %v2278_v17, %v2230_v53  ;;  %v2327_v43 = vpop.f32.mrf.mxu3  ;;  %v2880_v5 = vsub.f32 1.0, %v2879_v21  ;;  %vm2883_vm2 = vweird.f32 %v6234_v3  ;;  %v3296_v47 = vmul.f32 %v3280_v32, %v2831_v18 }
 0x2fe   :  { %v2183_v41 = vpop.f32.mrf.mxu0  ;;  %v2887_v48 = vand.u32 2147483647, %v6234_v3  ;;  %vm6355_vm3 = vmor %vm2883_vm2, %vm2884_vm1  ;;  %vm2943_vm10 = vweird.f32 %v6276_v7  ;;  %v2947_v33 = vand.u32 2147483647, %v6276_v7  ;;  %v2645_v34 = vand.u32 2147483648, %v6249_v26 }
 0x2ff   :  { %v2232_v28 = vpop.f32.mrf.mxu1  ;;  %v4722_v58 = vpop.eup %4721  ;;  %v2328_v42 = vadd.f32 %v2327_v43, %v2279_v10  ;;  %v2184_v62 = vadd.f32 %v2183_v41, %v2135_v29  ;;  %v2881_v37 = vmul.f32 %v6272_v27, %v2880_v5  ;;  %v2583_v43 = vand.u32 2147483647, %v6221_v49 }
 0x300   :  { %v6307_v6 = vpop.eup %4723  ;;  %v3308_v30 = vmul.f32 %v4722_v58, %v2467_v59  ;;  %v2890_v5 = vor.u32 1.1754944e-38, %v2889_v22  ;;  %v2582_v49 = vsel %vm6366_vm5, %v6247_v55, %v2578_v23  ;;  %v2586_v58 = vor.u32 1.1754944e-38, %v2585_v20 }
 0x301   :  { %4727 = vtanh.f32 %v2328_v42  ;;  %v2635_v45 = vmul.f32 %v6307_v6, %v6249_v26  ;;  %v2233_v19 = vadd.f32 %v2232_v28, %v2184_v62  ;;  %v2882_v60 = vadd.f32 %v6272_v27, %v2881_v37 }
 0x302   :  { %v6328_v25 = vpop.eup %4725  ;;  %v6331_v57 = vadd.f32 %v3308_v30, %v3292_v36  ;;  %vm2888_vm6 = vcmp.eq.f32.partialorder %v2887_v48, 8.507059e+37  ;;  %v2140_v59 = vadd.f32 %v6149_v13, %v5116_v44  ;;  %vm2584_vm7 = vcmp.eq.f32.partialorder %v2583_v43, 8.507059e+37 }
 0x303   :  { %v2939_v8 = vmul.f32 %v6328_v25, %v6276_v7  ;;  %v2636_v53 = vsub.f32 1.0, %v2635_v45  ;;  %v2886_v3 = vsel %vm6355_vm3, %v6272_v27, %v2882_v60  ;;  %v3284_v27 = vld [vmem:[%s6441_s1 + $0x58] sm:$0xff]  ;;  %vm2944_vm8 = vweird.f32 %v6328_v25 }
 0x304   :  { %3372 = vst [vmem:[#allocation8 + $0x18] sm:$0xff] %v6331_v57  ;;  %v2281_v51 = vpop.f32.mrf.mxu2  ;;  %v2891_v42 = vsel %vm2888_vm6, %v2890_v5, %v2886_v3  ;;  %v2587_v30 = vsel %vm2584_vm7, %v2586_v58, %v2582_v49  ;;  %vm2640_vm9 = vweird.f32 %v6307_v6  ;;  %v2949_v44 = vand.u32 2147483648, %v6276_v7  ;;  %vm6390_vm11 = vmor %vm2943_vm10, %vm2944_vm8 }
 0x305   :  { %v2282_v12 = vadd.f32 %v2281_v51, %v2233_v19  ;;  %v2330_v35 = vpop.f32.mrf.mxu3  ;;  %v2940_v46 = vsub.f32 1.0, %v2939_v8  ;;  %v2637_v28 = vmul.f32 %v6307_v6, %v2636_v53  ;;  %v3300_v37 = vmul.f32 %v3284_v27, %v2891_v42 }
 0x306   :  { %v2185_v2 = vpop.f32.mrf.mxu0  ;;  %vm2639_vm12 = vweird.f32 %v6249_v26  ;;  %v2643_v19 = vand.u32 2147483647, %v6249_v26  ;;  %v2950_v51 = vor.u32 1.1754944e-38, %v2949_v44  ;;  %vm2948_vm14 = vcmp.eq.f32.partialorder %v2947_v33, 8.507059e+37 }
 0x307   :  { %v2234_v21 = vpop.f32.mrf.mxu1  ;;  %v4728_v15 = vpop.eup %4727  ;;  %v2331_v1 = vadd.f32 %v2330_v35, %v2282_v12  ;;  %v2186_v17 = vadd.f32 %v2185_v2, %v2137_v40  ;;  %v2941_v50 = vmul.f32 %v6328_v25, %v2940_v46  ;;  %v2638_v31 = vadd.f32 %v6307_v6, %v2637_v28  ;;  %vm6404_vm13 = vmor %vm2639_vm12, %vm2640_vm9  ;;  %v3288_v12 = vld [vmem:[%s6441_s1 + $0x78] sm:$0xff]  ;;  %s4869_s1 = smov 512  }
 0x308   :  { %v3312_v14 = vmul.f32 %v4728_v15, %v2527_v9  ;;  %v2142_v18 = vadd.f32 %v6155_v56, %v6673_v52  ;;  %vm2644_vm15 = vcmp.eq.f32.partialorder %v2643_v19, 8.507059e+37 }
 0x309   :  { %4729 = vtanh.f32 %v2331_v1  ;;  %v2235_v16 = vadd.f32 %v2234_v21, %v2186_v17  ;;  %v2942_v63 = vadd.f32 %v6328_v25, %v2941_v50  ;;  %v2642_v9 = vsel %vm6404_vm13, %v6307_v6, %v2638_v31 }
 0x30a   :  { %v6362_v41 = vadd.f32 %v3312_v14, %v3296_v47  ;;  %v2145_v47 = vadd.f32 %v6162_v39, %v6678_v4  ;;  %v6743_v4 = vld [vmem:[#allocation56_spill] sm:$0xff] }
 0x30b   :  { %v2946_v40 = vsel %vm6390_vm11, %v6328_v25, %v2942_v63  ;;  %v2646_v25 = vor.u32 1.1754944e-38, %v2645_v34  ;;  %v2147_v39 = vadd.f32 %v6166_v61, %v6743_v4 }
 0x30c   :  { %3376 = vst [vmem:[#allocation8 + $0x38] sm:$0xff] %v6362_v41  ;;  %v2283_v54 = vpop.f32.mrf.mxu2  ;;  %v2951_v32 = vsel %vm2948_vm14, %v2950_v51, %v2946_v40 }
 0x30d   :  { %v2284_v62 = vadd.f32 %v2283_v54, %v2235_v16  ;;  %v2332_v36 = vpop.f32.mrf.mxu3  ;;  %v2647_v21 = vsel %vm2644_vm15, %v2646_v25, %v2642_v9  ;;  %v3304_v52 = vmul.f32 %v3288_v12, %v2951_v32 }
 0x30e   :  { %v2188_v55 = vpop.f32.mrf.mxu0 }
 0x30f   :  { %v2237_v24 = vpop.f32.mrf.mxu1  ;;  %v4730_v29 = vpop.eup %4729  ;;  %v2333_v13 = vadd.f32 %v2332_v36, %v2284_v62  ;;  %v2189_v0 = vadd.f32 %v2188_v55, %v2140_v59 }
 0x310   :  { %v3316_v11 = vmul.f32 %v4730_v29, %v2587_v30 }
 0x311   :  { %4731 = vtanh.f32 %v2333_v13  ;;  %v2238_v20 = vadd.f32 %v2237_v24, %v2189_v0 }
 0x312   :  { %v6395_v8 = vadd.f32 %v3316_v11, %v3300_v37 }
 0x314   :  { %3380 = vst [vmem:[#allocation8 + $0x58] sm:$0xff] %v6395_v8  ;;  %v2286_v26 = vpop.f32.mrf.mxu2 }
 0x315   :  { %v2287_v35 = vadd.f32 %v2286_v26, %v2238_v20  ;;  %v2335_v2 = vpop.f32.mrf.mxu3 }
 0x316   :  { %v2190_v46 = vpop.f32.mrf.mxu0 }
 0x317   :  { %v2239_v23 = vpop.f32.mrf.mxu1  ;;  %v4732_v60 = vpop.eup %4731  ;;  %v2336_v15 = vadd.f32 %v2335_v2, %v2287_v35  ;;  %v2191_v6 = vadd.f32 %v2190_v46, %v2142_v18 }
 0x318   :  { %v3320_v56 = vmul.f32 %v4732_v60, %v2647_v21 }
 0x319   :  { %v4274_v53 = vmul.f32 -1.442695, %v2336_v15  ;;  %v2240_v1 = vadd.f32 %v2239_v23, %v2191_v6 }
 0x31a   :  { %v6420_v22 = vadd.f32 %v3320_v56, %v3304_v52 }
 0x31b   :  { %4733 = vpow2.f32 %v4274_v53 }
 0x31c   :  { %3384 = vst [vmem:[#allocation8 + $0x78] sm:$0xff] %v6420_v22  ;;  %v2288_v17 = vpop.f32.mrf.mxu2 }
 0x31d   :  { %v2289_v14 = vadd.f32 %v2288_v17, %v2240_v1  ;;  %v2337_v48 = vpop.f32.mrf.mxu3  ;;  %3426 = dma.vmem_to_hbm [thread:$0]  %s3419_s14, 2048, %s3421_s17, [#allocation9], %s4869_s1, %s4869_s1, %s4870_s5  }
 0x31e   :  { %v2193_v10 = vpop.f32.mrf.mxu0 }
 0x31f   :  { %v2338_v43 = vadd.f32 %v2337_v48, %v2289_v14  ;;  %v2194_v50 = vadd.f32 %v2193_v10, %v2145_v47  ;;  %v2242_v38 = vpop.f32.mrf.mxu1 }
 0x321   :  { %v4734_v3 = vpop.eup %4733  ;;  %v4278_v5 = vmul.f32 -1.442695, %v2338_v43  ;;  %v2243_v16 = vadd.f32 %v2242_v38, %v2194_v50 }
 0x322   :  { %v3020_v49 = vadd.f32 1.0, %v4734_v3 }
 0x323   :  { %4735 = vpow2.f32 %v4278_v5 }
 0x324   :  { %4737 = vrcp.f32 %v3020_v49  ;;  %v2291_v28 = vpop.f32.mrf.mxu2  ;;  %v3089_v61 = vand.u32 2147483648, %v3020_v49  ;;  %v3087_v11 = vand.u32 2147483647, %v3020_v49  ;;  %vm3083_vm1 = vweird.f32 %v3020_v49 }
 0x325   :  { %v2292_v58 = vadd.f32 %v2291_v28, %v2243_v16  ;;  %v2340_v54 = vpop.f32.mrf.mxu3 }
 0x326   :  { %v2195_v59 = vpop.f32.mrf.mxu0  ;;  %v3090_v51 = vor.u32 1.1754944e-38, %v3089_v61  ;;  %vm3088_vm3 = vcmp.eq.f32.partialorder %v3087_v11, 8.507059e+37 }
 0x327   :  { %v2341_v42 = vadd.f32 %v2340_v54, %v2292_v58  ;;  %v2196_v27 = vadd.f32 %v2195_v59, %v2147_v39  ;;  %v2244_v63 = vpop.f32.mrf.mxu1 }
 0x329   :  { %v4736_v62 = vpop.eup %4735  ;;  %v4282_v36 = vmul.f32 -1.442695, %v2341_v42  ;;  %v2245_v29 = vadd.f32 %v2244_v63, %v2196_v27 }
 0x32a   :  { %v4738_v55 = vpop.eup %4737  ;;  %v3024_v30 = vadd.f32 1.0, %v4736_v62 }
 0x32b   :  { %v3079_v24 = vmul.f32 %v4738_v55, %v3020_v49  ;;  %4739 = vpow2.f32 %v4282_v36  ;;  %vm3084_vm0 = vweird.f32 %v4738_v55 }
 0x32c   :  { %4741 = vrcp.f32 %v3024_v30  ;;  %v2293_v44 = vpop.f32.mrf.mxu2  ;;  %vm3085_vm2 = vmor %vm3083_vm1, %vm3084_vm0  ;;  %v3149_v32 = vand.u32 2147483648, %v3024_v30  ;;  %v3147_v35 = vand.u32 2147483647, %v3024_v30  ;;  %vm3143_vm5 = vweird.f32 %v3024_v30 }
 0x32d   :  { %v3080_v13 = vsub.f32 1.0, %v3079_v24  ;;  %v2294_v31 = vadd.f32 %v2293_v44, %v2245_v29  ;;  %4743 = vtanh.f32 %v6331_v57  ;;  %v2342_v0 = vpop.f32.mrf.mxu3 }
 0x32e   :  { %v3150_v60 = vor.u32 1.1754944e-38, %v3149_v32  ;;  %vm3148_vm7 = vcmp.eq.f32.partialorder %v3147_v35, 8.507059e+37 }
 0x32f   :  { %v3081_v37 = vmul.f32 %v4738_v55, %v3080_v13  ;;  %v2343_v33 = vadd.f32 %v2342_v0, %v2294_v31 }
 0x331   :  { %v4740_v45 = vpop.eup %4739  ;;  %v3082_v34 = vadd.f32 %v4738_v55, %v3081_v37  ;;  %v4286_v19 = vmul.f32 -1.442695, %v2343_v33 }
 0x332   :  { %v4742_v40 = vpop.eup %4741  ;;  %v3028_v7 = vadd.f32 1.0, %v4740_v45 }
 0x333   :  { %v3086_v20 = vsel %vm3085_vm2, %v4738_v55, %v3082_v34  ;;  %v3139_v9 = vmul.f32 %v4742_v40, %v3024_v30  ;;  %4745 = vpow2.f32 %v4286_v19  ;;  %v4744_v26 = vpop.eup %4743  ;;  %vm3144_vm4 = vweird.f32 %v4742_v40 }
 0x334   :  { %v3091_v57 = vsel %vm3088_vm3, %v3090_v51, %v3086_v20  ;;  %4747 = vrcp.f32 %v3028_v7  ;;  %vm3145_vm6 = vmor %vm3143_vm5, %vm3144_vm4  ;;  %v3209_v1 = vand.u32 2147483648, %v3028_v7  ;;  %v3207_v47 = vand.u32 2147483647, %v3028_v7 }
 0x335   :  { %v3356_v18 = vmul.f32 %v4744_v26, %v3091_v57  ;;  %v3140_v25 = vsub.f32 1.0, %v3139_v9  ;;  %4749 = vtanh.f32 %v6362_v41  ;;  %vm3203_vm9 = vweird.f32 %v3028_v7 }
 0x336   :  { %v3210_v10 = vor.u32 1.1754944e-38, %v3209_v1  ;;  %vm3208_vm11 = vcmp.eq.f32.partialorder %v3207_v47, 8.507059e+37 }
 0x337   :  { %3388 = vst [vmem:[#allocation7 + $0x18] sm:$0xff] %v3356_v18  ;;  %v3141_v12 = vmul.f32 %v4742_v40, %v3140_v25 }
 0x339   :  { %v4746_v2 = vpop.eup %4745  ;;  %v3142_v46 = vadd.f32 %v4742_v40, %v3141_v12 }
 0x33a   :  { %v4748_v23 = vpop.eup %4747  ;;  %v3032_v21 = vadd.f32 1.0, %v4746_v2 }
 0x33b   :  { %v3146_v15 = vsel %vm3145_vm6, %v4742_v40, %v3142_v46  ;;  %v3199_v6 = vmul.f32 %v4748_v23, %v3028_v7  ;;  %v4750_v52 = vpop.eup %4749  ;;  %vm3204_vm8 = vweird.f32 %v4748_v23 }
 0x33c   :  { %v3151_v56 = vsel %vm3148_vm7, %v3150_v60, %v3146_v15  ;;  %4751 = vrcp.f32 %v3032_v21  ;;  %vm3205_vm10 = vmor %vm3203_vm9, %vm3204_vm8  ;;  %v3267_v28 = vand.u32 2147483647, %v3032_v21  ;;  %vm3263_vm13 = vweird.f32 %v3032_v21 }
 0x33d   :  { %v3360_v53 = vmul.f32 %v4750_v52, %v3151_v56  ;;  %v3200_v41 = vsub.f32 1.0, %v3199_v6  ;;  %4753 = vtanh.f32 %v6395_v8  ;;  %v3269_v8 = vand.u32 2147483648, %v3032_v21 }
 0x33e   :  { %4755 = vtanh.f32 %v6420_v22  ;;  %vm3268_vm15 = vcmp.eq.f32.partialorder %v3267_v28, 8.507059e+37 }
 0x33f   :  { %3392 = vst [vmem:[#allocation7 + $0x38] sm:$0xff] %v3360_v53  ;;  %v3201_v17 = vmul.f32 %v4748_v23, %v3200_v41  ;;  %v3270_v39 = vor.u32 1.1754944e-38, %v3269_v8 }
 0x341   :  { %v3202_v14 = vadd.f32 %v4748_v23, %v3201_v17 }
 0x342   :  { %v4752_v48 = vpop.eup %4751 }
 0x343   :  { %v3206_v43 = vsel %vm3205_vm10, %v4748_v23, %v3202_v14  ;;  %v3259_v50 = vmul.f32 %v4752_v48, %v3032_v21  ;;  %v4754_v38 = vpop.eup %4753  ;;  %vm3264_vm12 = vweird.f32 %v4752_v48 }
 0x344   :  { %v3211_v3 = vsel %vm3208_vm11, %v3210_v10, %v3206_v43  ;;  %vm3265_vm14 = vmor %vm3263_vm13, %vm3264_vm12  ;;  %v4756_v54 = vpop.eup %4755 }
 0x345   :  { %v3364_v5 = vmul.f32 %v4754_v38, %v3211_v3  ;;  %v3260_v49 = vsub.f32 1.0, %v3259_v50 }
 0x347   :  { %3396 = vst [vmem:[#allocation7 + $0x58] sm:$0xff] %v3364_v5  ;;  %v3261_v16 = vmul.f32 %v4752_v48, %v3260_v49 }
 0x349   :  { %v3262_v4 = vadd.f32 %v4752_v48, %v3261_v16 }
 0x34b   :  { %v3266_v58 = vsel %vm3265_vm14, %v4752_v48, %v3262_v4 }
 0x34c   :  { %v3271_v59 = vsel %vm3268_vm15, %v3270_v39, %v3266_v58 }
 0x34d   :  { %v3368_v22 = vmul.f32 %v4756_v54, %v3271_v59 }
 0x34f   :  { %3400 = vst [vmem:[#allocation7 + $0x78] sm:$0xff] %v3368_v22 }
 0x350   :  { %3413 = dma.vmem_to_hbm [thread:$0]  %s3406_s19, 2048, %s3408_s22, [#allocation4], %s4869_s1, %s4869_s1, %s4870_s5  }
 0x351   :  { %4857 = dma.done.wait [#allocation4], 2048  }
 0x352   :  { %4858 = vsyncadd [#allocation4], 4294965248 }
 0x353   :  { %4859 = dma.done.wait [#allocation9], 2048  }
 0x354   :  { %4860 = vsyncadd [#allocation9], 4294965248 }
 0x355   :  { %3435 = vsyncpa [#allocation3], 1 }
 0x356   :  { %3436 = vsyncpa [#allocation6], 1 }
 0x357   :  { %3437 = vsyncpa [#allocation4], 1 }
 0x358   :  { %3438 = vsyncpa [#allocation9], 1 }

</bundles_post_ra>
